<compile_context>
chip_gen: v7x
topology: tpu7x:2x2x1
jax: 0.10.0
libtpu: 0.0.40
codegen_flags: <defaults>
</compile_context>

<pallas_src>
import math
from functools import partial

import jax
import jax.numpy as jnp
from jax import lax
from jax.experimental import pallas as pl
from jax.experimental.pallas import tpu as pltpu

# feature / type column indices (FEATURES_IDX equivalent)
PD, QD, PG, QG, VM, VA = 0, 1, 2, 3, 4, 5
PQ, PV, REF = 6, 7, 8

NEG_SLOPE = 0.01  # torch.nn.LeakyReLU default


def _lrelu(z):
    return jnp.where(z > 0, z, NEG_SLOPE * z)


# ----------------------------- fused Pallas kernel ------------------------------

def pbe_forward_kernel(
    x_ref, ea_ref, S_ref, D_ref,
    ew1_ref,                         # (input_dim, H) encoder first layer
    hw_ref, ow_ref, hb_ref, ob_ref,  # packed encoder-2nd / decoder / eq weights+biases
    eaw_ref,                         # (edge_dim, L*H) hoisted edge-attr projection weights
    gw1_ref, gw2_ref, gb_ref,        # per-layer packed weight/bias stacks
    o_ref,
    *, hidden_dim, num_layers, output_dim):
    H = hidden_dim
    f32 = jnp.float32

    x = x_ref[...]
    ea = ea_ref[...]
    S = S_ref[...]      # (E, N) one-hot(src): gather = dot(S, .), scatter-to-src = S^T .
    D = D_ref[...]      # (E, N) one-hot(dst): gather = dot(D, .), scatter-to-dst = D^T .

    def dotf(a, b):
        return jnp.dot(a, b, preferred_element_type=f32)

    def scatter_add(onehot_EN, vals_E):
        # out[n, :] = sum_e onehot[e, n] * vals[e, :]  -- transposed-LHS contraction,
        # replaces the pre-transposed St/Dt matrices of the previous version.
        return lax.dot_general(onehot_EN, vals_E, (((0,), (0,)), ((), ())),
                               preferred_element_type=f32)

    # node-type masks, (N, 1)
    mPQ = x[:, PQ:PQ + 1] == 1.0
    mPV = x[:, PV:PV + 1] == 1.0
    mREF = x[:, REF:REF + 1] == 1.0

    # ---- unpack the small packed weights (static slices of single VMEM loads)
    hw = hw_ref[...]                     # (H, 2H + H//2) = [ew2 | dw1 | qw1]
    ow = ow_ref[...]                     # (H + H//2, out) = [dw2 ; qw2]
    hb = hb_ref[...]                     # (4, H) = [eb1 ; eb2 ; db1 ; qb1(padded)]
    ob = ob_ref[...]                     # (2, out) = [db2 ; qb2]
    ew2 = hw[:, 0:H]
    dw1 = hw[:, H:2 * H]
    qw1 = hw[:, 2 * H:2 * H + H // 2]
    dw2 = ow[0:H, :]
    qw2 = ow[H:H + H // 2, :]
    eb1 = hb[0:1, :]
    eb2 = hb[1:2, :]
    db1 = hb[2:3, :]
    qb1 = hb[3:4, 0:H // 2]
    db2 = ob[0:1, :]
    qb2 = ob[1:2, :]

    # ---- node encoder: Linear -> LeakyReLU -> Linear
    h = dotf(_lrelu(dotf(x, ew1_ref[...]) + eb1), ew2) + eb2

    # ---- loop-invariant edge_attr projection for all layers (one K=edge_dim matmul)
    ea_proj = dotf(ea, eaw_ref[...])     # (E, num_layers * H)

    # ---- message-passing layers
    # NOTE: edge_mlp output is sliced to zero columns when hidden_dim is even, so it
    # never contributes to combined_messages -> it is not computed (same result).
    for l in range(num_layers):
        w1 = gw1_ref[l]   # (4H, H): [edge-src ; edge-dst ; node-h ; node-aggr] 1st layers
        w2 = gw2_ref[l]   # (2H, H): [block-diag p/v 2nd layer ; node 2nd layer]
        b = gb_ref[l]     # (4, H):  [edge b1 ; edge b2 ; node b1 ; node b2]

        # First edge GEMM at node granularity, THEN gather (bit-identical reorder).
        hA = dotf(h, w1[0:H, :])         # src contribution,  (N, H)
        hB = dotf(h, w1[H:2 * H, :])     # dst contribution,  (N, H)
        z = _lrelu(dotf(S, hA) + dotf(D, hB)
                   + ea_proj[:, l * H:(l + 1) * H] + b[0:1, :])
        combined = dotf(z, w2[0:H, :]) + b[1:2, :]   # (E, H) = [p_messages | v_messages]

        # SumAggregation over the dst index
        aggr = scatter_add(D, combined)              # (N, H)

        # node_mlp on cat([h, aggr]) as split-K matmuls
        n1 = _lrelu(dotf(h, w1[2 * H:3 * H, :]) + dotf(aggr, w1[3 * H:, :]) + b[2:3, :])
        h = _lrelu(dotf(n1, w2[H:, :]) + b[3:4, :])

    # ---- node decoder
    pred = dotf(_lrelu(dotf(h, dw1) + db1), dw2) + db2

    # column one-hot selectors over the output lanes
    lane = lax.broadcasted_iota(jnp.int32, (1, output_dim), 1)
    e_PG = (lane == PG).astype(f32)
    e_QG = (lane == QG).astype(f32)
    e_VM = (lane == VM).astype(f32)
    e_VA = (lane == VA).astype(f32)

    # ---- equilibrium correction: h / weights / masks are loop-invariant, so the
    # correction is identical each iteration -> compute once, subtract three times
    # (bit-identical to the 3-iteration torch loop, whose physics step runs only at i==2).
    corr = dotf(_lrelu(dotf(h, qw1) + qb1), qw2) + qb2
    zero_vm = jnp.logical_or(mPV, mREF).astype(f32) * e_VM
    zero_va = mREF.astype(f32) * e_VA
    corr = jnp.where((zero_vm + zero_va) > 0, 0.0, corr)
    pred = pred - corr - corr - corr

    # ---- AC power-flow imbalances; flows scatter-add into the *source* node.
    def imbalances(p):
        vmva = p[:, VM:VA + 1]           # (N, 2) = [VM, VA]
        svv = dotf(S, vmva)              # (E, 2) source [vm, va]
        dvv = dotf(D, vmva)              # (E, 2) dest   [vm, va]
        ang = svv[:, 1:2] - dvv[:, 1:2]
        vv = svv[:, 0:1] * dvv[:, 0:1]
        g = ea[:, 0:1]
        b_ = ea[:, 1:2]
        c = jnp.cos(ang)
        s = jnp.sin(ang)
        lane2 = lax.broadcasted_iota(jnp.int32, (1, 2), 1)
        sel_p = (lane2 == 0).astype(f32)
        sel_q = (lane2 == 1).astype(f32)
        flows = (vv * (g * c + b_ * s)) * sel_p + (vv * (g * s - b_ * c)) * sel_q
        calc = scatter_add(S, flows)     # (N, 2) = [p_calc, q_calc]
        p_imb = p[:, PG:PG + 1] - p[:, PD:PD + 1] - calc[:, 0:1]
        q_imb = p[:, QG:QG + 1] - p[:, QD:QD + 1] - calc[:, 1:2]
        return p_imb, q_imb

    # last iteration of the equilibrium loop: physics correction at cf = 0.05
    p_imb, q_imb = imbalances(pred)
    cf = 0.05
    pred = (pred
            + e_VM * jnp.where(mPQ, q_imb * cf, 0.0)
            + e_QG * jnp.where(mPV, q_imb * cf, 0.0)
            + e_PG * (p_imb * cf))

    # PBE extension: power_balance_correction with mask=None (batch has no .mask) is a
    # value no-op, so only the final imbalance-based correction remains.
    p_imb, q_imb = imbalances(pred)
    pred = (pred
            + e_VM * jnp.where(mPQ, q_imb * 0.02, 0.0)
            + e_QG * jnp.where(mPV, q_imb * 0.05, 0.0)
            + e_PG * jnp.where(mREF, p_imb * 0.05, 0.0))

    o_ref[...] = pred


# ------------------------------ parameters ----------------------------------

def init_params(key, input_dim, hidden_dim, output_dim, edge_dim, num_layers):
    """Kaiming-normal (leaky_relu, fan_in) weights, zero biases. Deterministic."""
    keys = iter(jax.random.split(key, 128))

    def lin(fan_in, fan_out):
        w = jax.random.normal(next(keys), (fan_in, fan_out), jnp.float32) * math.sqrt(2.0 / fan_in)
        b = jnp.zeros((1, fan_out), jnp.float32)
        return w, b

    H = hidden_dim
    params = {
        "enc": (lin(input_dim, H), lin(H, H)),
        "layers": [],
        "dec": (lin(H, H), lin(H, output_dim)),
        "eq": (lin(H, H // 2), lin(H // 2, output_dim)),
        # pbe_layer exists in __init__ but is never used in forward
        "pbe": (lin(H, H), lin(H, 2)),
    }
    for _ in range(num_layers):
        params["layers"].append(dict(
            # edge_mlp weights mirror __init__ but never affect the output (even hidden_dim)
            e=(lin(2 * H + edge_dim, H), lin(H, H)),
            p=(lin(2 * H + edge_dim, H // 2), lin(H // 2, H // 2)),
            v=(lin(2 * H + edge_dim, H // 2), lin(H // 2, H // 2)),
            n=(lin(2 * H, H), lin(H, H)),
        ))
    return params


def pack_params(params, hidden_dim):
    """Pack the many small weight/bias matrices into a few contiguous VMEM blobs:
      - p/v edge MLPs fused (concat + block-diag), per-layer stacks merged into 3 arrays,
      - edge-attr rows of all layers' first edge-MLP weights pulled into one (edge,L*H),
      - encoder-2nd / decoder / eq weights+biases concatenated into 4 blobs."""
    H = hidden_dim
    (ew1, eb1), (ew2, eb2) = params["enc"]
    (dw1, db1), (dw2, db2) = params["dec"]
    (qw1, qb1), (qw2, qb2) = params["eq"]

    hw = jnp.concatenate([ew2, dw1, qw1], axis=1)                  # (H, 2H + H//2)
    ow = jnp.concatenate([dw2, qw2], axis=0)                       # (H + H//2, out)
    qb1p = jnp.pad(qb1, ((0, 0), (0, H - H // 2)))
    hb = jnp.concatenate([eb1, eb2, db1, qb1p], axis=0)            # (4, H)
    ob = jnp.concatenate([db2, qb2], axis=0)                       # (2, out)

    gw1, gw2, gb, eaw = [], [], [], []
    for layer in params["layers"]:
        (pw1, pb1), (pw2, pb2) = layer["p"]
        (vw1, vb1), (vw2, vb2) = layer["v"]
        (nw1, nb1), (nw2, nb2) = layer["n"]
        ew_fused = jnp.concatenate([pw1, vw1], axis=1)             # (2H+edge, H)
        eb1_f = jnp.concatenate([pb1, vb1], axis=1)                # (1, H)
        blk = jnp.zeros((H, H), jnp.float32)
        blk = blk.at[:H // 2, :H // 2].set(pw2).at[H // 2:, H // 2:].set(vw2)
        eb2_f = jnp.concatenate([pb2, vb2], axis=1)                # (1, H)
        gw1.append(jnp.concatenate([ew_fused[:2 * H, :], nw1], axis=0))   # (4H, H)
        gw2.append(jnp.concatenate([blk, nw2], axis=0))                   # (2H, H)
        gb.append(jnp.concatenate([eb1_f, eb2_f, nb1, nb2], axis=0))      # (4, H)
        eaw.append(ew_fused[2 * H:, :])                                   # (edge, H)
    gw1 = jnp.stack(gw1, axis=0)
    gw2 = jnp.stack(gw2, axis=0)
    gb = jnp.stack(gb, axis=0)
    eaw = jnp.concatenate(eaw, axis=1)                                     # (edge, L*H)
    return (ew1, hw, ow, hb, ob, eaw, gw1, gw2, gb)


# ------------------------------ model forward --------------------------------

def _vmem_limit_bytes():
    # Per-generation scoped-VMEM limit: ~75% of physical (=> ~96 MiB v5e/v6e, ~48 MiB v7x),
    # well above the 16/32 MiB defaults. Safe fallback if the query is unavailable.
    try:
        cap = pltpu.get_tpu_info().vmem_capacity_bytes
        return max(int(cap * 3 // 4), 32 * 1024 * 1024)
    except Exception:
        return 48 * 1024 * 1024


def pbe_forward(params, x, pe, edge_index, edge_attr, hidden_dim):
    del pe  # present in the torch signature but unused in forward
    N = x.shape[0]
    output_dim = params["dec"][1][0].shape[1]
    num_layers = len(params["layers"])

    src, dst = edge_index
    # one-hot graph-structure matrices built once outside the kernel; gathers are plain
    # matmuls, scatter-adds are transposed contractions of the SAME matrices (no St/Dt).
    S = jax.nn.one_hot(src, N, dtype=jnp.float32)   # (E, N)
    D = jax.nn.one_hot(dst, N, dtype=jnp.float32)   # (E, N)

    packed = pack_params(params, hidden_dim)
    args = (x, edge_attr, S, D) + packed

    vmem = pl.BlockSpec(memory_space=pltpu.MemorySpace.VMEM)
    return pl.pallas_call(
        partial(pbe_forward_kernel, hidden_dim=hidden_dim,
                num_layers=num_layers, output_dim=output_dim),
        out_shape=jax.ShapeDtypeStruct((N, output_dim), jnp.float32),
        in_specs=[vmem] * len(args),
        out_specs=vmem,
        compiler_params=pltpu.CompilerParams(vmem_limit_bytes=_vmem_limit_bytes()),
    )(*args)


# ------------------------------------ main -----------------------------------

if __name__ == "__main__":
    N, E = 12, 24
    input_dim, hidden_dim, output_dim, edge_dim, num_layers = 9, 32, 6, 4, 3

    key = jax.random.PRNGKey(0)
    kx, ke, kp = jax.random.split(key, 3)

    # node features: 6 physical quantities + one-hot node type (PQ / PV / REF)
    feats = jax.random.normal(kx, (N, 6), jnp.float32)
    node_type = jnp.arange(N) % 3
    type_onehot = jax.nn.one_hot(node_type, 3, dtype=jnp.float32)
    x = jnp.concatenate([feats, type_onehot], axis=1)            # (N, 9)
    pe = jnp.zeros((N, 4), jnp.float32)                          # unused by forward

    idx = jnp.arange(N, dtype=jnp.int32)
    src = jnp.concatenate([idx, (idx + 1) % N])                  # bidirectional ring
    dst = jnp.concatenate([(idx + 1) % N, idx])
    edge_index = jnp.stack([src, dst])                           # (2, 24)
    edge_attr = jax.random.normal(ke, (E, edge_dim), jnp.float32)

    params = init_params(kp, input_dim, hidden_dim, output_dim, edge_dim, num_layers)

    pred = pbe_forward(params, x, pe, edge_index, edge_attr, hidden_dim)
    pred = jax.block_until_ready(pred)

    assert pred.shape == (N, output_dim)
    assert bool(jnp.all(jnp.isfinite(pred)))
    print("KERNEL_OK")
</pallas_src>

<mosaic_0001>
module attributes {stable_mosaic.version = 11 : i64} {
  func.func @pbe_forward_kernel(%arg0: memref<12x9xf32, #tpu.memory_space<vmem>>, %arg1: memref<24x4xf32, #tpu.memory_space<vmem>>, %arg2: memref<24x12xf32, #tpu.memory_space<vmem>>, %arg3: memref<24x12xf32, #tpu.memory_space<vmem>>, %arg4: memref<9x32xf32, #tpu.memory_space<vmem>>, %arg5: memref<32x80xf32, #tpu.memory_space<vmem>>, %arg6: memref<48x6xf32, #tpu.memory_space<vmem>>, %arg7: memref<4x32xf32, #tpu.memory_space<vmem>>, %arg8: memref<2x6xf32, #tpu.memory_space<vmem>>, %arg9: memref<4x96xf32, #tpu.memory_space<vmem>>, %arg10: memref<3x128x32xf32, #tpu.memory_space<vmem>>, %arg11: memref<3x64x32xf32, #tpu.memory_space<vmem>>, %arg12: memref<3x4x32xf32, #tpu.memory_space<vmem>>, %arg13: memref<12x6xf32, #tpu.memory_space<vmem>>) attributes {dimension_semantics = [], scalar_prefetch = 0 : i64, scratch_operands = 0 : i64, tpu.core_type = #tpu.core_type<tc>} {
    %c0 = arith.constant 0 : index
    %c0_0 = arith.constant 0 : index
    %0 = vector.load %arg0[%c0, %c0_0] : memref<12x9xf32, #tpu.memory_space<vmem>>, vector<12x9xf32>
    %c0_1 = arith.constant 0 : index
    %c0_2 = arith.constant 0 : index
    %1 = vector.load %arg1[%c0_1, %c0_2] : memref<24x4xf32, #tpu.memory_space<vmem>>, vector<24x4xf32>
    %c0_3 = arith.constant 0 : index
    %c0_4 = arith.constant 0 : index
    %2 = vector.load %arg2[%c0_3, %c0_4] : memref<24x12xf32, #tpu.memory_space<vmem>>, vector<24x12xf32>
    %c0_5 = arith.constant 0 : index
    %c0_6 = arith.constant 0 : index
    %3 = vector.load %arg3[%c0_5, %c0_6] : memref<24x12xf32, #tpu.memory_space<vmem>>, vector<24x12xf32>
    %4 = vector.extract_strided_slice %0 {offsets = [0, 6], sizes = [12, 1], strides = [1, 1]} : vector<12x9xf32> to vector<12x1xf32>
    %cst = arith.constant 1.000000e+00 : f32
    %5 = vector.broadcast %cst : f32 to vector<12x1xf32>
    %6 = arith.cmpf oeq, %4, %5 : vector<12x1xf32>
    %7 = vector.extract_strided_slice %0 {offsets = [0, 7], sizes = [12, 1], strides = [1, 1]} : vector<12x9xf32> to vector<12x1xf32>
    %cst_7 = arith.constant 1.000000e+00 : f32
    %8 = vector.broadcast %cst_7 : f32 to vector<12x1xf32>
    %9 = arith.cmpf oeq, %7, %8 : vector<12x1xf32>
    %10 = vector.extract_strided_slice %0 {offsets = [0, 8], sizes = [12, 1], strides = [1, 1]} : vector<12x9xf32> to vector<12x1xf32>
    %cst_8 = arith.constant 1.000000e+00 : f32
    %11 = vector.broadcast %cst_8 : f32 to vector<12x1xf32>
    %12 = arith.cmpf oeq, %10, %11 : vector<12x1xf32>
    %c0_9 = arith.constant 0 : index
    %c0_10 = arith.constant 0 : index
    %13 = vector.load %arg5[%c0_9, %c0_10] : memref<32x80xf32, #tpu.memory_space<vmem>>, vector<32x80xf32>
    %c0_11 = arith.constant 0 : index
    %c0_12 = arith.constant 0 : index
    %14 = vector.load %arg6[%c0_11, %c0_12] : memref<48x6xf32, #tpu.memory_space<vmem>>, vector<48x6xf32>
    %c0_13 = arith.constant 0 : index
    %c0_14 = arith.constant 0 : index
    %15 = vector.load %arg7[%c0_13, %c0_14] : memref<4x32xf32, #tpu.memory_space<vmem>>, vector<4x32xf32>
    %c0_15 = arith.constant 0 : index
    %c0_16 = arith.constant 0 : index
    %16 = vector.load %arg8[%c0_15, %c0_16] : memref<2x6xf32, #tpu.memory_space<vmem>>, vector<2x6xf32>
    %17 = vector.extract_strided_slice %13 {offsets = [0, 0], sizes = [32, 32], strides = [1, 1]} : vector<32x80xf32> to vector<32x32xf32>
    %18 = vector.extract_strided_slice %13 {offsets = [0, 32], sizes = [32, 32], strides = [1, 1]} : vector<32x80xf32> to vector<32x32xf32>
    %19 = vector.extract_strided_slice %13 {offsets = [0, 64], sizes = [32, 16], strides = [1, 1]} : vector<32x80xf32> to vector<32x16xf32>
    %20 = vector.extract_strided_slice %14 {offsets = [0, 0], sizes = [32, 6], strides = [1, 1]} : vector<48x6xf32> to vector<32x6xf32>
    %21 = vector.extract_strided_slice %14 {offsets = [32, 0], sizes = [16, 6], strides = [1, 1]} : vector<48x6xf32> to vector<16x6xf32>
    %22 = vector.extract_strided_slice %15 {offsets = [0, 0], sizes = [1, 32], strides = [1, 1]} : vector<4x32xf32> to vector<1x32xf32>
    %23 = vector.extract_strided_slice %15 {offsets = [1, 0], sizes = [1, 32], strides = [1, 1]} : vector<4x32xf32> to vector<1x32xf32>
    %24 = vector.extract_strided_slice %15 {offsets = [2, 0], sizes = [1, 32], strides = [1, 1]} : vector<4x32xf32> to vector<1x32xf32>
    %25 = vector.extract_strided_slice %15 {offsets = [3, 0], sizes = [1, 16], strides = [1, 1]} : vector<4x32xf32> to vector<1x16xf32>
    %26 = vector.extract_strided_slice %16 {offsets = [0, 0], sizes = [1, 6], strides = [1, 1]} : vector<2x6xf32> to vector<1x6xf32>
    %27 = vector.extract_strided_slice %16 {offsets = [1, 0], sizes = [1, 6], strides = [1, 1]} : vector<2x6xf32> to vector<1x6xf32>
    %c0_17 = arith.constant 0 : index
    %c0_18 = arith.constant 0 : index
    %28 = vector.load %arg4[%c0_17, %c0_18] : memref<9x32xf32, #tpu.memory_space<vmem>>, vector<9x32xf32>
    %cst_19 = arith.constant dense<0.000000e+00> : vector<12x32xf32>
    %29 = tpu.matmul %0, %28, %cst_19 {dimension_numbers = #tpu.dot_dimension_numbers<[1], [0], [0], [1], [0, 0, 1, 1], [], []>} : vector<12x9xf32>, vector<9x32xf32>, vector<12x32xf32> -> vector<12x32xf32>
    %30 = vector.broadcast %22 : vector<1x32xf32> to vector<12x32xf32>
    %31 = arith.addf %29, %30 : vector<12x32xf32>
    %cst_20 = arith.constant 0.000000e+00 : f32
    %32 = vector.broadcast %cst_20 : f32 to vector<12x32xf32>
    %33 = arith.cmpf ogt, %31, %32 : vector<12x32xf32>
    %cst_21 = arith.constant 0.00999999977 : f32
    %34 = vector.broadcast %cst_21 : f32 to vector<12x32xf32>
    %35 = arith.mulf %34, %31 : vector<12x32xf32>
    %36 = arith.select %33, %31, %35 : vector<12x32xi1>, vector<12x32xf32>
    %cst_22 = arith.constant dense<0.000000e+00> : vector<12x32xf32>
    %37 = tpu.matmul %36, %17, %cst_22 {dimension_numbers = #tpu.dot_dimension_numbers<[1], [0], [0], [1], [0, 0, 1, 1], [], []>} : vector<12x32xf32>, vector<32x32xf32>, vector<12x32xf32> -> vector<12x32xf32>
    %38 = vector.broadcast %23 : vector<1x32xf32> to vector<12x32xf32>
    %39 = arith.addf %37, %38 : vector<12x32xf32>
    %c0_23 = arith.constant 0 : index
    %c0_24 = arith.constant 0 : index
    %40 = vector.load %arg9[%c0_23, %c0_24] : memref<4x96xf32, #tpu.memory_space<vmem>>, vector<4x96xf32>
    %cst_25 = arith.constant dense<0.000000e+00> : vector<24x96xf32>
    %41 = tpu.matmul %1, %40, %cst_25 {dimension_numbers = #tpu.dot_dimension_numbers<[1], [0], [0], [1], [0, 0, 1, 1], [], []>} : vector<24x4xf32>, vector<4x96xf32>, vector<24x96xf32> -> vector<24x96xf32>
    %c0_26 = arith.constant 0 : index
    %c0_27 = arith.constant 0 : index
    %c0_28 = arith.constant 0 : index
    %42 = vector.load %arg10[%c0_26, %c0_27, %c0_28] : memref<3x128x32xf32, #tpu.memory_space<vmem>>, vector<1x128x32xf32>
    %43 = vector.shape_cast %42 : vector<1x128x32xf32> to vector<128x32xf32>
    %c0_29 = arith.constant 0 : index
    %c0_30 = arith.constant 0 : index
    %c0_31 = arith.constant 0 : index
    %44 = vector.load %arg11[%c0_29, %c0_30, %c0_31] : memref<3x64x32xf32, #tpu.memory_space<vmem>>, vector<1x64x32xf32>
    %45 = vector.shape_cast %44 : vector<1x64x32xf32> to vector<64x32xf32>
    %c0_32 = arith.constant 0 : index
    %c0_33 = arith.constant 0 : index
    %c0_34 = arith.constant 0 : index
    %46 = vector.load %arg12[%c0_32, %c0_33, %c0_34] : memref<3x4x32xf32, #tpu.memory_space<vmem>>, vector<1x4x32xf32>
    %47 = vector.shape_cast %46 : vector<1x4x32xf32> to vector<4x32xf32>
    %48 = vector.extract_strided_slice %43 {offsets = [0, 0], sizes = [32, 32], strides = [1, 1]} : vector<128x32xf32> to vector<32x32xf32>
    %cst_35 = arith.constant dense<0.000000e+00> : vector<12x32xf32>
    %49 = tpu.matmul %39, %48, %cst_35 {dimension_numbers = #tpu.dot_dimension_numbers<[1], [0], [0], [1], [0, 0, 1, 1], [], []>} : vector<12x32xf32>, vector<32x32xf32>, vector<12x32xf32> -> vector<12x32xf32>
    %50 = vector.extract_strided_slice %43 {offsets = [32, 0], sizes = [32, 32], strides = [1, 1]} : vector<128x32xf32> to vector<32x32xf32>
    %cst_36 = arith.constant dense<0.000000e+00> : vector<12x32xf32>
    %51 = tpu.matmul %39, %50, %cst_36 {dimension_numbers = #tpu.dot_dimension_numbers<[1], [0], [0], [1], [0, 0, 1, 1], [], []>} : vector<12x32xf32>, vector<32x32xf32>, vector<12x32xf32> -> vector<12x32xf32>
    %cst_37 = arith.constant dense<0.000000e+00> : vector<24x32xf32>
    %52 = tpu.matmul %2, %49, %cst_37 {dimension_numbers = #tpu.dot_dimension_numbers<[1], [0], [0], [1], [0, 0, 1, 1], [], []>} : vector<24x12xf32>, vector<12x32xf32>, vector<24x32xf32> -> vector<24x32xf32>
    %cst_38 = arith.constant dense<0.000000e+00> : vector<24x32xf32>
    %53 = tpu.matmul %3, %51, %cst_38 {dimension_numbers = #tpu.dot_dimension_numbers<[1], [0], [0], [1], [0, 0, 1, 1], [], []>} : vector<24x12xf32>, vector<12x32xf32>, vector<24x32xf32> -> vector<24x32xf32>
    %54 = arith.addf %52, %53 : vector<24x32xf32>
    %55 = vector.extract_strided_slice %41 {offsets = [0, 0], sizes = [24, 32], strides = [1, 1]} : vector<24x96xf32> to vector<24x32xf32>
    %56 = arith.addf %54, %55 : vector<24x32xf32>
    %57 = vector.extract_strided_slice %47 {offsets = [0, 0], sizes = [1, 32], strides = [1, 1]} : vector<4x32xf32> to vector<1x32xf32>
    %58 = vector.broadcast %57 : vector<1x32xf32> to vector<24x32xf32>
    %59 = arith.addf %56, %58 : vector<24x32xf32>
    %cst_39 = arith.constant 0.000000e+00 : f32
    %60 = vector.broadcast %cst_39 : f32 to vector<24x32xf32>
    %61 = arith.cmpf ogt, %59, %60 : vector<24x32xf32>
    %cst_40 = arith.constant 0.00999999977 : f32
    %62 = vector.broadcast %cst_40 : f32 to vector<24x32xf32>
    %63 = arith.mulf %62, %59 : vector<24x32xf32>
    %64 = arith.select %61, %59, %63 : vector<24x32xi1>, vector<24x32xf32>
    %65 = vector.extract_strided_slice %45 {offsets = [0, 0], sizes = [32, 32], strides = [1, 1]} : vector<64x32xf32> to vector<32x32xf32>
    %cst_41 = arith.constant dense<0.000000e+00> : vector<24x32xf32>
    %66 = tpu.matmul %64, %65, %cst_41 {dimension_numbers = #tpu.dot_dimension_numbers<[1], [0], [0], [1], [0, 0, 1, 1], [], []>} : vector<24x32xf32>, vector<32x32xf32>, vector<24x32xf32> -> vector<24x32xf32>
    %67 = vector.extract_strided_slice %47 {offsets = [1, 0], sizes = [1, 32], strides = [1, 1]} : vector<4x32xf32> to vector<1x32xf32>
    %68 = vector.broadcast %67 : vector<1x32xf32> to vector<24x32xf32>
    %69 = arith.addf %66, %68 : vector<24x32xf32>
    %cst_42 = arith.constant dense<0.000000e+00> : vector<12x32xf32>
    %70 = tpu.matmul %3, %69, %cst_42 {dimension_numbers = #tpu.dot_dimension_numbers<[0], [0], [1], [1], [0, 1, 1, 1], [], []>} : vector<24x12xf32>, vector<24x32xf32>, vector<12x32xf32> -> vector<12x32xf32>
    %71 = vector.extract_strided_slice %43 {offsets = [64, 0], sizes = [32, 32], strides = [1, 1]} : vector<128x32xf32> to vector<32x32xf32>
    %cst_43 = arith.constant dense<0.000000e+00> : vector<12x32xf32>
    %72 = tpu.matmul %39, %71, %cst_43 {dimension_numbers = #tpu.dot_dimension_numbers<[1], [0], [0], [1], [0, 0, 1, 1], [], []>} : vector<12x32xf32>, vector<32x32xf32>, vector<12x32xf32> -> vector<12x32xf32>
    %73 = vector.extract_strided_slice %43 {offsets = [96, 0], sizes = [32, 32], strides = [1, 1]} : vector<128x32xf32> to vector<32x32xf32>
    %cst_44 = arith.constant dense<0.000000e+00> : vector<12x32xf32>
    %74 = tpu.matmul %70, %73, %cst_44 {dimension_numbers = #tpu.dot_dimension_numbers<[1], [0], [0], [1], [0, 0, 1, 1], [], []>} : vector<12x32xf32>, vector<32x32xf32>, vector<12x32xf32> -> vector<12x32xf32>
    %75 = arith.addf %72, %74 : vector<12x32xf32>
    %76 = vector.extract_strided_slice %47 {offsets = [2, 0], sizes = [1, 32], strides = [1, 1]} : vector<4x32xf32> to vector<1x32xf32>
    %77 = vector.broadcast %76 : vector<1x32xf32> to vector<12x32xf32>
    %78 = arith.addf %75, %77 : vector<12x32xf32>
    %cst_45 = arith.constant 0.000000e+00 : f32
    %79 = vector.broadcast %cst_45 : f32 to vector<12x32xf32>
    %80 = arith.cmpf ogt, %78, %79 : vector<12x32xf32>
    %cst_46 = arith.constant 0.00999999977 : f32
    %81 = vector.broadcast %cst_46 : f32 to vector<12x32xf32>
    %82 = arith.mulf %81, %78 : vector<12x32xf32>
    %83 = arith.select %80, %78, %82 : vector<12x32xi1>, vector<12x32xf32>
    %84 = vector.extract_strided_slice %45 {offsets = [32, 0], sizes = [32, 32], strides = [1, 1]} : vector<64x32xf32> to vector<32x32xf32>
    %cst_47 = arith.constant dense<0.000000e+00> : vector<12x32xf32>
    %85 = tpu.matmul %83, %84, %cst_47 {dimension_numbers = #tpu.dot_dimension_numbers<[1], [0], [0], [1], [0, 0, 1, 1], [], []>} : vector<12x32xf32>, vector<32x32xf32>, vector<12x32xf32> -> vector<12x32xf32>
    %86 = vector.extract_strided_slice %47 {offsets = [3, 0], sizes = [1, 32], strides = [1, 1]} : vector<4x32xf32> to vector<1x32xf32>
    %87 = vector.broadcast %86 : vector<1x32xf32> to vector<12x32xf32>
    %88 = arith.addf %85, %87 : vector<12x32xf32>
    %cst_48 = arith.constant 0.000000e+00 : f32
    %89 = vector.broadcast %cst_48 : f32 to vector<12x32xf32>
    %90 = arith.cmpf ogt, %88, %89 : vector<12x32xf32>
    %cst_49 = arith.constant 0.00999999977 : f32
    %91 = vector.broadcast %cst_49 : f32 to vector<12x32xf32>
    %92 = arith.mulf %91, %88 : vector<12x32xf32>
    %93 = arith.select %90, %88, %92 : vector<12x32xi1>, vector<12x32xf32>
    %c1 = arith.constant 1 : index
    %c0_50 = arith.constant 0 : index
    %c0_51 = arith.constant 0 : index
    %94 = vector.load %arg10[%c1, %c0_50, %c0_51] : memref<3x128x32xf32, #tpu.memory_space<vmem>>, vector<1x128x32xf32>
    %95 = vector.shape_cast %94 : vector<1x128x32xf32> to vector<128x32xf32>
    %c1_52 = arith.constant 1 : index
    %c0_53 = arith.constant 0 : index
    %c0_54 = arith.constant 0 : index
    %96 = vector.load %arg11[%c1_52, %c0_53, %c0_54] : memref<3x64x32xf32, #tpu.memory_space<vmem>>, vector<1x64x32xf32>
    %97 = vector.shape_cast %96 : vector<1x64x32xf32> to vector<64x32xf32>
    %c1_55 = arith.constant 1 : index
    %c0_56 = arith.constant 0 : index
    %c0_57 = arith.constant 0 : index
    %98 = vector.load %arg12[%c1_55, %c0_56, %c0_57] : memref<3x4x32xf32, #tpu.memory_space<vmem>>, vector<1x4x32xf32>
    %99 = vector.shape_cast %98 : vector<1x4x32xf32> to vector<4x32xf32>
    %100 = vector.extract_strided_slice %95 {offsets = [0, 0], sizes = [32, 32], strides = [1, 1]} : vector<128x32xf32> to vector<32x32xf32>
    %cst_58 = arith.constant dense<0.000000e+00> : vector<12x32xf32>
    %101 = tpu.matmul %93, %100, %cst_58 {dimension_numbers = #tpu.dot_dimension_numbers<[1], [0], [0], [1], [0, 0, 1, 1], [], []>} : vector<12x32xf32>, vector<32x32xf32>, vector<12x32xf32> -> vector<12x32xf32>
    %102 = vector.extract_strided_slice %95 {offsets = [32, 0], sizes = [32, 32], strides = [1, 1]} : vector<128x32xf32> to vector<32x32xf32>
    %cst_59 = arith.constant dense<0.000000e+00> : vector<12x32xf32>
    %103 = tpu.matmul %93, %102, %cst_59 {dimension_numbers = #tpu.dot_dimension_numbers<[1], [0], [0], [1], [0, 0, 1, 1], [], []>} : vector<12x32xf32>, vector<32x32xf32>, vector<12x32xf32> -> vector<12x32xf32>
    %cst_60 = arith.constant dense<0.000000e+00> : vector<24x32xf32>
    %104 = tpu.matmul %2, %101, %cst_60 {dimension_numbers = #tpu.dot_dimension_numbers<[1], [0], [0], [1], [0, 0, 1, 1], [], []>} : vector<24x12xf32>, vector<12x32xf32>, vector<24x32xf32> -> vector<24x32xf32>
    %cst_61 = arith.constant dense<0.000000e+00> : vector<24x32xf32>
    %105 = tpu.matmul %3, %103, %cst_61 {dimension_numbers = #tpu.dot_dimension_numbers<[1], [0], [0], [1], [0, 0, 1, 1], [], []>} : vector<24x12xf32>, vector<12x32xf32>, vector<24x32xf32> -> vector<24x32xf32>
    %106 = arith.addf %104, %105 : vector<24x32xf32>
    %107 = vector.extract_strided_slice %41 {offsets = [0, 32], sizes = [24, 32], strides = [1, 1]} : vector<24x96xf32> to vector<24x32xf32>
    %108 = arith.addf %106, %107 : vector<24x32xf32>
    %109 = vector.extract_strided_slice %99 {offsets = [0, 0], sizes = [1, 32], strides = [1, 1]} : vector<4x32xf32> to vector<1x32xf32>
    %110 = vector.broadcast %109 : vector<1x32xf32> to vector<24x32xf32>
    %111 = arith.addf %108, %110 : vector<24x32xf32>
    %cst_62 = arith.constant 0.000000e+00 : f32
    %112 = vector.broadcast %cst_62 : f32 to vector<24x32xf32>
    %113 = arith.cmpf ogt, %111, %112 : vector<24x32xf32>
    %cst_63 = arith.constant 0.00999999977 : f32
    %114 = vector.broadcast %cst_63 : f32 to vector<24x32xf32>
    %115 = arith.mulf %114, %111 : vector<24x32xf32>
    %116 = arith.select %113, %111, %115 : vector<24x32xi1>, vector<24x32xf32>
    %117 = vector.extract_strided_slice %97 {offsets = [0, 0], sizes = [32, 32], strides = [1, 1]} : vector<64x32xf32> to vector<32x32xf32>
    %cst_64 = arith.constant dense<0.000000e+00> : vector<24x32xf32>
    %118 = tpu.matmul %116, %117, %cst_64 {dimension_numbers = #tpu.dot_dimension_numbers<[1], [0], [0], [1], [0, 0, 1, 1], [], []>} : vector<24x32xf32>, vector<32x32xf32>, vector<24x32xf32> -> vector<24x32xf32>
    %119 = vector.extract_strided_slice %99 {offsets = [1, 0], sizes = [1, 32], strides = [1, 1]} : vector<4x32xf32> to vector<1x32xf32>
    %120 = vector.broadcast %119 : vector<1x32xf32> to vector<24x32xf32>
    %121 = arith.addf %118, %120 : vector<24x32xf32>
    %cst_65 = arith.constant dense<0.000000e+00> : vector<12x32xf32>
    %122 = tpu.matmul %3, %121, %cst_65 {dimension_numbers = #tpu.dot_dimension_numbers<[0], [0], [1], [1], [0, 1, 1, 1], [], []>} : vector<24x12xf32>, vector<24x32xf32>, vector<12x32xf32> -> vector<12x32xf32>
    %123 = vector.extract_strided_slice %95 {offsets = [64, 0], sizes = [32, 32], strides = [1, 1]} : vector<128x32xf32> to vector<32x32xf32>
    %cst_66 = arith.constant dense<0.000000e+00> : vector<12x32xf32>
    %124 = tpu.matmul %93, %123, %cst_66 {dimension_numbers = #tpu.dot_dimension_numbers<[1], [0], [0], [1], [0, 0, 1, 1], [], []>} : vector<12x32xf32>, vector<32x32xf32>, vector<12x32xf32> -> vector<12x32xf32>
    %125 = vector.extract_strided_slice %95 {offsets = [96, 0], sizes = [32, 32], strides = [1, 1]} : vector<128x32xf32> to vector<32x32xf32>
    %cst_67 = arith.constant dense<0.000000e+00> : vector<12x32xf32>
    %126 = tpu.matmul %122, %125, %cst_67 {dimension_numbers = #tpu.dot_dimension_numbers<[1], [0], [0], [1], [0, 0, 1, 1], [], []>} : vector<12x32xf32>, vector<32x32xf32>, vector<12x32xf32> -> vector<12x32xf32>
    %127 = arith.addf %124, %126 : vector<12x32xf32>
    %128 = vector.extract_strided_slice %99 {offsets = [2, 0], sizes = [1, 32], strides = [1, 1]} : vector<4x32xf32> to vector<1x32xf32>
    %129 = vector.broadcast %128 : vector<1x32xf32> to vector<12x32xf32>
    %130 = arith.addf %127, %129 : vector<12x32xf32>
    %cst_68 = arith.constant 0.000000e+00 : f32
    %131 = vector.broadcast %cst_68 : f32 to vector<12x32xf32>
    %132 = arith.cmpf ogt, %130, %131 : vector<12x32xf32>
    %cst_69 = arith.constant 0.00999999977 : f32
    %133 = vector.broadcast %cst_69 : f32 to vector<12x32xf32>
    %134 = arith.mulf %133, %130 : vector<12x32xf32>
    %135 = arith.select %132, %130, %134 : vector<12x32xi1>, vector<12x32xf32>
    %136 = vector.extract_strided_slice %97 {offsets = [32, 0], sizes = [32, 32], strides = [1, 1]} : vector<64x32xf32> to vector<32x32xf32>
    %cst_70 = arith.constant dense<0.000000e+00> : vector<12x32xf32>
    %137 = tpu.matmul %135, %136, %cst_70 {dimension_numbers = #tpu.dot_dimension_numbers<[1], [0], [0], [1], [0, 0, 1, 1], [], []>} : vector<12x32xf32>, vector<32x32xf32>, vector<12x32xf32> -> vector<12x32xf32>
    %138 = vector.extract_strided_slice %99 {offsets = [3, 0], sizes = [1, 32], strides = [1, 1]} : vector<4x32xf32> to vector<1x32xf32>
    %139 = vector.broadcast %138 : vector<1x32xf32> to vector<12x32xf32>
    %140 = arith.addf %137, %139 : vector<12x32xf32>
    %cst_71 = arith.constant 0.000000e+00 : f32
    %141 = vector.broadcast %cst_71 : f32 to vector<12x32xf32>
    %142 = arith.cmpf ogt, %140, %141 : vector<12x32xf32>
    %cst_72 = arith.constant 0.00999999977 : f32
    %143 = vector.broadcast %cst_72 : f32 to vector<12x32xf32>
    %144 = arith.mulf %143, %140 : vector<12x32xf32>
    %145 = arith.select %142, %140, %144 : vector<12x32xi1>, vector<12x32xf32>
    %c2 = arith.constant 2 : index
    %c0_73 = arith.constant 0 : index
    %c0_74 = arith.constant 0 : index
    %146 = vector.load %arg10[%c2, %c0_73, %c0_74] : memref<3x128x32xf32, #tpu.memory_space<vmem>>, vector<1x128x32xf32>
    %147 = vector.shape_cast %146 : vector<1x128x32xf32> to vector<128x32xf32>
    %c2_75 = arith.constant 2 : index
    %c0_76 = arith.constant 0 : index
    %c0_77 = arith.constant 0 : index
    %148 = vector.load %arg11[%c2_75, %c0_76, %c0_77] : memref<3x64x32xf32, #tpu.memory_space<vmem>>, vector<1x64x32xf32>
    %149 = vector.shape_cast %148 : vector<1x64x32xf32> to vector<64x32xf32>
    %c2_78 = arith.constant 2 : index
    %c0_79 = arith.constant 0 : index
    %c0_80 = arith.constant 0 : index
    %150 = vector.load %arg12[%c2_78, %c0_79, %c0_80] : memref<3x4x32xf32, #tpu.memory_space<vmem>>, vector<1x4x32xf32>
    %151 = vector.shape_cast %150 : vector<1x4x32xf32> to vector<4x32xf32>
    %152 = vector.extract_strided_slice %147 {offsets = [0, 0], sizes = [32, 32], strides = [1, 1]} : vector<128x32xf32> to vector<32x32xf32>
    %cst_81 = arith.constant dense<0.000000e+00> : vector<12x32xf32>
    %153 = tpu.matmul %145, %152, %cst_81 {dimension_numbers = #tpu.dot_dimension_numbers<[1], [0], [0], [1], [0, 0, 1, 1], [], []>} : vector<12x32xf32>, vector<32x32xf32>, vector<12x32xf32> -> vector<12x32xf32>
    %154 = vector.extract_strided_slice %147 {offsets = [32, 0], sizes = [32, 32], strides = [1, 1]} : vector<128x32xf32> to vector<32x32xf32>
    %cst_82 = arith.constant dense<0.000000e+00> : vector<12x32xf32>
    %155 = tpu.matmul %145, %154, %cst_82 {dimension_numbers = #tpu.dot_dimension_numbers<[1], [0], [0], [1], [0, 0, 1, 1], [], []>} : vector<12x32xf32>, vector<32x32xf32>, vector<12x32xf32> -> vector<12x32xf32>
    %cst_83 = arith.constant dense<0.000000e+00> : vector<24x32xf32>
    %156 = tpu.matmul %2, %153, %cst_83 {dimension_numbers = #tpu.dot_dimension_numbers<[1], [0], [0], [1], [0, 0, 1, 1], [], []>} : vector<24x12xf32>, vector<12x32xf32>, vector<24x32xf32> -> vector<24x32xf32>
    %cst_84 = arith.constant dense<0.000000e+00> : vector<24x32xf32>
    %157 = tpu.matmul %3, %155, %cst_84 {dimension_numbers = #tpu.dot_dimension_numbers<[1], [0], [0], [1], [0, 0, 1, 1], [], []>} : vector<24x12xf32>, vector<12x32xf32>, vector<24x32xf32> -> vector<24x32xf32>
    %158 = arith.addf %156, %157 : vector<24x32xf32>
    %159 = vector.extract_strided_slice %41 {offsets = [0, 64], sizes = [24, 32], strides = [1, 1]} : vector<24x96xf32> to vector<24x32xf32>
    %160 = arith.addf %158, %159 : vector<24x32xf32>
    %161 = vector.extract_strided_slice %151 {offsets = [0, 0], sizes = [1, 32], strides = [1, 1]} : vector<4x32xf32> to vector<1x32xf32>
    %162 = vector.broadcast %161 : vector<1x32xf32> to vector<24x32xf32>
    %163 = arith.addf %160, %162 : vector<24x32xf32>
    %cst_85 = arith.constant 0.000000e+00 : f32
    %164 = vector.broadcast %cst_85 : f32 to vector<24x32xf32>
    %165 = arith.cmpf ogt, %163, %164 : vector<24x32xf32>
    %cst_86 = arith.constant 0.00999999977 : f32
    %166 = vector.broadcast %cst_86 : f32 to vector<24x32xf32>
    %167 = arith.mulf %166, %163 : vector<24x32xf32>
    %168 = arith.select %165, %163, %167 : vector<24x32xi1>, vector<24x32xf32>
    %169 = vector.extract_strided_slice %149 {offsets = [0, 0], sizes = [32, 32], strides = [1, 1]} : vector<64x32xf32> to vector<32x32xf32>
    %cst_87 = arith.constant dense<0.000000e+00> : vector<24x32xf32>
    %170 = tpu.matmul %168, %169, %cst_87 {dimension_numbers = #tpu.dot_dimension_numbers<[1], [0], [0], [1], [0, 0, 1, 1], [], []>} : vector<24x32xf32>, vector<32x32xf32>, vector<24x32xf32> -> vector<24x32xf32>
    %171 = vector.extract_strided_slice %151 {offsets = [1, 0], sizes = [1, 32], strides = [1, 1]} : vector<4x32xf32> to vector<1x32xf32>
    %172 = vector.broadcast %171 : vector<1x32xf32> to vector<24x32xf32>
    %173 = arith.addf %170, %172 : vector<24x32xf32>
    %cst_88 = arith.constant dense<0.000000e+00> : vector<12x32xf32>
    %174 = tpu.matmul %3, %173, %cst_88 {dimension_numbers = #tpu.dot_dimension_numbers<[0], [0], [1], [1], [0, 1, 1, 1], [], []>} : vector<24x12xf32>, vector<24x32xf32>, vector<12x32xf32> -> vector<12x32xf32>
    %175 = vector.extract_strided_slice %147 {offsets = [64, 0], sizes = [32, 32], strides = [1, 1]} : vector<128x32xf32> to vector<32x32xf32>
    %cst_89 = arith.constant dense<0.000000e+00> : vector<12x32xf32>
    %176 = tpu.matmul %145, %175, %cst_89 {dimension_numbers = #tpu.dot_dimension_numbers<[1], [0], [0], [1], [0, 0, 1, 1], [], []>} : vector<12x32xf32>, vector<32x32xf32>, vector<12x32xf32> -> vector<12x32xf32>
    %177 = vector.extract_strided_slice %147 {offsets = [96, 0], sizes = [32, 32], strides = [1, 1]} : vector<128x32xf32> to vector<32x32xf32>
    %cst_90 = arith.constant dense<0.000000e+00> : vector<12x32xf32>
    %178 = tpu.matmul %174, %177, %cst_90 {dimension_numbers = #tpu.dot_dimension_numbers<[1], [0], [0], [1], [0, 0, 1, 1], [], []>} : vector<12x32xf32>, vector<32x32xf32>, vector<12x32xf32> -> vector<12x32xf32>
    %179 = arith.addf %176, %178 : vector<12x32xf32>
    %180 = vector.extract_strided_slice %151 {offsets = [2, 0], sizes = [1, 32], strides = [1, 1]} : vector<4x32xf32> to vector<1x32xf32>
    %181 = vector.broadcast %180 : vector<1x32xf32> to vector<12x32xf32>
    %182 = arith.addf %179, %181 : vector<12x32xf32>
    %cst_91 = arith.constant 0.000000e+00 : f32
    %183 = vector.broadcast %cst_91 : f32 to vector<12x32xf32>
    %184 = arith.cmpf ogt, %182, %183 : vector<12x32xf32>
    %cst_92 = arith.constant 0.00999999977 : f32
    %185 = vector.broadcast %cst_92 : f32 to vector<12x32xf32>
    %186 = arith.mulf %185, %182 : vector<12x32xf32>
    %187 = arith.select %184, %182, %186 : vector<12x32xi1>, vector<12x32xf32>
    %188 = vector.extract_strided_slice %149 {offsets = [32, 0], sizes = [32, 32], strides = [1, 1]} : vector<64x32xf32> to vector<32x32xf32>
    %cst_93 = arith.constant dense<0.000000e+00> : vector<12x32xf32>
    %189 = tpu.matmul %187, %188, %cst_93 {dimension_numbers = #tpu.dot_dimension_numbers<[1], [0], [0], [1], [0, 0, 1, 1], [], []>} : vector<12x32xf32>, vector<32x32xf32>, vector<12x32xf32> -> vector<12x32xf32>
    %190 = vector.extract_strided_slice %151 {offsets = [3, 0], sizes = [1, 32], strides = [1, 1]} : vector<4x32xf32> to vector<1x32xf32>
    %191 = vector.broadcast %190 : vector<1x32xf32> to vector<12x32xf32>
    %192 = arith.addf %189, %191 : vector<12x32xf32>
    %cst_94 = arith.constant 0.000000e+00 : f32
    %193 = vector.broadcast %cst_94 : f32 to vector<12x32xf32>
    %194 = arith.cmpf ogt, %192, %193 : vector<12x32xf32>
    %cst_95 = arith.constant 0.00999999977 : f32
    %195 = vector.broadcast %cst_95 : f32 to vector<12x32xf32>
    %196 = arith.mulf %195, %192 : vector<12x32xf32>
    %197 = arith.select %194, %192, %196 : vector<12x32xi1>, vector<12x32xf32>
    %cst_96 = arith.constant dense<0.000000e+00> : vector<12x32xf32>
    %198 = tpu.matmul %197, %18, %cst_96 {dimension_numbers = #tpu.dot_dimension_numbers<[1], [0], [0], [1], [0, 0, 1, 1], [], []>} : vector<12x32xf32>, vector<32x32xf32>, vector<12x32xf32> -> vector<12x32xf32>
    %199 = vector.broadcast %24 : vector<1x32xf32> to vector<12x32xf32>
    %200 = arith.addf %198, %199 : vector<12x32xf32>
    %cst_97 = arith.constant 0.000000e+00 : f32
    %201 = vector.broadcast %cst_97 : f32 to vector<12x32xf32>
    %202 = arith.cmpf ogt, %200, %201 : vector<12x32xf32>
    %cst_98 = arith.constant 0.00999999977 : f32
    %203 = vector.broadcast %cst_98 : f32 to vector<12x32xf32>
    %204 = arith.mulf %203, %200 : vector<12x32xf32>
    %205 = arith.select %202, %200, %204 : vector<12x32xi1>, vector<12x32xf32>
    %cst_99 = arith.constant dense<0.000000e+00> : vector<12x6xf32>
    %206 = tpu.matmul %205, %20, %cst_99 {dimension_numbers = #tpu.dot_dimension_numbers<[1], [0], [0], [1], [0, 0, 1, 1], [], []>} : vector<12x32xf32>, vector<32x6xf32>, vector<12x6xf32> -> vector<12x6xf32>
    %207 = vector.broadcast %26 : vector<1x6xf32> to vector<12x6xf32>
    %208 = arith.addf %206, %207 : vector<12x6xf32>
    %209 = tpu.iota {dimensions = array<i32: 1>} : vector<1x6xi32>
    %c2_i32 = arith.constant 2 : i32
    %210 = vector.broadcast %c2_i32 : i32 to vector<1x6xi32>
    %211 = arith.cmpi eq, %209, %210 : vector<1x6xi32>
    %212 = arith.extui %211 : vector<1x6xi1> to vector<1x6xi32>
    %213 = arith.sitofp %212 : vector<1x6xi32> to vector<1x6xf32>
    %c3_i32 = arith.constant 3 : i32
    %214 = vector.broadcast %c3_i32 : i32 to vector<1x6xi32>
    %215 = arith.cmpi eq, %209, %214 : vector<1x6xi32>
    %216 = arith.extui %215 : vector<1x6xi1> to vector<1x6xi32>
    %217 = arith.sitofp %216 : vector<1x6xi32> to vector<1x6xf32>
    %c4_i32 = arith.constant 4 : i32
    %218 = vector.broadcast %c4_i32 : i32 to vector<1x6xi32>
    %219 = arith.cmpi eq, %209, %218 : vector<1x6xi32>
    %220 = arith.extui %219 : vector<1x6xi1> to vector<1x6xi32>
    %221 = arith.sitofp %220 : vector<1x6xi32> to vector<1x6xf32>
    %c5_i32 = arith.constant 5 : i32
    %222 = vector.broadcast %c5_i32 : i32 to vector<1x6xi32>
    %223 = arith.cmpi eq, %209, %222 : vector<1x6xi32>
    %224 = arith.extui %223 : vector<1x6xi1> to vector<1x6xi32>
    %225 = arith.sitofp %224 : vector<1x6xi32> to vector<1x6xf32>
    %cst_100 = arith.constant dense<0.000000e+00> : vector<12x16xf32>
    %226 = tpu.matmul %197, %19, %cst_100 {dimension_numbers = #tpu.dot_dimension_numbers<[1], [0], [0], [1], [0, 0, 1, 1], [], []>} : vector<12x32xf32>, vector<32x16xf32>, vector<12x16xf32> -> vector<12x16xf32>
    %227 = vector.broadcast %25 : vector<1x16xf32> to vector<12x16xf32>
    %228 = arith.addf %226, %227 : vector<12x16xf32>
    %cst_101 = arith.constant 0.000000e+00 : f32
    %229 = vector.broadcast %cst_101 : f32 to vector<12x16xf32>
    %230 = arith.cmpf ogt, %228, %229 : vector<12x16xf32>
    %cst_102 = arith.constant 0.00999999977 : f32
    %231 = vector.broadcast %cst_102 : f32 to vector<12x16xf32>
    %232 = arith.mulf %231, %228 : vector<12x16xf32>
    %233 = arith.select %230, %228, %232 : vector<12x16xi1>, vector<12x16xf32>
    %cst_103 = arith.constant dense<0.000000e+00> : vector<12x6xf32>
    %234 = tpu.matmul %233, %21, %cst_103 {dimension_numbers = #tpu.dot_dimension_numbers<[1], [0], [0], [1], [0, 0, 1, 1], [], []>} : vector<12x16xf32>, vector<16x6xf32>, vector<12x6xf32> -> vector<12x6xf32>
    %235 = vector.broadcast %27 : vector<1x6xf32> to vector<12x6xf32>
    %236 = arith.addf %234, %235 : vector<12x6xf32>
    %237 = arith.ori %9, %12 : vector<12x1xi1>
    %238 = arith.extui %237 : vector<12x1xi1> to vector<12x1xi32>
    %239 = arith.sitofp %238 : vector<12x1xi32> to vector<12x1xf32>
    %240 = vector.broadcast %239 : vector<12x1xf32> to vector<12x6xf32>
    %241 = vector.broadcast %221 : vector<1x6xf32> to vector<12x6xf32>
    %242 = arith.mulf %240, %241 : vector<12x6xf32>
    %243 = arith.extui %12 : vector<12x1xi1> to vector<12x1xi32>
    %244 = arith.sitofp %243 : vector<12x1xi32> to vector<12x1xf32>
    %245 = vector.broadcast %244 : vector<12x1xf32> to vector<12x6xf32>
    %246 = vector.broadcast %225 : vector<1x6xf32> to vector<12x6xf32>
    %247 = arith.mulf %245, %246 : vector<12x6xf32>
    %248 = arith.addf %242, %247 : vector<12x6xf32>
    %cst_104 = arith.constant 0.000000e+00 : f32
    %249 = vector.broadcast %cst_104 : f32 to vector<12x6xf32>
    %250 = arith.cmpf ogt, %248, %249 : vector<12x6xf32>
    %cst_105 = arith.constant 0.000000e+00 : f32
    %251 = vector.broadcast %cst_105 : f32 to vector<12x6xf32>
    %252 = arith.select %250, %251, %236 : vector<12x6xi1>, vector<12x6xf32>
    %253 = arith.subf %208, %252 : vector<12x6xf32>
    %254 = arith.subf %253, %252 : vector<12x6xf32>
    %255 = arith.subf %254, %252 : vector<12x6xf32>
    %256 = vector.extract_strided_slice %255 {offsets = [0, 4], sizes = [12, 2], strides = [1, 1]} : vector<12x6xf32> to vector<12x2xf32>
    %cst_106 = arith.constant dense<0.000000e+00> : vector<24x2xf32>
    %257 = tpu.matmul %2, %256, %cst_106 {dimension_numbers = #tpu.dot_dimension_numbers<[1], [0], [0], [1], [0, 0, 1, 1], [], []>} : vector<24x12xf32>, vector<12x2xf32>, vector<24x2xf32> -> vector<24x2xf32>
    %cst_107 = arith.constant dense<0.000000e+00> : vector<24x2xf32>
    %258 = tpu.matmul %3, %256, %cst_107 {dimension_numbers = #tpu.dot_dimension_numbers<[1], [0], [0], [1], [0, 0, 1, 1], [], []>} : vector<24x12xf32>, vector<12x2xf32>, vector<24x2xf32> -> vector<24x2xf32>
    %259 = vector.extract_strided_slice %257 {offsets = [0, 1], sizes = [24, 1], strides = [1, 1]} : vector<24x2xf32> to vector<24x1xf32>
    %260 = vector.extract_strided_slice %258 {offsets = [0, 1], sizes = [24, 1], strides = [1, 1]} : vector<24x2xf32> to vector<24x1xf32>
    %261 = arith.subf %259, %260 : vector<24x1xf32>
    %262 = vector.extract_strided_slice %257 {offsets = [0, 0], sizes = [24, 1], strides = [1, 1]} : vector<24x2xf32> to vector<24x1xf32>
    %263 = vector.extract_strided_slice %258 {offsets = [0, 0], sizes = [24, 1], strides = [1, 1]} : vector<24x2xf32> to vector<24x1xf32>
    %264 = arith.mulf %262, %263 : vector<24x1xf32>
    %265 = vector.extract_strided_slice %1 {offsets = [0, 0], sizes = [24, 1], strides = [1, 1]} : vector<24x4xf32> to vector<24x1xf32>
    %266 = vector.extract_strided_slice %1 {offsets = [0, 1], sizes = [24, 1], strides = [1, 1]} : vector<24x4xf32> to vector<24x1xf32>
    %267 = math.cos %261 : vector<24x1xf32>
    %268 = math.sin %261 : vector<24x1xf32>
    %269 = tpu.iota {dimensions = array<i32: 1>} : vector<1x2xi32>
    %c0_i32 = arith.constant 0 : i32
    %270 = vector.broadcast %c0_i32 : i32 to vector<1x2xi32>
    %271 = arith.cmpi eq, %269, %270 : vector<1x2xi32>
    %272 = arith.extui %271 : vector<1x2xi1> to vector<1x2xi32>
    %273 = arith.sitofp %272 : vector<1x2xi32> to vector<1x2xf32>
    %c1_i32 = arith.constant 1 : i32
    %274 = vector.broadcast %c1_i32 : i32 to vector<1x2xi32>
    %275 = arith.cmpi eq, %269, %274 : vector<1x2xi32>
    %276 = arith.extui %275 : vector<1x2xi1> to vector<1x2xi32>
    %277 = arith.sitofp %276 : vector<1x2xi32> to vector<1x2xf32>
    %278 = arith.mulf %265, %267 : vector<24x1xf32>
    %279 = arith.mulf %266, %268 : vector<24x1xf32>
    %280 = arith.addf %278, %279 : vector<24x1xf32>
    %281 = arith.mulf %264, %280 : vector<24x1xf32>
    %282 = vector.broadcast %281 : vector<24x1xf32> to vector<24x2xf32>
    %283 = vector.broadcast %273 : vector<1x2xf32> to vector<24x2xf32>
    %284 = arith.mulf %282, %283 : vector<24x2xf32>
    %285 = arith.mulf %265, %268 : vector<24x1xf32>
    %286 = arith.mulf %266, %267 : vector<24x1xf32>
    %287 = arith.subf %285, %286 : vector<24x1xf32>
    %288 = arith.mulf %264, %287 : vector<24x1xf32>
    %289 = vector.broadcast %288 : vector<24x1xf32> to vector<24x2xf32>
    %290 = vector.broadcast %277 : vector<1x2xf32> to vector<24x2xf32>
    %291 = arith.mulf %289, %290 : vector<24x2xf32>
    %292 = arith.addf %284, %291 : vector<24x2xf32>
    %cst_108 = arith.constant dense<0.000000e+00> : vector<12x2xf32>
    %293 = tpu.matmul %2, %292, %cst_108 {dimension_numbers = #tpu.dot_dimension_numbers<[0], [0], [1], [1], [0, 1, 1, 1], [], []>} : vector<24x12xf32>, vector<24x2xf32>, vector<12x2xf32> -> vector<12x2xf32>
    %294 = vector.extract_strided_slice %255 {offsets = [0, 2], sizes = [12, 1], strides = [1, 1]} : vector<12x6xf32> to vector<12x1xf32>
    %295 = vector.extract_strided_slice %255 {offsets = [0, 0], sizes = [12, 1], strides = [1, 1]} : vector<12x6xf32> to vector<12x1xf32>
    %296 = arith.subf %294, %295 : vector<12x1xf32>
    %297 = vector.extract_strided_slice %293 {offsets = [0, 0], sizes = [12, 1], strides = [1, 1]} : vector<12x2xf32> to vector<12x1xf32>
    %298 = arith.subf %296, %297 : vector<12x1xf32>
    %299 = vector.extract_strided_slice %255 {offsets = [0, 3], sizes = [12, 1], strides = [1, 1]} : vector<12x6xf32> to vector<12x1xf32>
    %300 = vector.extract_strided_slice %255 {offsets = [0, 1], sizes = [12, 1], strides = [1, 1]} : vector<12x6xf32> to vector<12x1xf32>
    %301 = arith.subf %299, %300 : vector<12x1xf32>
    %302 = vector.extract_strided_slice %293 {offsets = [0, 1], sizes = [12, 1], strides = [1, 1]} : vector<12x2xf32> to vector<12x1xf32>
    %303 = arith.subf %301, %302 : vector<12x1xf32>
    %cst_109 = arith.constant 5.000000e-02 : f32
    %304 = vector.broadcast %cst_109 : f32 to vector<12x1xf32>
    %305 = arith.mulf %303, %304 : vector<12x1xf32>
    %cst_110 = arith.constant 0.000000e+00 : f32
    %306 = vector.broadcast %cst_110 : f32 to vector<12x1xf32>
    %307 = arith.select %6, %305, %306 : vector<12x1xi1>, vector<12x1xf32>
    %308 = vector.broadcast %221 : vector<1x6xf32> to vector<12x6xf32>
    %309 = vector.broadcast %307 : vector<12x1xf32> to vector<12x6xf32>
    %310 = arith.mulf %308, %309 : vector<12x6xf32>
    %311 = arith.addf %255, %310 : vector<12x6xf32>
    %cst_111 = arith.constant 5.000000e-02 : f32
    %312 = vector.broadcast %cst_111 : f32 to vector<12x1xf32>
    %313 = arith.mulf %303, %312 : vector<12x1xf32>
    %cst_112 = arith.constant 0.000000e+00 : f32
    %314 = vector.broadcast %cst_112 : f32 to vector<12x1xf32>
    %315 = arith.select %9, %313, %314 : vector<12x1xi1>, vector<12x1xf32>
    %316 = vector.broadcast %217 : vector<1x6xf32> to vector<12x6xf32>
    %317 = vector.broadcast %315 : vector<12x1xf32> to vector<12x6xf32>
    %318 = arith.mulf %316, %317 : vector<12x6xf32>
    %319 = arith.addf %311, %318 : vector<12x6xf32>
    %cst_113 = arith.constant 5.000000e-02 : f32
    %320 = vector.broadcast %cst_113 : f32 to vector<12x1xf32>
    %321 = arith.mulf %298, %320 : vector<12x1xf32>
    %322 = vector.broadcast %213 : vector<1x6xf32> to vector<12x6xf32>
    %323 = vector.broadcast %321 : vector<12x1xf32> to vector<12x6xf32>
    %324 = arith.mulf %322, %323 : vector<12x6xf32>
    %325 = arith.addf %319, %324 : vector<12x6xf32>
    %326 = vector.extract_strided_slice %325 {offsets = [0, 4], sizes = [12, 2], strides = [1, 1]} : vector<12x6xf32> to vector<12x2xf32>
    %cst_114 = arith.constant dense<0.000000e+00> : vector<24x2xf32>
    %327 = tpu.matmul %2, %326, %cst_114 {dimension_numbers = #tpu.dot_dimension_numbers<[1], [0], [0], [1], [0, 0, 1, 1], [], []>} : vector<24x12xf32>, vector<12x2xf32>, vector<24x2xf32> -> vector<24x2xf32>
    %cst_115 = arith.constant dense<0.000000e+00> : vector<24x2xf32>
    %328 = tpu.matmul %3, %326, %cst_115 {dimension_numbers = #tpu.dot_dimension_numbers<[1], [0], [0], [1], [0, 0, 1, 1], [], []>} : vector<24x12xf32>, vector<12x2xf32>, vector<24x2xf32> -> vector<24x2xf32>
    %329 = vector.extract_strided_slice %327 {offsets = [0, 1], sizes = [24, 1], strides = [1, 1]} : vector<24x2xf32> to vector<24x1xf32>
    %330 = vector.extract_strided_slice %328 {offsets = [0, 1], sizes = [24, 1], strides = [1, 1]} : vector<24x2xf32> to vector<24x1xf32>
    %331 = arith.subf %329, %330 : vector<24x1xf32>
    %332 = vector.extract_strided_slice %327 {offsets = [0, 0], sizes = [24, 1], strides = [1, 1]} : vector<24x2xf32> to vector<24x1xf32>
    %333 = vector.extract_strided_slice %328 {offsets = [0, 0], sizes = [24, 1], strides = [1, 1]} : vector<24x2xf32> to vector<24x1xf32>
    %334 = arith.mulf %332, %333 : vector<24x1xf32>
    %335 = vector.extract_strided_slice %1 {offsets = [0, 0], sizes = [24, 1], strides = [1, 1]} : vector<24x4xf32> to vector<24x1xf32>
    %336 = vector.extract_strided_slice %1 {offsets = [0, 1], sizes = [24, 1], strides = [1, 1]} : vector<24x4xf32> to vector<24x1xf32>
    %337 = math.cos %331 : vector<24x1xf32>
    %338 = math.sin %331 : vector<24x1xf32>
    %339 = tpu.iota {dimensions = array<i32: 1>} : vector<1x2xi32>
    %c0_i32_116 = arith.constant 0 : i32
    %340 = vector.broadcast %c0_i32_116 : i32 to vector<1x2xi32>
    %341 = arith.cmpi eq, %339, %340 : vector<1x2xi32>
    %342 = arith.extui %341 : vector<1x2xi1> to vector<1x2xi32>
    %343 = arith.sitofp %342 : vector<1x2xi32> to vector<1x2xf32>
    %c1_i32_117 = arith.constant 1 : i32
    %344 = vector.broadcast %c1_i32_117 : i32 to vector<1x2xi32>
    %345 = arith.cmpi eq, %339, %344 : vector<1x2xi32>
    %346 = arith.extui %345 : vector<1x2xi1> to vector<1x2xi32>
    %347 = arith.sitofp %346 : vector<1x2xi32> to vector<1x2xf32>
    %348 = arith.mulf %335, %337 : vector<24x1xf32>
    %349 = arith.mulf %336, %338 : vector<24x1xf32>
    %350 = arith.addf %348, %349 : vector<24x1xf32>
    %351 = arith.mulf %334, %350 : vector<24x1xf32>
    %352 = vector.broadcast %351 : vector<24x1xf32> to vector<24x2xf32>
    %353 = vector.broadcast %343 : vector<1x2xf32> to vector<24x2xf32>
    %354 = arith.mulf %352, %353 : vector<24x2xf32>
    %355 = arith.mulf %335, %338 : vector<24x1xf32>
    %356 = arith.mulf %336, %337 : vector<24x1xf32>
    %357 = arith.subf %355, %356 : vector<24x1xf32>
    %358 = arith.mulf %334, %357 : vector<24x1xf32>
    %359 = vector.broadcast %358 : vector<24x1xf32> to vector<24x2xf32>
    %360 = vector.broadcast %347 : vector<1x2xf32> to vector<24x2xf32>
    %361 = arith.mulf %359, %360 : vector<24x2xf32>
    %362 = arith.addf %354, %361 : vector<24x2xf32>
    %cst_118 = arith.constant dense<0.000000e+00> : vector<12x2xf32>
    %363 = tpu.matmul %2, %362, %cst_118 {dimension_numbers = #tpu.dot_dimension_numbers<[0], [0], [1], [1], [0, 1, 1, 1], [], []>} : vector<24x12xf32>, vector<24x2xf32>, vector<12x2xf32> -> vector<12x2xf32>
    %364 = vector.extract_strided_slice %325 {offsets = [0, 2], sizes = [12, 1], strides = [1, 1]} : vector<12x6xf32> to vector<12x1xf32>
    %365 = vector.extract_strided_slice %325 {offsets = [0, 0], sizes = [12, 1], strides = [1, 1]} : vector<12x6xf32> to vector<12x1xf32>
    %366 = arith.subf %364, %365 : vector<12x1xf32>
    %367 = vector.extract_strided_slice %363 {offsets = [0, 0], sizes = [12, 1], strides = [1, 1]} : vector<12x2xf32> to vector<12x1xf32>
    %368 = arith.subf %366, %367 : vector<12x1xf32>
    %369 = vector.extract_strided_slice %325 {offsets = [0, 3], sizes = [12, 1], strides = [1, 1]} : vector<12x6xf32> to vector<12x1xf32>
    %370 = vector.extract_strided_slice %325 {offsets = [0, 1], sizes = [12, 1], strides = [1, 1]} : vector<12x6xf32> to vector<12x1xf32>
    %371 = arith.subf %369, %370 : vector<12x1xf32>
    %372 = vector.extract_strided_slice %363 {offsets = [0, 1], sizes = [12, 1], strides = [1, 1]} : vector<12x2xf32> to vector<12x1xf32>
    %373 = arith.subf %371, %372 : vector<12x1xf32>
    %cst_119 = arith.constant 2.000000e-02 : f32
    %374 = vector.broadcast %cst_119 : f32 to vector<12x1xf32>
    %375 = arith.mulf %373, %374 : vector<12x1xf32>
    %cst_120 = arith.constant 0.000000e+00 : f32
    %376 = vector.broadcast %cst_120 : f32 to vector<12x1xf32>
    %377 = arith.select %6, %375, %376 : vector<12x1xi1>, vector<12x1xf32>
    %378 = vector.broadcast %221 : vector<1x6xf32> to vector<12x6xf32>
    %379 = vector.broadcast %377 : vector<12x1xf32> to vector<12x6xf32>
    %380 = arith.mulf %378, %379 : vector<12x6xf32>
    %381 = arith.addf %325, %380 : vector<12x6xf32>
    %cst_121 = arith.constant 5.000000e-02 : f32
    %382 = vector.broadcast %cst_121 : f32 to vector<12x1xf32>
    %383 = arith.mulf %373, %382 : vector<12x1xf32>
    %cst_122 = arith.constant 0.000000e+00 : f32
    %384 = vector.broadcast %cst_122 : f32 to vector<12x1xf32>
    %385 = arith.select %9, %383, %384 : vector<12x1xi1>, vector<12x1xf32>
    %386 = vector.broadcast %217 : vector<1x6xf32> to vector<12x6xf32>
    %387 = vector.broadcast %385 : vector<12x1xf32> to vector<12x6xf32>
    %388 = arith.mulf %386, %387 : vector<12x6xf32>
    %389 = arith.addf %381, %388 : vector<12x6xf32>
    %cst_123 = arith.constant 5.000000e-02 : f32
    %390 = vector.broadcast %cst_123 : f32 to vector<12x1xf32>
    %391 = arith.mulf %368, %390 : vector<12x1xf32>
    %cst_124 = arith.constant 0.000000e+00 : f32
    %392 = vector.broadcast %cst_124 : f32 to vector<12x1xf32>
    %393 = arith.select %12, %391, %392 : vector<12x1xi1>, vector<12x1xf32>
    %394 = vector.broadcast %213 : vector<1x6xf32> to vector<12x6xf32>
    %395 = vector.broadcast %393 : vector<12x1xf32> to vector<12x6xf32>
    %396 = arith.mulf %394, %395 : vector<12x6xf32>
    %397 = arith.addf %389, %396 : vector<12x6xf32>
    %c0_125 = arith.constant 0 : index
    %c0_126 = arith.constant 0 : index
    %398 = vector.load %arg13[%c0_125, %c0_126] : memref<12x6xf32, #tpu.memory_space<vmem>>, vector<12x6xf32>
    tpu.vector_store %arg13[%c0_125, %c0_126], %397 {strides = array<i32>} : memref<12x6xf32, #tpu.memory_space<vmem>>, vector<12x6xf32>,
    return
  }
}

</mosaic_0001>

<bundles_post_ra>
// kernel: tpu_custom_call.1
= control target key start
LH: loop header
LB: loop body
LE: loop exit
PB: predicated region body
PF: predicated region fallthrough
CT: control target
= control target key end

     0   :  { %vm82_vm0 = vcmask 1040384   ;;  %vm75_vm1 = vcmask 72704   ;;  %vm6734_vm2 = vmmov 1   ;;  %vm264_vm4 = vcmask 1043456   ;;  %s6737_s14 = smov 96   ;;  %s6738_s18 = smov 64   ;;  %s8279_s4 = inlined_call_operand.vmem [shape: f32[9,32], index: 4, kind: input, shape index: {}]   ;;  %s8280_s0 = inlined_call_operand.vmem [shape: f32[12,9], index: 0, kind: input, shape index: {}]   ;;  %s8281_s5 = inlined_call_operand.vmem [shape: f32[32,80], index: 5, kind: input, shape index: {}]   ;;  %s8282_s9 = inlined_call_operand.vmem [shape: f32[4,96], index: 9, kind: input, shape index: {}]   ;;  %s8283_s1 = inlined_call_operand.vmem [shape: f32[24,4], index: 1, kind: input, shape index: {}]   ;;  %s8284_s10 = inlined_call_operand.vmem [shape: f32[3,128,32], index: 10, kind: input, shape index: {}]   ;;  %s8285_s7 = inlined_call_operand.vmem [shape: f32[4,32], index: 7, kind: input, shape index: {}]   ;;  %s8286_s3 = inlined_call_operand.vmem [shape: f32[24,12], index: 3, kind: input, shape index: {}]   ;;  %s8287_s2 = inlined_call_operand.vmem [shape: f32[24,12], index: 2, kind: input, shape index: {}]   ;;  %s8288_s11 = inlined_call_operand.vmem [shape: f32[3,64,32], index: 11, kind: input, shape index: {}]   ;;  %s8289_s12 = inlined_call_operand.vmem [shape: f32[3,4,32], index: 12, kind: input, shape index: {}]   ;;  %s8290_s6 = inlined_call_operand.vmem [shape: f32[48,6], index: 6, kind: input, shape index: {}]   ;;  %s8291_s8 = inlined_call_operand.vmem [shape: f32[2,6], index: 8, kind: input, shape index: {}]   ;;  %s8292_s13 = inlined_call_operand.vmem [shape: f32[12,6], index: 13, kind: output, shape index: {}]  }
   0x1   :  { %v69_v0 = vld [vmem:[%s8279_s4] sm:$0xff]  ;;  %v70_v1 = vld [vmem:[%s8279_s4 + $0x8] sm:$0x1]  ;;  %vm6336_vm3 = vmpackc.low %vm82_vm0, %vm6734_vm2  ;;  %vm254_vm5 = vcmask 31744   ;;  %v6735_v11 = vmov 0.0   ;;  %vm6736_vm6 = vmmov 0   ;;  %v71_v22 = vlaneseq }
   0x2   :  { %v6335_v2 = vpack.c.bf16 %v70_v1, %v69_v0  ;;  %v44_v3 = vld [vmem:[%s8280_s0] sm:$0xff]  ;;  %v45_v4 = vld [vmem:[%s8280_s0 + $0x8] sm:$0xf]  ;;  %v59_v8 = vld [vmem:[%s8281_s5 + $0x10] sm:$0xff]  ;;  %vm171_vm9 = vcmask 261120   ;;  %v6739_v56 = vmov 0.0|0.0  }
   0x3   :  { %5879 = vmatprep.mubr.msk.f32.mxu0 %vm75_vm1, %v44_v3  ;;  %v57_v5 = vld [vmem:[%s8281_s5] sm:$0xff]  ;;  %v58_v6 = vld [vmem:[%s8281_s5 + $0x8] sm:$0xff]  ;;  %v60_v9 = vld [vmem:[%s8281_s5 + $0x18] sm:$0xff]  ;;  %v6888_v23 = vshrl.u32 %v71_v22, 7  ;;  %vm529_vm11 = vcmask 97280   ;;  %vm858_vm15 = vcmask 195584  }
   0x4   :  { %6337 = vmatprep.subr.msk.bf16.mxu0 %vm6336_vm3, %v6335_v2  ;;  %v6341_v7 = vpack.c.bf16 %v58_v6, %v57_v5  ;;  %v6345_v10 = vpack.c.bf16 %v60_v9, %v59_v8  ;;  %v253_v12 = vld [vmem:[%s8282_s9] sm:$0xf]  ;;  %v349_v15 = vld [vmem:[%s8284_s10 + $0x8] sm:$0xff]  ;;  %v48_v21 = vld [vmem:[%s8283_s1 + $0x10] sm:$0xff]  ;;  %s6741_s28 = smov 127   ;;  %s6751_s4 = smov 2  }
   0x5   :  { %6340 = vmatpush3.bf16.msk.msra.mxu0 %vm6336_vm3, %v6335_v2  ;;  %v46_v13 = vld [vmem:[%s8283_s1] sm:$0xff]  ;;  %v353_v18 = vld [vmem:[%s8284_s10 + $0x28] sm:$0xff]  ;;  %v6891_v24 = vsub.s32 0, %v6888_v23  ;;  %v350_v35 = vld [vmem:[%s8284_s10 + $0x10] sm:$0xff]  ;;  %v6948_v50 = vsub.s32 1, %v6888_v23  ;;  %s6753_s19 = smov 3  }
   0x6   :  { %6342 = vmatprep.subr.bf16.mxu1 %v6341_v7  ;;  %5893 = vmatprep.subr.mxu0 %v6735_v11  ;;  %v348_v14 = vld [vmem:[%s8284_s10] sm:$0xff]  ;;  %v47_v19 = vld [vmem:[%s8283_s1 + $0x8] sm:$0xff]  ;;  %v351_v36 = vld [vmem:[%s8284_s10 + $0x18] sm:$0xff]  ;;  %s6754_s20 = smov 4  }
   0x7   :  { %6344 = vmatpush3.bf16.msra.mxu1 %v6341_v7  ;;  %v6349_v16 = vpack.c.bf16 %v349_v15, %v348_v14  ;;  %v352_v17 = vld [vmem:[%s8284_s10 + $0x20] sm:$0xff]  ;;  %v354_v37 = vld [vmem:[%s8284_s10 + $0x30] sm:$0xff]  ;;  %v6353_v38 = vpack.c.bf16 %v351_v36, %v350_v35  ;;  %v355_v39 = vld [vmem:[%s8284_s10 + $0x38] sm:$0xff] }
   0x8   :  { %5880 = vmatmul.mubr.msk.f32.vlgmr.msra.gmra.mrb[0].mxu0 %vm75_vm1, %v45_v4  ;;  %6346 = vmatprep.subr.bf16.mxu1 %v6345_v10  ;;  %v6357_v20 = vpack.c.bf16 %v353_v18, %v352_v17  ;;  %v67_v25 = vld [vmem:[%s8285_s7] sm:$0xf]  ;;  %v6361_v40 = vpack.c.bf16 %v355_v39, %v354_v37  ;;  %v6926_v45 = vld [vmem:[%s8286_s3 + $0x8] sm:$0xff]  ;;  %v6936_v48 = vld [vmem:[%s8286_s3 + $0x10] sm:$0xff] }
   0x9   :  { %5895 = vmatprep.mubr.msk.f32.mxu0 %vm6736_vm6, %v6735_v11  ;;  %5894 = vmatpush3.msk.msra.mxu0 %vm264_vm4, %v253_v12  ;;  %v74_v26 = vrot.slane %v67_v25, %v6891_v24  ;;  %v6916_v42 = vld [vmem:[%s8286_s3] sm:$0xff]  ;;  %v170_v51 = vrot.slane %v67_v25, %v6948_v50  ;;  %vm6971_vm10 = vmpackc.low %vm264_vm4, %vm6734_vm2  ;;  %v6996_v1 = vld [vmem:[%s8287_s2 + $0x8] sm:$0xff] }
   0xa   :  { %6358 = vmatprep.subr.bf16.mxu0 %v6357_v20  ;;  %826 = vxpose.xlu0.b32.start [1/3] (short) (narrow) %v6916_v42, 16  ;;  %v6982_v0 = vld [vmem:[%s8287_s2] sm:$0xff]  ;;  %v7009_v2 = vld [vmem:[%s8287_s2 + $0x10] sm:$0xff]  ;;  %v365_v4 = vld [vmem:[%s8288_s11 + $0x8] sm:$0xff] }
   0xb   :  { %6348 = vmatpush3.bf16.msra.mxu1 %v6345_v10  ;;  %v364_v3 = vld [vmem:[%s8288_s11] sm:$0xff]  ;;  %v366_v6 = vld [vmem:[%s8288_s11 + $0x10] sm:$0xff]  ;;  %v367_v7 = vld [vmem:[%s8288_s11 + $0x18] sm:$0xff] }
   0xc   :  { %5896 = vmatmul.mubr.msk.f32.vlgmr.msra.gmra.mrb[2].mxu0 %vm254_vm5, %v46_v13  ;;  %6350 = vmatprep.subr.bf16.mxu1 %v6349_v16  ;;  %v6374_v5 = vpack.c.bf16 %v365_v4, %v364_v3  ;;  %v6377_v8 = vpack.c.bf16 %v367_v7, %v366_v6  ;;  %v7033_v9 = vld [vmem:[%s8289_s12] sm:$0xf]  ;;  %v362_v3 = vld [vmem:[%s8284_s10 + $0x70] sm:$0xff]  ;;  %v363_v4 = vld [vmem:[%s8284_s10 + $0x78] sm:$0xff] }
   0xd   :  { %5898 = vmatprep.mubr.msk.f32.mxu0 %vm6736_vm6, %v6735_v11  ;;  %6360 = vmatpush3.bf16.msra.mxu0 %v6357_v20  ;;  %v720_v14 = vrot.slane %v7033_v9, %v6891_v24  ;;  %v6387_v6 = vpack.c.bf16 %v363_v4, %v362_v3  ;;  %v6727_v59 = vld [vmem:[%s8287_s2 + $0x8] sm:$0xff] }
   0xe   :  { %6362 = vmatprep.subr.bf16.mxu0 %v6361_v40  ;;  %827 = vxpose.xlu0.b32.cont [2/3] (short) (narrow) %v6926_v45, 16 }
  0x10   :  { %5899 = vmatmul.mubr.msk.f32.gmra.mrb[4].mxu0 %vm254_vm5, %v47_v19 }
  0x11   :  { %5901 = vmatprep.mubr.msk.f32.mxu0 %vm6736_vm6, %v6735_v11  ;;  %6364 = vmatpush3.bf16.msra.mxu0 %v6361_v40 }
  0x12   :  { %828 = vxpose.xlu0.b32.end [3/3] (short) (narrow) %v6936_v48, 16  ;;  %6369 = vmatprep.subr.bf16.mxu0 %v6739_v56 }
  0x14   :  { %5902 = vmatmul.mubr.msk.f32.gmra.mrb[6].mxu0 %vm254_vm5, %v48_v21 }
  0xdb   :  { %v5881_v27 = vpop.f32.mrb[0].mxu0 }
  0xdc   :  { %v158_v28 = vadd.f32 %v5881_v27, %v74_v26  ;;  %v152_v29 = vpop.f32.mrb[1].mxu0 }
  0xdd   :  { %v153_v30 = vadd.f32 %v152_v29, %v74_v26 }
  0xde   :  { %v164_v31 = vmul.f32 0.01, %v158_v28  ;;  %vm162_vm7 = vcmp.gt.f32.partialorder %v158_v28, 0.0 }
  0xdf   :  { %vm161_vm8 = vcmp.gt.f32.partialorder %v153_v30, 0.0  ;;  %v163_v32 = vmul.f32 0.01, %v153_v30  ;;  %v6911_v41 = vpop.f32.mrb[2].mxu0 }
  0xe0   :  { %v166_v34 = vsel %vm162_vm7, %v158_v28, %v164_v31  ;;  %1552 = vrot.lane.b32.xlu1 %v6911_v41, %s6737_s14  ;;  %v5897_v43 = vpop.f32.mrb[3].mxu0  ;;  %2357 = vrot.lane.b32.xlu0 %v6911_v41, %s6738_s18 }
  0xe1   :  { %v165_v33 = vsel %vm161_vm8, %v153_v30, %v163_v32  ;;  %v7047_v43 = vpop.trf.xlu0 }
  0xe2   :  { %5890 = vmatprep.mubr.msk.f32.mxu1 %vm171_vm9, %v165_v33 }
  0xe3   :  { %5891 = vmatmul.mubr.msk.f32.vlgmr.msra.gmra.mrb[0].mxu1 %vm171_vm9, %v166_v34  ;;  %v6921_v44 = vpop.f32.mrb[4].mxu0 }
  0xe4   :  { %6352 = vmatpush3.bf16.msra.mxu1 %v6349_v16  ;;  %v5900_v46 = vpop.f32.mrb[5].mxu0  ;;  %1554 = vrot.lane.b32.xlu1 %v6921_v44, %s6737_s14 }
  0xe5   :  { %6354 = vmatprep.subr.bf16.mxu1 %v6353_v38  ;;  %v736_v46 = vrot.slane %v7033_v9, %v6948_v50  ;;  %v7065_v7 = vpop.trf.xlu0 }
  0xe7   :  { %v6931_v47 = vpop.f32.mrb[6].mxu0 }
  0xe8   :  { %6356 = vmatpush3.bf16.msra.mxu1 %v6353_v38  ;;  %v5903_v49 = vpop.f32.mrb[7].mxu0  ;;  %1556 = vrot.lane.b32.xlu1 %v6931_v47, %s6737_s14 }
  0xe9   :  { %6365 = vmatprep.subr.bf16.mxu1 %v6739_v56 }
  0xec   :  { %2359 = vrot.lane.b32.xlu1 %v6921_v44, %s6738_s18 }
  0xf0   :  { %2361 = vrot.lane.b32.xlu1 %v6931_v47, %s6738_s18 }
 0x1b6   :  { %v5892_v52 = vpop.f32.mrb[0].mxu1 }
 0x1b7   :  { %v244_v53 = vpop.f32.mrb[1].mxu1  ;;  %v6953_v55 = vadd.f32 %v5892_v52, %v170_v51 }
 0x1b8   :  { %v6951_v54 = vadd.f32 %v244_v53, %v170_v51 }
 0x1ba   :  { %5912 = vmatprep.mubr.msk.f32.mxu1 %vm171_vm9, %v6951_v54  ;;  %5923 = vmatprep.mubr.msk.f32.mxu0 %vm171_vm9, %v6951_v54 }
 0x1bb   :  { %5913 = vmatmul.mubr.msk.f32.vlgmr.msra.gmra.mrb[2].mxu1 %vm171_vm9, %v6953_v55  ;;  %5924 = vmatmul.mubr.msk.f32.vlgmr.msra.gmra.mrb[8].mxu0 %vm171_vm9, %v6953_v55 }
 0x1bc   :  { %5930 = vmatprep.mubr.msk.f32.mxu1 %vm6736_vm6, %v6735_v11  ;;  %5943 = vmatprep.mubr.msk.f32.mxu0 %vm6736_vm6, %v6735_v11 }
 0x28e   :  { %v5914_v57 = vpop.f32.mrb[2].mxu1  ;;  %v5925_v58 = vpop.f32.mrb[8].mxu0 }
 0x28f   :  { %v445_v60 = vpop.f32.mrb[3].mxu1  ;;  %v520_v61 = vpop.f32.mrb[9].mxu0 }
 0x290   :  { %v6370_v62 = vpack.c.bf16 %v5914_v57, %v445_v60  ;;  %v6366_v63 = vpack.c.bf16 %v5925_v58, %v520_v61  ;;  %v360_v60 = vld [vmem:[%s8284_s10 + $0x60] sm:$0xff]  ;;  %v361_v61 = vld [vmem:[%s8284_s10 + $0x68] sm:$0xff] }
 0x292   :  { %6368 = vmatpush3.bf16.msk.msra.mxu1 %vm6971_vm10, %v6366_v63  ;;  %6372 = vmatpush3.bf16.msk.msra.mxu0 %vm6971_vm10, %v6370_v62 }
 0x293   :  { %6373 = vmatprep.subr.bf16.mxu1 %v6739_v56 }
 0x295   :  { %5931 = vmatmul.mubr.msk.f32.vlgmr.msra.gmra.mrb[4].mxu1 %vm529_vm11, %v6916_v42  ;;  %5944 = vmatmul.mubr.msk.f32.vlgmr.msra.gmra.mrb[10].mxu0 %vm529_vm11, %v6982_v0 }
 0x296   :  { %5933 = vmatprep.mubr.msk.f32.mxu1 %vm6736_vm6, %v6735_v11  ;;  %5946 = vmatprep.mubr.msk.f32.mxu0 %vm6736_vm6, %v6735_v11 }
 0x297   :  { %6375 = vmatpush3.bf16.msra.mxu1 %v6374_v5  ;;  %v6383_v5 = vpack.c.bf16 %v361_v61, %v360_v60 }
 0x298   :  { %6376 = vmatprep.subr.bf16.mxu1 %v6739_v56 }
 0x299   :  { %5934 = vmatmul.mubr.msk.f32.gmra.mrb[6].mxu1 %vm529_vm11, %v6926_v45  ;;  %5947 = vmatmul.mubr.msk.f32.gmra.mrb[12].mxu0 %vm529_vm11, %v6996_v1 }
 0x29a   :  { %5936 = vmatprep.mubr.msk.f32.mxu1 %vm6736_vm6, %v6735_v11  ;;  %5949 = vmatprep.mubr.msk.f32.mxu0 %vm6736_vm6, %v6735_v11 }
 0x29b   :  { %6378 = vmatpush3.bf16.msra.mxu1 %v6377_v8  ;;  %v356_v8 = vld [vmem:[%s8284_s10 + $0x40] sm:$0xff] }
 0x29d   :  { %5937 = vmatmul.mubr.msk.f32.gmra.mrb[8].mxu1 %vm529_vm11, %v6936_v48  ;;  %5950 = vmatmul.mubr.msk.f32.gmra.mrb[14].mxu0 %vm529_vm11, %v7009_v2 }
 0x29e   :  { %5960 = vmatprep.mubr.msk.f32.mxu1 %vm6736_vm6, %v6735_v11  ;;  %5975 = vmatprep.mubr.msk.f32.mxu0 %vm858_vm15, %v7047_v43 }
 0x368   :  { %v608_v10 = vpop.f32.mrb[4].mxu1  ;;  %v700_v12 = vpop.f32.mrb[10].mxu0 }
 0x369   :  { %v701_v13 = vadd.f32 %v700_v12, %v608_v10  ;;  %v5932_v15 = vpop.f32.mrb[5].mxu1  ;;  %v5945_v16 = vpop.f32.mrb[11].mxu0  ;;  %v357_v10 = vld [vmem:[%s8284_s10 + $0x48] sm:$0xff] }
 0x36a   :  { %v6391_v12 = vpack.c.bf16 %v357_v10, %v356_v8 }
 0x36b   :  { %v714_v17 = vadd.f32 %v701_v13, %v6911_v41  ;;  %v358_v13 = vld [vmem:[%s8284_s10 + $0x50] sm:$0xff] }
 0x36c   :  { %v613_v18 = vpop.f32.mrb[6].mxu1  ;;  %v705_v19 = vpop.f32.mrb[12].mxu0 }
 0x36d   :  { %v721_v20 = vadd.f32 %v720_v14, %v714_v17  ;;  %v706_v21 = vadd.f32 %v705_v19, %v613_v18  ;;  %v5935_v25 = vpop.f32.mrb[7].mxu1  ;;  %v5948_v26 = vpop.f32.mrb[13].mxu0  ;;  %v368_v18 = vld [vmem:[%s8288_s11 + $0x20] sm:$0xff]  ;;  %v369_v19 = vld [vmem:[%s8288_s11 + $0x28] sm:$0xff] }
 0x36e   :  { %v7100_v25 = vsub.s32 2, %v6888_v23 }
 0x36f   :  { %vm724_vm12 = vcmp.gt.f32.partialorder %v721_v20, 0.0  ;;  %v727_v27 = vmul.f32 0.01, %v721_v20  ;;  %v715_v28 = vadd.f32 %v706_v21, %v6921_v44  ;;  %v371_v21 = vld [vmem:[%s8288_s11 + $0x38] sm:$0xff] }
 0x370   :  { %v618_v29 = vpop.f32.mrb[8].mxu1  ;;  %v710_v30 = vpop.f32.mrb[14].mxu0  ;;  %v1099_v26 = vrot.slane %v7033_v9, %v7100_v25 }
 0x371   :  { %v722_v31 = vadd.f32 %v720_v14, %v715_v28  ;;  %v711_v32 = vadd.f32 %v710_v30, %v618_v29  ;;  %v5938_v33 = vpop.f32.mrb[9].mxu1  ;;  %v5951_v34 = vpop.f32.mrb[15].mxu0  ;;  %v730_v35 = vsel %vm724_vm12, %v721_v20, %v727_v27  ;;  %v6399_v20 = vpack.c.bf16 %v369_v19, %v368_v18  ;;  %v7198_v19 = vld [vmem:[%s8289_s12 + $0x4] sm:$0xf] }
 0x372   :  { %5961 = vmatmul.mubr.msk.f32.vlgmr.msra.gmra.mrb[10].mxu1 %vm171_vm9, %v730_v35  ;;  %v5471_v35 = vld [vmem:[%s8284_s10 + $0x80] sm:$0xff]  ;;  %v1553_v18 = vpop.permute.xlu1 %1552 }
 0x373   :  { %v716_v36 = vadd.f32 %v711_v32, %v6931_v47  ;;  %5963 = vmatprep.mubr.msk.f32.mxu1 %vm6736_vm6, %v6735_v11  ;;  %vm725_vm13 = vcmp.gt.f32.partialorder %v722_v31, 0.0  ;;  %v728_v37 = vmul.f32 0.01, %v722_v31  ;;  %6400 = vmatprep.subr.bf16.mxu1 %v6399_v20 }
 0x374   :  { %6402 = vmatpush3.bf16.msra.mxu1 %v6399_v20 }
 0x375   :  { %v723_v38 = vadd.f32 %v720_v14, %v716_v36  ;;  %v731_v39 = vsel %vm725_vm13, %v722_v31, %v728_v37  ;;  %v359_v14 = vld [vmem:[%s8284_s10 + $0x58] sm:$0xff]  ;;  %v5472_v36 = vld [vmem:[%s8284_s10 + $0x88] sm:$0xff]  ;;  %v5475_v37 = vld [vmem:[%s8284_s10 + $0xa0] sm:$0xff] }
 0x376   :  { %5964 = vmatmul.mubr.msk.f32.gmra.mrb[12].mxu1 %vm171_vm9, %v731_v39  ;;  %v6395_v17 = vpack.c.bf16 %v359_v14, %v358_v13  ;;  %v5476_v39 = vld [vmem:[%s8284_s10 + $0xa8] sm:$0xff] }
 0x377   :  { %5966 = vmatprep.mubr.msk.f32.mxu1 %vm6736_vm6, %v6735_v11  ;;  %vm726_vm14 = vcmp.gt.f32.partialorder %v723_v38, 0.0  ;;  %v729_v40 = vmul.f32 0.01, %v723_v38  ;;  %v5488_v13 = vld [vmem:[%s8288_s11 + $0x48] sm:$0xff] }
 0x379   :  { %v732_v41 = vsel %vm726_vm14, %v723_v38, %v729_v40  ;;  %v6407_v38 = vpack.c.bf16 %v5472_v36, %v5471_v35  ;;  %v6415_v40 = vpack.c.bf16 %v5476_v39, %v5475_v37 }
 0x37a   :  { %5967 = vmatmul.mubr.msk.f32.gmra.mrb[14].mxu1 %vm171_vm9, %v732_v41  ;;  %v5473_v41 = vld [vmem:[%s8284_s10 + $0x90] sm:$0xff] }
 0x445   :  { %v812_v44 = vpop.f32.mrb[10].mxu1 }
 0x446   :  { %v5962_v47 = vpop.f32.mrb[11].mxu1  ;;  %v813_v51 = vadd.f32 %v812_v44, %v736_v46  ;;  %v5474_v44 = vld [vmem:[%s8284_s10 + $0x98] sm:$0xff] }
 0x447   :  { %v6411_v47 = vpack.c.bf16 %v5474_v44, %v5473_v41 }
 0x449   :  { %v817_v49 = vpop.f32.mrb[12].mxu1 }
 0x44a   :  { %v818_v52 = vadd.f32 %v817_v49, %v736_v46  ;;  %v5965_v53 = vpop.f32.mrb[13].mxu1  ;;  %v5478_v49 = vld [vmem:[%s8284_s10 + $0xb8] sm:$0xff] }
 0x44c   :  { %v6379_v57 = vpack.c.bf16 %v818_v52, %v813_v51  ;;  %v7133_v52 = vsub.s32 3, %v6888_v23 }
 0x44d   :  { %v822_v58 = vpop.f32.mrb[14].mxu1 }
 0x44e   :  { %v823_v62 = vadd.f32 %v822_v58, %v736_v46  ;;  %v5968_v63 = vpop.f32.mrb[15].mxu1  ;;  %6380 = vmatprep.subr.bf16.mxu0 %v6379_v57  ;;  %v5477_v46 = vld [vmem:[%s8284_s10 + $0xb0] sm:$0xff]  ;;  %v1111_v53 = vrot.slane %v7033_v9, %v7133_v52 }
 0x44f   :  { %6382 = vmatpush3.bf16.msra.mxu0 %v6379_v57  ;;  %v6419_v51 = vpack.c.bf16 %v5478_v49, %v5477_v46 }
 0x450   :  { %5973 = vmatprep.subr.mxu0 %v823_v62 }
 0x453   :  { %5974 = vmatpush3.msra.mxu0 %v823_v62 }
 0x454   :  { %5976 = vmatmul.mubr.msk.f32.vlgmr.msra.gmra.mrb[16].mxu0 %vm858_vm15, %v7065_v7  ;;  %6384 = vmatprep.subr.bf16.mxu0 %v6383_v5 }
 0x455   :  { %6386 = vmatpush3.bf16.msra.mxu0 %v6383_v5 }
 0x456   :  { %6388 = vmatprep.subr.bf16.mxu0 %v6387_v6 }
 0x459   :  { %6390 = vmatpush3.bf16.msra.mxu0 %v6387_v6 }
 0x45a   :  { %6392 = vmatprep.subr.bf16.mxu0 %v6391_v12 }
 0x527   :  { %v5977_v15 = vpop.f32.mrb[16].mxu0 }
 0x528   :  { %v931_v16 = vpop.f32.mrb[17].mxu0 }
 0x529   :  { %5986 = vmatprep.mubr.msk.f32.mxu0 %vm171_vm9, %v931_v16  ;;  %v5490_v16 = vld [vmem:[%s8288_s11 + $0x58] sm:$0xff] }
 0x52a   :  { %5987 = vmatmul.mubr.msk.f32.vlgmr.msra.gmra.mrb[18].mxu0 %vm171_vm9, %v5977_v15  ;;  %v5489_v15 = vld [vmem:[%s8288_s11 + $0x50] sm:$0xff] }
 0x52b   :  { %6394 = vmatpush3.bf16.msra.mxu0 %v6391_v12  ;;  %5997 = vmatprep.mubr.msk.f32.mxu0 %vm171_vm9, %v6951_v54  ;;  %v370_v54 = vld [vmem:[%s8288_s11 + $0x30] sm:$0xff]  ;;  %v5487_v12 = vld [vmem:[%s8288_s11 + $0x40] sm:$0xff] }
 0x52c   :  { %6396 = vmatprep.subr.bf16.mxu0 %v6395_v17  ;;  %v6432_v14 = vpack.c.bf16 %v5488_v13, %v5487_v12 }
 0x52f   :  { %6398 = vmatpush3.bf16.msra.mxu0 %v6395_v17  ;;  %v6435_v17 = vpack.c.bf16 %v5490_v16, %v5489_v15 }
 0x530   :  { %6416 = vmatprep.subr.bf16.mxu0 %v6415_v40 }
 0x532   :  { %5998 = vmatmul.mubr.msk.f32.vlgmr.msra.gmra.mrb[18].mxu0 %vm171_vm9, %v6953_v55  ;;  %v6403_v55 = vpack.c.bf16 %v371_v21, %v370_v54 }
 0x533   :  { %6418 = vmatpush3.bf16.msra.mxu0 %v6415_v40 }
 0x534   :  { %6404 = vmatprep.subr.bf16.mxu1 %v6403_v55  ;;  %6420 = vmatprep.subr.bf16.mxu0 %v6419_v51 }
 0x535   :  { %6406 = vmatpush3.bf16.msra.mxu1 %v6403_v55  ;;  %v1567_v55 = vrot.slane %v7198_v19, %v6891_v24 }
 0x536   :  { %6408 = vmatprep.subr.bf16.mxu1 %v6407_v38 }
 0x537   :  { %6422 = vmatpush3.bf16.msra.mxu0 %v6419_v51 }
 0x538   :  { %6427 = vmatprep.subr.bf16.mxu0 %v6739_v56 }
 0x605   :  { %v5999_v27 = vpop.f32.mrb[18].mxu0 }
 0x606   :  { %v1101_v28 = vadd.f32 %v5999_v27, %v1099_v26  ;;  %v1087_v29 = vpop.f32.mrb[19].mxu0 }
 0x607   :  { %v1100_v30 = vadd.f32 %v1099_v26, %v1087_v29 }
 0x608   :  { %v1105_v31 = vmul.f32 0.01, %v1101_v28  ;;  %vm1103_vm0 = vcmp.gt.f32.partialorder %v1101_v28, 0.0 }
 0x609   :  { %vm1102_vm1 = vcmp.gt.f32.partialorder %v1100_v30, 0.0  ;;  %v1104_v32 = vmul.f32 0.01, %v1100_v30 }
 0x60a   :  { %v1107_v34 = vsel %vm1103_vm0, %v1101_v28, %v1105_v31  ;;  %v1555_v28 = vpop.permute.xlu1 %1554 }
 0x60b   :  { %v1106_v33 = vsel %vm1102_vm1, %v1100_v30, %v1104_v32 }
 0x60c   :  { %6008 = vmatprep.mubr.msk.f32.mxu1 %vm171_vm9, %v1106_v33 }
 0x60d   :  { %6009 = vmatmul.mubr.msk.f32.vlgmr.msra.gmra.mrb[16].mxu1 %vm171_vm9, %v1107_v34 }
 0x60e   :  { %6410 = vmatpush3.bf16.msra.mxu1 %v6407_v38  ;;  %v1557_v49 = vpop.permute.xlu1 %1556 }
 0x60f   :  { %6412 = vmatprep.subr.bf16.mxu1 %v6411_v47 }
 0x612   :  { %6414 = vmatpush3.bf16.msra.mxu1 %v6411_v47 }
 0x613   :  { %6423 = vmatprep.subr.bf16.mxu1 %v6739_v56 }
 0x6e0   :  { %v6010_v57 = vpop.f32.mrb[16].mxu1 }
 0x6e1   :  { %v1190_v58 = vadd.f32 %v6010_v57, %v1111_v53  ;;  %v1184_v60 = vpop.f32.mrb[17].mxu1 }
 0x6e2   :  { %v1185_v61 = vadd.f32 %v1184_v60, %v1111_v53 }
 0x6e3   :  { %v1196_v62 = vmul.f32 0.01, %v1190_v58  ;;  %vm1194_vm2 = vcmp.gt.f32.partialorder %v1190_v58, 0.0 }
 0x6e4   :  { %vm1193_vm3 = vcmp.gt.f32.partialorder %v1185_v61, 0.0  ;;  %v1195_v63 = vmul.f32 0.01, %v1185_v61 }
 0x6e5   :  { %v7139_v4 = vsel %vm1194_vm2, %v1190_v58, %v1196_v62  ;;  %v5483_v62 = vld [vmem:[%s8284_s10 + $0xe0] sm:$0xff] }
 0x6e6   :  { %v7137_v3 = vsel %vm1193_vm3, %v1185_v61, %v1195_v63  ;;  %v5484_v63 = vld [vmem:[%s8284_s10 + $0xe8] sm:$0xff] }
 0x6e7   :  { %6019 = vmatprep.mubr.msk.f32.mxu1 %vm171_vm9, %v7137_v3  ;;  %6030 = vmatprep.mubr.msk.f32.mxu0 %vm171_vm9, %v7137_v3 }
 0x6e8   :  { %6020 = vmatmul.mubr.msk.f32.vlgmr.msra.gmra.mrb[18].mxu1 %vm171_vm9, %v7139_v4  ;;  %6031 = vmatmul.mubr.msk.f32.vlgmr.msra.gmra.mrb[20].mxu0 %vm171_vm9, %v7139_v4 }
 0x6e9   :  { %6037 = vmatprep.mubr.msk.f32.mxu1 %vm6736_vm6, %v6735_v11  ;;  %6050 = vmatprep.mubr.msk.f32.mxu0 %vm6736_vm6, %v6735_v11 }
 0x7bb   :  { %v6021_v23 = vpop.f32.mrb[18].mxu1  ;;  %v6032_v9 = vpop.f32.mrb[20].mxu0 }
 0x7bc   :  { %v1299_v5 = vpop.f32.mrb[19].mxu1  ;;  %v1374_v6 = vpop.f32.mrb[21].mxu0 }
 0x7bd   :  { %v6428_v8 = vpack.c.bf16 %v6021_v23, %v1299_v5  ;;  %v6424_v10 = vpack.c.bf16 %v6032_v9, %v1374_v6  ;;  %v5485_v23 = vld [vmem:[%s8284_s10 + $0xf0] sm:$0xff]  ;;  %v6441_v9 = vpack.c.bf16 %v5484_v63, %v5483_v62  ;;  %v5486_v5 = vld [vmem:[%s8284_s10 + $0xf8] sm:$0xff] }
 0x7be   :  { %v6445_v6 = vpack.c.bf16 %v5486_v5, %v5485_v23  ;;  %v5522_v62 = vld [vmem:[%s8284_s10 + $0x118] sm:$0xff]  ;;  %v5525_v63 = vld [vmem:[%s8284_s10 + $0x130] sm:$0xff] }
 0x7bf   :  { %6426 = vmatpush3.bf16.msk.msra.mxu1 %vm6971_vm10, %v6424_v10  ;;  %6430 = vmatpush3.bf16.msk.msra.mxu0 %vm6971_vm10, %v6428_v8  ;;  %v1583_v10 = vrot.slane %v7198_v19, %v6948_v50 }
 0x7c0   :  { %6431 = vmatprep.subr.bf16.mxu1 %v6739_v56 }
 0x7c2   :  { %6038 = vmatmul.mubr.msk.f32.vlgmr.msra.gmra.mrb[20].mxu1 %vm529_vm11, %v6916_v42  ;;  %6051 = vmatmul.mubr.msk.f32.vlgmr.msra.gmra.mrb[22].mxu0 %vm529_vm11, %v6982_v0 }
 0x7c3   :  { %6040 = vmatprep.mubr.msk.f32.mxu1 %vm6736_vm6, %v6735_v11  ;;  %6053 = vmatprep.mubr.msk.f32.mxu0 %vm6736_vm6, %v6735_v11 }
 0x7c4   :  { %6433 = vmatpush3.bf16.msra.mxu1 %v6432_v14 }
 0x7c5   :  { %6434 = vmatprep.subr.bf16.mxu1 %v6739_v56 }
 0x7c6   :  { %6041 = vmatmul.mubr.msk.f32.gmra.mrb[22].mxu1 %vm529_vm11, %v6926_v45  ;;  %6054 = vmatmul.mubr.msk.f32.gmra.mrb[24].mxu0 %vm529_vm11, %v6996_v1 }
 0x7c7   :  { %6043 = vmatprep.mubr.msk.f32.mxu1 %vm6736_vm6, %v6735_v11  ;;  %6056 = vmatprep.mubr.msk.f32.mxu0 %vm6736_vm6, %v6735_v11 }
 0x7c8   :  { %6436 = vmatpush3.bf16.msra.mxu1 %v6435_v17 }
 0x7c9   :  { %6442 = vmatprep.subr.bf16.mxu1 %v6441_v9 }
 0x7ca   :  { %6044 = vmatmul.mubr.msk.f32.gmra.mrb[24].mxu1 %vm529_vm11, %v6936_v48  ;;  %6057 = vmatmul.mubr.msk.f32.gmra.mrb[26].mxu0 %vm529_vm11, %v7009_v2 }
 0x7cb   :  { %6082 = vmatprep.mubr.msk.f32.mxu0 %vm858_vm15, %v7047_v43  ;;  %6067 = vmatprep.mubr.msk.f32.mxu1 %vm6736_vm6, %v6735_v11 }
 0x895   :  { %v1452_v20 = vpop.f32.mrb[20].mxu1  ;;  %v1535_v54 = vpop.f32.mrb[22].mxu0 }
 0x896   :  { %v1536_v21 = vadd.f32 %v1535_v54, %v1452_v20  ;;  %v6039_v26 = vpop.f32.mrb[21].mxu1  ;;  %v6052_v27 = vpop.f32.mrb[23].mxu0 }
 0x897   :  { %v5481_v27 = vld [vmem:[%s8284_s10 + $0xd0] sm:$0xff] }
 0x898   :  { %v1561_v29 = vadd.f32 %v1553_v18, %v1536_v21  ;;  %v5479_v21 = vld [vmem:[%s8284_s10 + $0xc0] sm:$0xff] }
 0x899   :  { %v1457_v30 = vpop.f32.mrb[22].mxu1  ;;  %v1540_v31 = vpop.f32.mrb[24].mxu0 }
 0x89a   :  { %v1568_v32 = vadd.f32 %v1567_v55, %v1561_v29  ;;  %v1541_v33 = vadd.f32 %v1540_v31, %v1457_v30  ;;  %v6042_v34 = vpop.f32.mrb[23].mxu1  ;;  %v6055_v35 = vpop.f32.mrb[25].mxu0 }
 0x89b   :  { %v5494_v35 = vld [vmem:[%s8288_s11 + $0x78] sm:$0xff] }
 0x89c   :  { %vm1571_vm4 = vcmp.gt.f32.partialorder %v1568_v32, 0.0  ;;  %v1574_v36 = vmul.f32 0.01, %v1568_v32  ;;  %v1562_v37 = vadd.f32 %v1555_v28, %v1541_v33  ;;  %v5482_v28 = vld [vmem:[%s8284_s10 + $0xd8] sm:$0xff]  ;;  %v5492_v33 = vld [vmem:[%s8288_s11 + $0x68] sm:$0xff] }
 0x89d   :  { %v1462_v38 = vpop.f32.mrb[24].mxu1  ;;  %v1545_v39 = vpop.f32.mrb[26].mxu0  ;;  %v6453_v31 = vpack.c.bf16 %v5482_v28, %v5481_v27 }
 0x89e   :  { %v1569_v40 = vadd.f32 %v1567_v55, %v1562_v37  ;;  %v1546_v41 = vadd.f32 %v1545_v39, %v1462_v38  ;;  %v6045_v44 = vpop.f32.mrb[25].mxu1  ;;  %v6058_v46 = vpop.f32.mrb[27].mxu0  ;;  %v1577_v47 = vsel %vm1571_vm4, %v1568_v32, %v1574_v36  ;;  %v5491_v32 = vld [vmem:[%s8288_s11 + $0x60] sm:$0xff]  ;;  %v1907_v36 = vrot.slane %v7198_v19, %v7100_v25 }
 0x89f   :  { %6068 = vmatmul.mubr.msk.f32.vlgmr.msra.gmra.mrb[26].mxu1 %vm171_vm9, %v1577_v47  ;;  %v6457_v34 = vpack.c.bf16 %v5492_v33, %v5491_v32  ;;  %v2358_v32 = vpop.permute.xlu0 %2357  ;;  %v2360_v33 = vpop.permute.xlu1 %2359 }
 0x8a0   :  { %v1563_v51 = vadd.f32 %v1557_v49, %v1546_v41  ;;  %6070 = vmatprep.mubr.msk.f32.mxu1 %vm6736_vm6, %v6735_v11  ;;  %vm1572_vm5 = vcmp.gt.f32.partialorder %v1569_v40, 0.0  ;;  %v1575_v53 = vmul.f32 0.01, %v1569_v40  ;;  %6444 = vmatpush3.bf16.msra.mxu1 %v6441_v9  ;;  %v5519_v49 = vld [vmem:[%s8284_s10 + $0x100] sm:$0xff]  ;;  %v5526_v9 = vld [vmem:[%s8284_s10 + $0x138] sm:$0xff] }
 0x8a1   :  { %6446 = vmatprep.subr.bf16.mxu1 %v6445_v6  ;;  %v6477_v5 = vpack.c.bf16 %v5526_v9, %v5525_v63  ;;  %v5531_v9 = vld [vmem:[%s8284_s10 + $0x160] sm:$0xff] }
 0x8a2   :  { %v1570_v57 = vadd.f32 %v1567_v55, %v1563_v51  ;;  %v1578_v58 = vsel %vm1572_vm5, %v1569_v40, %v1575_v53  ;;  %v5480_v55 = vld [vmem:[%s8284_s10 + $0xc8] sm:$0xff]  ;;  %v5523_v53 = vld [vmem:[%s8284_s10 + $0x120] sm:$0xff] }
 0x8a3   :  { %6071 = vmatmul.mubr.msk.f32.gmra.mrb[28].mxu1 %vm171_vm9, %v1578_v58  ;;  %v6449_v26 = vpack.c.bf16 %v5480_v55, %v5479_v21  ;;  %v5520_v51 = vld [vmem:[%s8284_s10 + $0x108] sm:$0xff] }
 0x8a4   :  { %6073 = vmatprep.mubr.msk.f32.mxu1 %vm6736_vm6, %v6735_v11  ;;  %vm1573_vm7 = vcmp.gt.f32.partialorder %v1570_v57, 0.0  ;;  %v1576_v60 = vmul.f32 0.01, %v1570_v57  ;;  %6448 = vmatpush3.bf16.msra.mxu1 %v6445_v6  ;;  %v5524_v58 = vld [vmem:[%s8284_s10 + $0x128] sm:$0xff]  ;;  %v1919_v6 = vrot.slane %v7198_v19, %v7133_v52 }
 0x8a5   :  { %6450 = vmatprep.subr.bf16.mxu1 %v6449_v26 }
 0x8a6   :  { %v1579_v61 = vsel %vm1573_vm7, %v1570_v57, %v1576_v60  ;;  %v6465_v57 = vpack.c.bf16 %v5520_v51, %v5519_v49  ;;  %v6473_v60 = vpack.c.bf16 %v5524_v58, %v5523_v53 }
 0x8a7   :  { %6074 = vmatmul.mubr.msk.f32.gmra.mrb[30].mxu1 %vm171_vm9, %v1579_v61  ;;  %v5521_v61 = vld [vmem:[%s8284_s10 + $0x110] sm:$0xff] }
 0x8a8   :  { %v6469_v23 = vpack.c.bf16 %v5522_v62, %v5521_v61 }
 0x972   :  { %v1659_v8 = vpop.f32.mrb[26].mxu1 }
 0x973   :  { %v6069_v12 = vpop.f32.mrb[27].mxu1  ;;  %v1660_v14 = vadd.f32 %v1659_v8, %v1583_v10 }
 0x976   :  { %v1664_v13 = vpop.f32.mrb[28].mxu1 }
 0x977   :  { %v1665_v15 = vadd.f32 %v1664_v13, %v1583_v10  ;;  %v6072_v16 = vpop.f32.mrb[29].mxu1 }
 0x979   :  { %v6437_v17 = vpack.c.bf16 %v1665_v15, %v1660_v14 }
 0x97a   :  { %v1669_v18 = vpop.f32.mrb[30].mxu1 }
 0x97b   :  { %v1670_v20 = vadd.f32 %v1669_v18, %v1583_v10  ;;  %v6075_v54 = vpop.f32.mrb[31].mxu1  ;;  %6438 = vmatprep.subr.bf16.mxu0 %v6437_v17 }
 0x97c   :  { %6440 = vmatpush3.bf16.msra.mxu0 %v6437_v17 }
 0x97d   :  { %6080 = vmatprep.subr.mxu0 %v1670_v20 }
 0x980   :  { %6081 = vmatpush3.msra.mxu0 %v1670_v20 }
 0x981   :  { %6083 = vmatmul.mubr.msk.f32.vlgmr.msra.gmra.mrb[28].mxu0 %vm858_vm15, %v7065_v7  ;;  %6458 = vmatprep.subr.bf16.mxu0 %v6457_v34 }
 0x982   :  { %6460 = vmatpush3.bf16.msra.mxu0 %v6457_v34 }
 0xa54   :  { %v6084_v29 = vpop.f32.mrb[28].mxu0 }
 0xa55   :  { %v1739_v30 = vpop.f32.mrb[29].mxu0 }
 0xa56   :  { %6093 = vmatprep.mubr.msk.f32.mxu1 %vm171_vm9, %v1739_v30 }
 0xa57   :  { %6094 = vmatmul.mubr.msk.f32.vlgmr.msra.gmra.mrb[32].mxu1 %vm171_vm9, %v6084_v29 }
 0xa58   :  { %6452 = vmatpush3.bf16.msra.mxu1 %v6449_v26  ;;  %6104 = vmatprep.mubr.msk.f32.mxu1 %vm171_vm9, %v7137_v3  ;;  %v5493_v3 = vld [vmem:[%s8288_s11 + $0x70] sm:$0xff] }
 0xa59   :  { %6454 = vmatprep.subr.bf16.mxu1 %v6453_v31 }
 0xa5c   :  { %6456 = vmatpush3.bf16.msra.mxu1 %v6453_v31 }
 0xa5d   :  { %6474 = vmatprep.subr.bf16.mxu1 %v6473_v60 }
 0xa5f   :  { %6105 = vmatmul.mubr.msk.f32.vlgmr.msra.gmra.mrb[32].mxu1 %vm171_vm9, %v7139_v4  ;;  %v6461_v4 = vpack.c.bf16 %v5494_v35, %v5493_v3 }
 0xa60   :  { %6476 = vmatpush3.bf16.msra.mxu1 %v6473_v60 }
 0xa61   :  { %6462 = vmatprep.subr.bf16.mxu0 %v6461_v4  ;;  %6478 = vmatprep.subr.bf16.mxu1 %v6477_v5 }
 0xa62   :  { %6464 = vmatpush3.bf16.msra.mxu0 %v6461_v4 }
 0xa63   :  { %6466 = vmatprep.subr.bf16.mxu0 %v6465_v57 }
 0xa64   :  { %6480 = vmatpush3.bf16.msra.mxu1 %v6477_v5  ;;  %v5532_v5 = vld [vmem:[%s8284_s10 + $0x168] sm:$0xff] }
 0xa65   :  { %6485 = vmatprep.subr.bf16.mxu1 %v6739_v56 }
 0xb32   :  { %v6106_v37 = vpop.f32.mrb[32].mxu1 }
 0xb33   :  { %v1909_v38 = vadd.f32 %v6106_v37, %v1907_v36  ;;  %v1895_v39 = vpop.f32.mrb[33].mxu1 }
 0xb34   :  { %v1908_v40 = vadd.f32 %v1907_v36, %v1895_v39 }
 0xb35   :  { %v1913_v41 = vmul.f32 0.01, %v1909_v38  ;;  %vm1911_vm8 = vcmp.gt.f32.partialorder %v1909_v38, 0.0 }
 0xb36   :  { %vm1910_vm12 = vcmp.gt.f32.partialorder %v1908_v40, 0.0  ;;  %v1912_v44 = vmul.f32 0.01, %v1908_v40 }
 0xb37   :  { %v1915_v47 = vsel %vm1911_vm8, %v1909_v38, %v1913_v41 }
 0xb38   :  { %v1914_v46 = vsel %vm1910_vm12, %v1908_v40, %v1912_v44 }
 0xb39   :  { %6115 = vmatprep.mubr.msk.f32.mxu0 %vm171_vm9, %v1914_v46 }
 0xb3a   :  { %6116 = vmatmul.mubr.msk.f32.vlgmr.msra.gmra.mrb[30].mxu0 %vm171_vm9, %v1915_v47 }
 0xb3b   :  { %6468 = vmatpush3.bf16.msra.mxu0 %v6465_v57  ;;  %v2362_v57 = vpop.permute.xlu1 %2361 }
 0xb3c   :  { %6470 = vmatprep.subr.bf16.mxu0 %v6469_v23 }
 0xb3f   :  { %6472 = vmatpush3.bf16.msra.mxu0 %v6469_v23 }
 0xb40   :  { %6481 = vmatprep.subr.bf16.mxu0 %v6739_v56 }
 0xc0d   :  { %v6117_v8 = vpop.f32.mrb[30].mxu0 }
 0xc0e   :  { %v1998_v10 = vadd.f32 %v6117_v8, %v1919_v6  ;;  %v1992_v12 = vpop.f32.mrb[31].mxu0  ;;  %v6499_v8 = vpack.c.bf16 %v5532_v5, %v5531_v9 }
 0xc0f   :  { %v1993_v13 = vadd.f32 %v1992_v12, %v1919_v6  ;;  %v5533_v6 = vld [vmem:[%s8284_s10 + $0x170] sm:$0xff] }
 0xc10   :  { %v2004_v14 = vmul.f32 0.01, %v1998_v10  ;;  %vm2002_vm13 = vcmp.gt.f32.partialorder %v1998_v10, 0.0 }
 0xc11   :  { %vm2001_vm14 = vcmp.gt.f32.partialorder %v1993_v13, 0.0  ;;  %v2003_v15 = vmul.f32 0.01, %v1993_v13 }
 0xc12   :  { %v7289_v17 = vsel %vm2002_vm13, %v1998_v10, %v2004_v14  ;;  %v5534_v10 = vld [vmem:[%s8284_s10 + $0x178] sm:$0xff] }
 0xc13   :  { %v7287_v16 = vsel %vm2001_vm14, %v1993_v13, %v2003_v15  ;;  %v6503_v12 = vpack.c.bf16 %v5534_v10, %v5533_v6  ;;  %v7434_v10 = vld [vmem:[%s8280_s0 + $0x8] sm:$0xf] }
 0xc14   :  { %6126 = vmatprep.mubr.msk.f32.mxu0 %vm171_vm9, %v7287_v16  ;;  %6137 = vmatprep.mubr.msk.f32.mxu1 %vm171_vm9, %v7287_v16  ;;  %vm56_vm7 = vcmp.eq.f32.partialorder %v7434_v10, 1.0 }
 0xc15   :  { %6127 = vmatmul.mubr.msk.f32.vlgmr.msra.gmra.mrb[32].mxu0 %vm171_vm9, %v7289_v17  ;;  %6138 = vmatmul.mubr.msk.f32.vlgmr.msra.gmra.mrb[34].mxu1 %vm171_vm9, %v7289_v17 }
 0xc16   :  { %6144 = vmatprep.mubr.msk.f32.mxu0 %vm6736_vm6, %v6735_v11  ;;  %6157 = vmatprep.mubr.msk.f32.mxu1 %vm6736_vm6, %v6735_v11 }
 0xce8   :  { %v6128_v19 = vpop.f32.mrb[32].mxu0  ;;  %v6139_v18 = vpop.f32.mrb[34].mxu1 }
 0xce9   :  { %v2107_v20 = vpop.f32.mrb[33].mxu0  ;;  %v2182_v54 = vpop.f32.mrb[35].mxu1 }
 0xcea   :  { %v6486_v21 = vpack.c.bf16 %v6128_v19, %v2107_v20  ;;  %v6482_v55 = vpack.c.bf16 %v6139_v18, %v2182_v54 }
 0xcec   :  { %6484 = vmatpush3.bf16.msk.msra.mxu0 %vm6971_vm10, %v6482_v55  ;;  %6488 = vmatpush3.bf16.msk.msra.mxu1 %vm6971_vm10, %v6486_v21 }
 0xced   :  { %6489 = vmatprep.subr.bf16.mxu0 %v6739_v56 }
 0xcef   :  { %6145 = vmatmul.mubr.msk.f32.vlgmr.msra.gmra.mrb[34].mxu0 %vm529_vm11, %v6916_v42  ;;  %6158 = vmatmul.mubr.msk.f32.vlgmr.msra.gmra.mrb[36].mxu1 %vm529_vm11, %v6982_v0  ;;  %v5535_v42 = vld [vmem:[%s8288_s11 + $0x80] sm:$0xff] }
 0xcf0   :  { %6147 = vmatprep.mubr.msk.f32.mxu0 %vm6736_vm6, %v6735_v11  ;;  %6160 = vmatprep.mubr.msk.f32.mxu1 %vm6736_vm6, %v6735_v11 }
 0xcf3   :  { %6148 = vmatmul.mubr.msk.f32.gmra.mrb[36].mxu0 %vm529_vm11, %v6926_v45  ;;  %6161 = vmatmul.mubr.msk.f32.gmra.mrb[38].mxu1 %vm529_vm11, %v6996_v1  ;;  %v5536_v45 = vld [vmem:[%s8288_s11 + $0x88] sm:$0xff]  ;;  %v5538_v1 = vld [vmem:[%s8288_s11 + $0x98] sm:$0xff] }
 0xcf4   :  { %6150 = vmatprep.mubr.msk.f32.mxu0 %vm6736_vm6, %v6735_v11  ;;  %6163 = vmatprep.mubr.msk.f32.mxu1 %vm6736_vm6, %v6735_v11  ;;  %v6490_v0 = vpack.c.bf16 %v5536_v45, %v5535_v42 }
 0xcf6   :  { %6491 = vmatpush3.bf16.msra.mxu0 %v6490_v0  ;;  %v5527_v0 = vld [vmem:[%s8284_s10 + $0x140] sm:$0xff] }
 0xcf7   :  { %6151 = vmatmul.mubr.msk.f32.gmra.mrb[38].mxu0 %vm529_vm11, %v6936_v48  ;;  %6164 = vmatmul.mubr.msk.f32.gmra.mrb[40].mxu1 %vm529_vm11, %v7009_v2  ;;  %v5537_v48 = vld [vmem:[%s8288_s11 + $0x90] sm:$0xff] }
 0xcf8   :  { %6189 = vmatprep.mubr.msk.f32.mxu1 %vm858_vm15, %v7047_v43  ;;  %6174 = vmatprep.mubr.msk.f32.mxu0 %vm6736_vm6, %v6735_v11  ;;  %v6493_v2 = vpack.c.bf16 %v5538_v1, %v5537_v48  ;;  %v7348_v43 = vld [vmem:[%s8289_s12 + $0x8] sm:$0xf] }
 0xcf9   :  { %6492 = vmatprep.subr.bf16.mxu0 %v6739_v56  ;;  %v2372_v29 = vrot.slane %v7348_v43, %v6891_v24  ;;  %v2388_v14 = vrot.slane %v7348_v43, %v6948_v50  ;;  %v5528_v48 = vld [vmem:[%s8284_s10 + $0x148] sm:$0xff] }
 0xcfa   :  { %6494 = vmatpush3.bf16.msra.mxu0 %v6493_v2  ;;  %v6507_v1 = vpack.c.bf16 %v5528_v48, %v5527_v0  ;;  %v5529_v2 = vld [vmem:[%s8284_s10 + $0x150] sm:$0xff] }
 0xcfb   :  { %6500 = vmatprep.subr.bf16.mxu0 %v6499_v8 }
 0xdc2   :  { %v2260_v26 = vpop.f32.mrb[34].mxu0  ;;  %v2343_v27 = vpop.f32.mrb[36].mxu1 }
 0xdc3   :  { %v2344_v28 = vadd.f32 %v2343_v27, %v2260_v26  ;;  %v6146_v30 = vpop.f32.mrb[35].mxu0  ;;  %v6159_v31 = vpop.f32.mrb[37].mxu1  ;;  %v5530_v26 = vld [vmem:[%s8284_s10 + $0x158] sm:$0xff] }
 0xdc4   :  { %v5540_v30 = vld [vmem:[%s8288_s11 + $0xa8] sm:$0xff] }
 0xdc5   :  { %v2366_v34 = vadd.f32 %v2358_v32, %v2344_v28  ;;  %v6511_v28 = vpack.c.bf16 %v5530_v26, %v5529_v2  ;;  %v5542_v32 = vld [vmem:[%s8288_s11 + $0xb8] sm:$0xff]  ;;  %v62_v26 = vld [vmem:[%s8290_s6 + $0x8] sm:$0xff] }
 0xdc6   :  { %v2265_v3 = vpop.f32.mrb[36].mxu0  ;;  %v2348_v35 = vpop.f32.mrb[38].mxu1 }
 0xdc7   :  { %v2373_v4 = vadd.f32 %v2372_v29, %v2366_v34  ;;  %v2349_v36 = vadd.f32 %v2348_v35, %v2265_v3  ;;  %v6149_v37 = vpop.f32.mrb[37].mxu0  ;;  %v6162_v38 = vpop.f32.mrb[39].mxu1  ;;  %v6710_v34 = vld [vmem:[%s8281_s5 + $0x8] sm:$0xff]  ;;  %v6711_v35 = vld [vmem:[%s8281_s5 + $0x10] sm:$0xff] }
 0xdc8   :  { %v2712_v38 = vrot.slane %v7348_v43, %v7100_v25 }
 0xdc9   :  { %vm2376_vm0 = vcmp.gt.f32.partialorder %v2373_v4, 0.0  ;;  %v2379_v39 = vmul.f32 0.01, %v2373_v4  ;;  %v2367_v40 = vadd.f32 %v2360_v33, %v2349_v36  ;;  %v6709_v33 = vld [vmem:[%s8281_s5] sm:$0xff] }
 0xdca   :  { %v2270_v41 = vpop.f32.mrb[38].mxu0  ;;  %v2353_v44 = vpop.f32.mrb[40].mxu1  ;;  %v6628_v3 = vpack.i.bf16 %v6710_v34, %v6709_v33 }
 0xdcb   :  { %v2374_v46 = vadd.f32 %v2372_v29, %v2367_v40  ;;  %v2354_v47 = vadd.f32 %v2353_v44, %v2270_v41  ;;  %v6152_v49 = vpop.f32.mrb[39].mxu0  ;;  %v6165_v51 = vpop.f32.mrb[41].mxu1  ;;  %v2382_v53 = vsel %vm2376_vm0, %v2373_v4, %v2379_v39  ;;  %v6712_v4 = vld [vmem:[%s8281_s5 + $0x18] sm:$0xff] }
 0xdcc   :  { %6175 = vmatmul.mubr.msk.f32.vlgmr.msra.gmra.mrb[40].mxu0 %vm171_vm9, %v2382_v53  ;;  %6629 = vrot.lane.b32.xlu1 %v6628_v3, %s6737_s14  ;;  %v6633_v36 = vpack.i.bf16 %v6712_v4, %v6711_v35 }
 0xdcd   :  { %v2368_v58 = vadd.f32 %v2362_v57, %v2354_v47  ;;  %6177 = vmatprep.mubr.msk.f32.mxu0 %vm6736_vm6, %v6735_v11  ;;  %vm2377_vm1 = vcmp.gt.f32.partialorder %v2374_v46, 0.0  ;;  %v2380_v60 = vmul.f32 0.01, %v2374_v46  ;;  %6502 = vmatpush3.bf16.msra.mxu0 %v6499_v8  ;;  %v7428_v8 = vld [vmem:[%s8280_s0] sm:$0xff] }
 0xdce   :  { %6504 = vmatprep.subr.bf16.mxu0 %v6503_v12  ;;  %vm55_vm5 = vcmp.eq.f32.partialorder %v7428_v8, 1.0 }
 0xdcf   :  { %v2375_v61 = vadd.f32 %v2372_v29, %v2368_v58  ;;  %v2383_v62 = vsel %vm2377_vm1, %v2374_v46, %v2380_v60  ;;  %v5539_v29 = vld [vmem:[%s8288_s11 + $0xa0] sm:$0xff]  ;;  %v5581_v4 = vsel %vm55_vm5, 1.0, %v6735_v11 }
 0xdd0   :  { %6178 = vmatmul.mubr.msk.f32.gmra.mrb[42].mxu0 %vm171_vm9, %v2383_v62  ;;  %v6515_v31 = vpack.c.bf16 %v5540_v30, %v5539_v29  ;;  %6634 = vrot.lane.b32.xlu1 %v6633_v36, %s6737_s14  ;;  %v65_v30 = vld [vmem:[%s8290_s6 + $0x20] sm:$0xff] }
 0xdd1   :  { %6180 = vmatprep.mubr.msk.f32.mxu0 %vm6736_vm6, %v6735_v11  ;;  %vm2378_vm2 = vcmp.gt.f32.partialorder %v2375_v61, 0.0  ;;  %v2381_v63 = vmul.f32 0.01, %v2375_v61  ;;  %6506 = vmatpush3.bf16.msra.mxu0 %v6503_v12  ;;  %v6740_v12 = vmov 0  }
 0xdd2   :  { %6508 = vmatprep.subr.bf16.mxu0 %v6507_v1  ;;  %6665 = vset.pattern.permute.xlu0 %v6740_v12 }
 0xdd3   :  { %v2384_v23 = vsel %vm2378_vm2, %v2375_v61, %v2381_v63 }
 0xdd4   :  { %6181 = vmatmul.mubr.msk.f32.gmra.mrb[44].mxu0 %vm171_vm9, %v2384_v23  ;;  %6639 = vrot.lane.b32.xlu1 %v6628_v3, %s6738_s18 }
 0xdd8   :  { %6644 = vrot.lane.b32.xlu1 %v6633_v36, %s6738_s18  ;;  %v5582_v36 = vsel %vm56_vm7, 1.0, %v6735_v11 }
 0xe3e   :  { %v6630_v37 = vpop.permute.xlu1 %6629 }
 0xe3f   :  { %v6632_v39 = vunpack.i.h.bf16 %v6630_v37  ;;  %v6631_v40 = vunpack.i.l.bf16 %v6630_v37  ;;  %v6655_v37 = vpack.i.bf16 %v5582_v36, %v5581_v4 }
 0xe41   :  { %v6523_v41 = vpack.c.bf16 %v6632_v39, %v6631_v40  ;;  %v6715_v39 = vld [vmem:[%s8285_s7] sm:$0xf] }
 0xe42   :  { %v6635_v46 = vpop.permute.xlu1 %6634  ;;  %v2815_v40 = vrot.slane %v6715_v39, %v7100_v25 }
 0xe43   :  { %v6637_v53 = vunpack.i.h.bf16 %v6635_v46  ;;  %v6636_v57 = vunpack.i.l.bf16 %v6635_v46 }
 0xe45   :  { %v6527_v62 = vpack.c.bf16 %v6637_v53, %v6636_v57  ;;  %v3021_v53 = vrot.slane %v6715_v39, %v7133_v52 }
 0xe46   :  { %v6640_v23 = vpop.permute.xlu1 %6639 }
 0xe47   :  { %v6642_v9 = vunpack.i.h.bf16 %v6640_v23  ;;  %v6641_v5 = vunpack.i.l.bf16 %v6640_v23 }
 0xe49   :  { %v6539_v6 = vpack.c.bf16 %v6642_v9, %v6641_v5 }
 0xe9f   :  { %v2464_v13 = vpop.f32.mrb[40].mxu0 }
 0xea0   :  { %v6176_v15 = vpop.f32.mrb[41].mxu0  ;;  %v2465_v18 = vadd.f32 %v2464_v13, %v2388_v14  ;;  %v3201_v13 = vsel %vm55_vm5, 1, %v6740_v12 }
 0xea1   :  { %3203 = vrot.lane.b32.xlu1 %v3201_v13, %s6741_s28  ;;  %v2724_v15 = vrot.slane %v7348_v43, %v7133_v52  ;;  %v61_v43 = vld [vmem:[%s8290_s6] sm:$0xff] }
 0xea3   :  { %v2469_v19 = vpop.f32.mrb[42].mxu0 }
 0xea4   :  { %v2470_v20 = vadd.f32 %v2469_v19, %v2388_v14  ;;  %v6179_v54 = vpop.f32.mrb[43].mxu0  ;;  %v6645_v19 = vpop.permute.xlu1 %6644 }
 0xea6   :  { %v6495_v21 = vpack.c.bf16 %v2470_v20, %v2465_v18 }
 0xea7   :  { %v2474_v55 = vpop.f32.mrb[44].mxu0 }
 0xea8   :  { %v2475_v42 = vadd.f32 %v2474_v55, %v2388_v14  ;;  %v6182_v45 = vpop.f32.mrb[45].mxu0  ;;  %6496 = vmatprep.subr.bf16.mxu1 %v6495_v21  ;;  %v3202_v14 = vsel %vm56_vm7, 1, %v6740_v12  ;;  %v6647_v55 = vunpack.i.h.bf16 %v6645_v19 }
 0xea9   :  { %6498 = vmatpush3.bf16.msra.mxu1 %v6495_v21  ;;  %3205 = vrot.lane.b32.xlu1 %v3202_v14, %s6741_s28 }
 0xeaa   :  { %6187 = vmatprep.subr.mxu1 %v2475_v42 }
 0xead   :  { %6188 = vmatpush3.msra.mxu1 %v2475_v42  ;;  %v6646_v42 = vunpack.i.l.bf16 %v6645_v19 }
 0xeae   :  { %6190 = vmatmul.mubr.msk.f32.vlgmr.msra.gmra.mrb[42].mxu1 %vm858_vm15, %v7065_v7  ;;  %6516 = vmatprep.subr.bf16.mxu1 %v6515_v31 }
 0xeaf   :  { %6518 = vmatpush3.bf16.msra.mxu1 %v6515_v31  ;;  %v6543_v48 = vpack.c.bf16 %v6647_v55, %v6646_v42  ;;  %v66_v31 = vld [vmem:[%s8290_s6 + $0x28] sm:$0xff] }
 0xf81   :  { %v6191_v27 = vpop.f32.mrb[42].mxu1 }
 0xf82   :  { %v2544_v7 = vpop.f32.mrb[43].mxu1 }
 0xf83   :  { %6200 = vmatprep.mubr.msk.f32.mxu0 %vm171_vm9, %v2544_v7  ;;  %v63_v7 = vld [vmem:[%s8290_s6 + $0x10] sm:$0xff] }
 0xf84   :  { %6201 = vmatmul.mubr.msk.f32.vlgmr.msra.gmra.mrb[46].mxu0 %vm171_vm9, %v6191_v27  ;;  %v6531_v27 = vpack.c.bf16 %v62_v26, %v61_v43 }
 0xf85   :  { %6510 = vmatpush3.bf16.msra.mxu0 %v6507_v1  ;;  %6211 = vmatprep.mubr.msk.f32.mxu0 %vm171_vm9, %v7287_v16  ;;  %v5541_v16 = vld [vmem:[%s8288_s11 + $0xb0] sm:$0xff] }
 0xf86   :  { %6512 = vmatprep.subr.bf16.mxu0 %v6511_v28 }
 0xf89   :  { %6514 = vmatpush3.bf16.msra.mxu0 %v6511_v28  ;;  %v64_v28 = vld [vmem:[%s8290_s6 + $0x18] sm:$0xff] }
 0xf8a   :  { %6532 = vmatprep.subr.bf16.mxu0 %v6531_v27  ;;  %v6535_v29 = vpack.c.bf16 %v64_v28, %v63_v7 }
 0xf8c   :  { %6212 = vmatmul.mubr.msk.f32.vlgmr.msra.gmra.mrb[46].mxu0 %vm171_vm9, %v7289_v17  ;;  %v6519_v17 = vpack.c.bf16 %v5542_v32, %v5541_v16  ;;  %v6547_v16 = vpack.c.bf16 %v66_v31, %v65_v30  ;;  %v3204_v32 = vpop.permute.xlu1 %3203 }
 0xf8d   :  { %6534 = vmatpush3.bf16.msra.mxu0 %v6531_v27  ;;  %vm3207_vm13 = vcmp.ne.s32.totalorder %v3204_v32, 0 }
 0xf8e   :  { %6520 = vmatprep.subr.bf16.mxu1 %v6519_v17  ;;  %6536 = vmatprep.subr.bf16.mxu0 %v6535_v29  ;;  %vm3209_vm14 = vmor %vm55_vm5, %vm3207_vm13 }
 0xf8f   :  { %6522 = vmatpush3.bf16.msra.mxu1 %v6519_v17  ;;  %v6742_v17 = vmov 7   ;;  %v5579_v34 = vsel %vm3209_vm14, 1.0, %v6735_v11 }
 0xf90   :  { %6524 = vmatprep.subr.bf16.mxu1 %v6523_v41  ;;  %6648 = vset.pattern.permute.xlu1 %v6742_v17  ;;  %v3206_v33 = vpop.permute.xlu1 %3205 }
 0xf91   :  { %6538 = vmatpush3.bf16.msra.mxu0 %v6535_v29  ;;  %vm3208_vm0 = vcmp.ne.s32.totalorder %v3206_v33, 0 }
 0xf92   :  { %6548 = vmatprep.subr.bf16.mxu0 %v6547_v16  ;;  %vm3210_vm1 = vmor %vm56_vm7, %vm3208_vm0 }
 0xf93   :  { %v5580_v3 = vsel %vm3210_vm1, 1.0, %v6735_v11 }
 0xf94   :  { %v6649_v35 = vpack.i.bf16 %v5580_v3, %v5579_v34 }
 0xf96   :  { %6650 = vperm.xlu1 %6648, %v6649_v35  }
0x1015   :  { %v6651_v5 = vpop.permute.xlu1 %6650 }
0x1016   :  { %v6653_v14 = vunpack.i.h.bf16 %v6651_v5 }
0x105f   :  { %v6213_v44 = vpop.f32.mrb[46].mxu0 }
0x1060   :  { %v2714_v47 = vadd.f32 %v6213_v44, %v2712_v38  ;;  %v2700_v49 = vpop.f32.mrb[47].mxu0 }
0x1061   :  { %v2713_v51 = vadd.f32 %v2712_v38, %v2700_v49  ;;  %v6743_v38 = vmov 8  }
0x1062   :  { %v2718_v58 = vmul.f32 0.01, %v2714_v47  ;;  %vm2716_vm3 = vcmp.gt.f32.partialorder %v2714_v47, 0.0  ;;  %6654 = vset.pattern.permute.xlu1 %v6743_v38 }
0x1063   :  { %vm2715_vm4 = vcmp.gt.f32.partialorder %v2713_v51, 0.0  ;;  %v2717_v60 = vmul.f32 0.01, %v2713_v51  ;;  %6656 = vperm.xlu1 %6654, %v6655_v37  }
0x1064   :  { %v2720_v63 = vsel %vm2716_vm3, %v2714_v47, %v2718_v58 }
0x1065   :  { %v2719_v61 = vsel %vm2715_vm4, %v2713_v51, %v2717_v60 }
0x1066   :  { %6222 = vmatprep.mubr.msk.f32.mxu1 %vm171_vm9, %v2719_v61 }
0x1067   :  { %6223 = vmatmul.mubr.msk.f32.vlgmr.msra.gmra.mrb[44].mxu1 %vm171_vm9, %v2720_v63  ;;  %6666 = vset.pattern.permute.xlu1 %v6740_v12 }
0x1068   :  { %6526 = vmatpush3.bf16.msra.mxu1 %v6523_v41 }
0x1069   :  { %6528 = vmatprep.subr.bf16.mxu1 %v6527_v62 }
0x106c   :  { %6530 = vmatpush3.bf16.msra.mxu1 %v6527_v62 }
0x106d   :  { %6540 = vmatprep.subr.bf16.mxu1 %v6539_v6 }
0x10e2   :  { %v6657_v13 = vpop.permute.xlu1 %6656 }
0x113a   :  { %v6224_v18 = vpop.f32.mrb[44].mxu1 }
0x113b   :  { %v2803_v20 = vadd.f32 %v6224_v18, %v2724_v15  ;;  %v2797_v54 = vpop.f32.mrb[45].mxu1  ;;  %v6652_v18 = vunpack.i.l.bf16 %v6651_v5 }
0x113c   :  { %v2798_v21 = vadd.f32 %v2797_v54, %v2724_v15  ;;  %v6659_v15 = vunpack.i.h.bf16 %v6657_v13  ;;  %v6658_v54 = vunpack.i.l.bf16 %v6657_v13 }
0x113d   :  { %v2809_v45 = vmul.f32 0.01, %v2803_v20  ;;  %vm2807_vm8 = vcmp.gt.f32.partialorder %v2803_v20, 0.0 }
0x113e   :  { %vm2806_vm12 = vcmp.gt.f32.partialorder %v2798_v21, 0.0  ;;  %v2808_v0 = vmul.f32 0.01, %v2798_v21 }
0x113f   :  { %v2811_v2 = vsel %vm2807_vm8, %v2803_v20, %v2809_v45 }
0x1140   :  { %v2810_v1 = vsel %vm2806_vm12, %v2798_v21, %v2808_v0  ;;  %vm3119_vm12 = vcmask 130048  }
0x1141   :  { %6233 = vmatprep.mubr.msk.f32.mxu1 %vm171_vm9, %v2810_v1 }
0x1142   :  { %6234 = vmatmul.mubr.msk.f32.vlgmr.msra.gmra.mrb[46].mxu1 %vm171_vm9, %v2811_v2 }
0x1143   :  { %6542 = vmatpush3.bf16.msra.mxu1 %v6539_v6  ;;  %6255 = vmatprep.mubr.msk.f32.mxu1 %vm171_vm9, %v2810_v1  ;;  %v7499_v6 = vand.u32 127, %v71_v22 }
0x1144   :  { %6544 = vmatprep.subr.bf16.mxu1 %v6543_v48 }
0x1145   :  { %vm3015_vm13 = vcmp.eq.s32.totalorder %v7499_v6, 5 }
0x1146   :  { %v5574_v20 = vsel %vm3015_vm13, 1.0, %v6735_v11 }
0x1147   :  { %6546 = vmatpush3.bf16.msra.mxu1 %v6543_v48  ;;  %v3240_v22 = vmul.f32 %v6659_v15, %v5574_v20  ;;  %v3239_v0 = vmul.f32 %v6658_v54, %v5574_v20  ;;  %v68_v48 = vld [vmem:[%s8291_s8] sm:$0x3]  ;;  %s6744_s8 = smov 124  }
0x1148   :  { %6551 = vmatprep.subr.bf16.mxu1 %v6739_v56  ;;  %v3118_v1 = vrot.slane %v68_v48, %v6948_v50 }
0x114a   :  { %6256 = vmatmul.mubr.msk.f32.vlgmr.msra.gmra.mrb[48].mxu1 %vm171_vm9, %v2811_v2  ;;  %v2922_v2 = vrot.slane %v68_v48, %v6891_v24 }
0x114b   :  { %6269 = vmatprep.mubr.msk.f32.mxu1 %vm6736_vm6, %v6735_v11 }
0x1215   :  { %v6235_v41 = vpop.f32.mrb[46].mxu1 }
0x1216   :  { %v2910_v44 = vadd.f32 %v6235_v41, %v2815_v40  ;;  %v2904_v46 = vpop.f32.mrb[47].mxu1  ;;  %v7529_v41 = vld [vmem:[%s8287_s2] sm:$0xff] }
0x1217   :  { %v2905_v47 = vadd.f32 %v2904_v46, %v2815_v40  ;;  %v7544_v46 = vld [vmem:[%s8287_s2 + $0x8] sm:$0xff] }
0x1218   :  { %v2916_v49 = vmul.f32 0.01, %v2910_v44  ;;  %vm2914_vm2 = vcmp.gt.f32.partialorder %v2910_v44, 0.0 }
0x1219   :  { %vm2913_vm3 = vcmp.gt.f32.partialorder %v2905_v47, 0.0  ;;  %v2915_v51 = vmul.f32 0.01, %v2905_v47 }
0x121a   :  { %v2918_v58 = vsel %vm2914_vm2, %v2910_v44, %v2916_v49  ;;  %v6717_v44 = vld [vmem:[%s8286_s3] sm:$0xff]  ;;  %v7559_v49 = vld [vmem:[%s8287_s2 + $0x10] sm:$0xff] }
0x121b   :  { %v2917_v57 = vsel %vm2913_vm3, %v2905_v47, %v2915_v51  ;;  %v6719_v47 = vld [vmem:[%s8286_s3 + $0x8] sm:$0xff]  ;;  %v6721_v51 = vld [vmem:[%s8286_s3 + $0x10] sm:$0xff] }
0x121c   :  { %6244 = vmatprep.mubr.msk.f32.mxu0 %vm171_vm9, %v2917_v57 }
0x121d   :  { %v6257_v60 = vpop.f32.mrb[48].mxu1  ;;  %6245 = vmatmul.mubr.msk.f32.vlgmr.msra.gmra.mrb[48].mxu0 %vm171_vm9, %v2918_v58  ;;  %vm3012_vm9 = vcmp.eq.s32.totalorder %v7499_v6, 4 }
0x121e   :  { %v3106_v61 = vadd.f32 %v6257_v60, %v3021_v53  ;;  %v3100_v62 = vpop.f32.mrb[49].mxu1  ;;  %6550 = vmatpush3.bf16.msra.mxu0 %v6547_v16  ;;  %v7504_v19 = vsel %vm3012_vm9, 1.0, %v6735_v11 }
0x121f   :  { %v3101_v25 = vadd.f32 %v3100_v62, %v3021_v53  ;;  %6555 = vmatprep.subr.bf16.mxu0 %v6739_v56  ;;  %v3226_v42 = vmul.f32 %v6653_v14, %v7504_v19  ;;  %v3225_v45 = vmul.f32 %v6652_v18, %v7504_v19 }
0x1220   :  { %v3112_v63 = vmul.f32 0.01, %v3106_v61  ;;  %vm3110_vm4 = vcmp.gt.f32.partialorder %v3106_v61, 0.0 }
0x1221   :  { %vm3109_vm8 = vcmp.gt.f32.partialorder %v3101_v25, 0.0  ;;  %v3111_v23 = vmul.f32 0.01, %v3101_v25  ;;  %v3242_v43 = vadd.f32 %v3240_v22, %v3226_v42  ;;  %v3241_v26 = vadd.f32 %v3239_v0, %v3225_v45 }
0x1222   :  { %v3114_v52 = vsel %vm3110_vm4, %v3106_v61, %v3112_v63 }
0x1223   :  { %v3113_v9 = vsel %vm3109_vm8, %v3101_v25, %v3111_v23  ;;  %vm3244_vm14 = vcmp.gt.f32.partialorder %v3242_v43, 0.0  ;;  %vm3243_vm0 = vcmp.gt.f32.partialorder %v3241_v26, 0.0 }
0x1224   :  { %6262 = vmatprep.mubr.msk.f32.mxu0 %vm3119_vm12, %v3113_v9 }
0x1225   :  { %6263 = vmatmul.mubr.msk.f32.vlgmr.msra.gmra.mrb[50].mxu0 %vm3119_vm12, %v3114_v52 }
0x1226   :  { %6282 = vmatprep.mubr.msk.f32.mxu0 %vm6736_vm6, %v6735_v11 }
0x12f0   :  { %v6246_v21 = vpop.f32.mrb[48].mxu0 }
0x12f1   :  { %v2995_v55 = vpop.f32.mrb[49].mxu0  ;;  %v3001_v29 = vadd.f32 %v6246_v21, %v2922_v2 }
0x12f2   :  { %v2996_v31 = vadd.f32 %v2995_v55, %v2922_v2 }
0x12f8   :  { %v6264_v27 = vpop.f32.mrb[50].mxu0 }
0x12f9   :  { %v3198_v7 = vadd.f32 %v6264_v27, %v3118_v1  ;;  %v3192_v28 = vpop.f32.mrb[51].mxu0 }
0x12fa   :  { %v3193_v30 = vadd.f32 %v3192_v28, %v3118_v1 }
0x12fb   :  { %v3246_v16 = vsel %vm3244_vm14, 0.0, %v3198_v7 }
0x12fc   :  { %v3248_v32 = vsub.f32 %v3001_v29, %v3246_v16  ;;  %v3245_v33 = vsel %vm3243_vm0, 0.0, %v3193_v30 }
0x12fd   :  { %v3247_v34 = vsub.f32 %v2996_v31, %v3245_v33 }
0x12fe   :  { %v3250_v3 = vsub.f32 %v3248_v32, %v3246_v16 }
0x12ff   :  { %v3249_v35 = vsub.f32 %v3247_v34, %v3245_v33 }
0x1300   :  { %v7514_v4 = vsub.f32 %v3250_v3, %v3246_v16 }
0x1301   :  { %v7516_v50 = vsub.f32 %v3249_v35, %v3245_v33 }
0x1303   :  { %v6660_v24 = vpack.i.bf16 %v7514_v4, %v7516_v50 }
0x1305   :  { %6661 = vrot.lane.b32.xlu1 %v6660_v24, %s6744_s8  ;;  %v6745_v24 = vmov 920167782  }
0x1377   :  { %v6662_v36 = vpop.permute.xlu1 %6661 }
0x1378   :  { %v6664_v37 = vunpack.i.h.bf16 %v6662_v36  ;;  %v6663_v39 = vunpack.i.l.bf16 %v6662_v36 }
0x137a   :  { %v6552_v40 = vpack.c.bf16 %v6664_v37, %v6663_v39  ;;  %v6746_v37 = vmov 1326507024  }
0x137c   :  { %6554 = vmatpush3.bf16.msk.msra.mxu1 %vm6971_vm10, %v6552_v40  ;;  %6558 = vmatpush3.bf16.msk.msra.mxu0 %vm6971_vm10, %v6552_v40 }
0x137d   :  { %6563 = vmatprep.subr.bf16.mxu0 %v6739_v56 }
0x137f   :  { %6270 = vmatmul.mubr.msk.f32.vlgmr.msra.gmra.mrb[50].mxu1 %vm529_vm11, %v7529_v41  ;;  %6283 = vmatmul.mubr.msk.f32.vlgmr.msra.gmra.mrb[52].mxu0 %vm529_vm11, %v6717_v44 }
0x1380   :  { %6272 = vmatprep.mubr.msk.f32.mxu1 %vm6736_vm6, %v6735_v11  ;;  %6285 = vmatprep.mubr.msk.f32.mxu0 %vm6736_vm6, %v6735_v11 }
0x1383   :  { %6273 = vmatmul.mubr.msk.f32.gmra.mrb[52].mxu1 %vm529_vm11, %v7544_v46  ;;  %6286 = vmatmul.mubr.msk.f32.gmra.mrb[54].mxu0 %vm529_vm11, %v6719_v47  ;;  %v6747_v47 = vmov 2102212464  }
0x1384   :  { %6275 = vmatprep.mubr.msk.f32.mxu1 %vm6736_vm6, %v6735_v11  ;;  %6288 = vmatprep.mubr.msk.f32.mxu0 %vm6736_vm6, %v6735_v11 }
0x1387   :  { %6276 = vmatmul.mubr.msk.f32.gmra.mrb[54].mxu1 %vm529_vm11, %v7559_v49  ;;  %6289 = vmatmul.mubr.msk.f32.gmra.mrb[56].mxu0 %vm529_vm11, %v6721_v51 }
0x1388   :  { %6304 = vmatprep.mubr.msk.f32.mxu0 %vm6736_vm6, %v6735_v11 }
0x1452   :  { %v3328_v53 = vpop.f32.mrb[50].mxu1  ;;  %v3408_v57 = vpop.f32.mrb[52].mxu0 }
0x1453   :  { %v7569_v58 = vsub.f32 %v3328_v53, %v3408_v57  ;;  %v7571_v60 = vmul.f32 %v3408_v57, %v3328_v53  ;;  %v6271_v61 = vpop.f32.mrb[51].mxu1  ;;  %v6284_v62 = vpop.f32.mrb[53].mxu0 }
0x1454   :  { %v6748_v62 = vmov 683565275  }
0x1455   :  { %v3431_v25 = vand.u32 2139095040, %v7569_v58  ;;  %v3428_v9 = vand.u32 2147483647, %v7569_v58 }
0x1456   :  { %v3333_v63 = vpop.f32.mrb[52].mxu1  ;;  %v3413_v23 = vpop.f32.mrb[54].mxu0 }
0x1457   :  { %v3432_v52 = vshrl.u32 %v3431_v25, 23  ;;  %v7575_v5 = vsub.f32 %v3333_v63, %v3413_v23  ;;  %v7577_v13 = vmul.f32 %v3413_v23, %v3333_v63  ;;  %v6274_v14 = vpop.f32.mrb[53].mxu1  ;;  %v6287_v15 = vpop.f32.mrb[55].mxu0  ;;  %v3435_v42 = vand.u32 8388607, %v3428_v9 }
0x1458   :  { %v6749_v63 = vmov 2475754826  }
0x1459   :  { %v5591_v18 = vadd.s32 4294967169, %v3432_v52  ;;  %v3534_v20 = vand.u32 2139095040, %v7575_v5  ;;  %v3531_v54 = vand.u32 2147483647, %v7575_v5  ;;  %v3436_v28 = vor.u32 8388608, %v3435_v42 }
0x145a   :  { %v3338_v21 = vpop.f32.mrb[54].mxu1  ;;  %v3418_v55 = vpop.f32.mrb[56].mxu0  ;;  %v6750_v52 = vmov 2131351028  }
0x145b   :  { %v3438_v22 = vadd.s32 1, %v5591_v18  ;;  %v3535_v45 = vshrl.u32 %v3534_v20, 23  ;;  %v7583_v0 = vsub.f32 %v3338_v21, %v3418_v55  ;;  %v7585_v48 = vmul.f32 %v3418_v55, %v3338_v21  ;;  %v6277_v1 = vpop.f32.mrb[55].mxu1  ;;  %v6290_v2 = vpop.f32.mrb[57].mxu0 }
0x145c   :  { %v3538_v43 = vand.u32 8388607, %v3531_v54  ;;  %v7592_v3 = vshll.u32 %v3436_v28, 8 }
0x145d   :  { %vm3439_vm1 = vcmp.gt.s32.totalorder %v3438_v22, 0  ;;  %v5595_v26 = vadd.s32 4294967169, %v3535_v45  ;;  %v3637_v27 = vand.u32 2139095040, %v7583_v0  ;;  %v3634_v35 = vand.u32 2147483647, %v7583_v0 }
0x145e   :  { %v3440_v7 = vsel %vm3439_vm1, %v3438_v22, 0  ;;  %v3539_v16 = vor.u32 8388608, %v3538_v43 }
0x145f   :  { %v3442_v29 = vand.u32 31, %v3440_v7  ;;  %v3541_v30 = vadd.s32 1, %v5595_v26  ;;  %v3638_v31 = vshrl.u32 %v3637_v27, 23  ;;  %v7590_v32 = vshrl.u32 %v3440_v7, 5 }
0x1460   :  { %v7597_v44 = vshll.u32 %v3539_v16, 8 }
0x1461   :  { %v3443_v33 = vsub.s32 32, %v3442_v29  ;;  %vm3542_vm2 = vcmp.gt.s32.totalorder %v3541_v30, 0  ;;  %v5599_v34 = vadd.s32 4294967169, %v3638_v31  ;;  %v3454_v51 = vshll.u32 %v6747_v47, %v3442_v29 }
0x1462   :  { %v3543_v40 = vsel %vm3542_vm2, %v3541_v30, 0  ;;  %v3457_v53 = vshll.u32 %v6745_v24, %v3442_v29  ;;  %vm3463_vm3 = vcmp.lt.s32.totalorder %v7590_v32, 4  ;;  %v3445_v25 = vshll.u32 %v6748_v62, %v3442_v29 }
0x1463   :  { %v3455_v36 = vshrl.u32 %v6745_v24, %v3443_v33  ;;  %v3458_v39 = vshrl.u32 %v6746_v37, %v3443_v33  ;;  %v7601_v57 = vand.u32 31, %v3543_v40  ;;  %v3644_v61 = vadd.s32 1, %v5599_v34 }
0x1464   :  { %v3446_v23 = vshrl.u32 %v6749_v63, %v3443_v33  ;;  %v3449_v14 = vshrl.u32 %v6750_v52, %v3443_v33  ;;  %v7607_v20 = vshrl.u32 %v3543_v40, 5  ;;  %v3444_v42 = vshrl.u32 %v6748_v62, %v3443_v33 }
0x1465   :  { %v3456_v15 = vor.u32 %v3455_v36, %v3454_v51  ;;  %v3459_v18 = vor.u32 %v3458_v39, %v3457_v53  ;;  %v3546_v21 = vsub.s32 32, %v7601_v57  ;;  %v3557_v55 = vshll.u32 %v6747_v47, %v7601_v57 }
0x1466   :  { %vm3645_vm4 = vcmp.gt.s32.totalorder %v3644_v61, 0  ;;  %v3448_v22 = vshll.u32 %v6749_v63, %v3442_v29  ;;  %v3560_v1 = vshll.u32 %v6745_v24, %v7601_v57  ;;  %v3447_v27 = vor.u32 %v3446_v23, %v3445_v25 }
0x1467   :  { %v3558_v45 = vshrl.u32 %v6745_v24, %v3546_v21  ;;  %v3561_v2 = vshrl.u32 %v6746_v37, %v3546_v21  ;;  %v3646_v43 = vsel %vm3645_vm4, %v3644_v61, 0  ;;  %v3452_v28 = vshrl.u32 %v6747_v47, %v3443_v33 }
0x1468   :  { %v7618_v26 = vand.u32 31, %v3646_v43  ;;  %v3450_v7 = vor.u32 %v3449_v14, %v3448_v22  ;;  %v3469_v30 = vsel %vm3463_vm3, %v3456_v15, 920167782  ;;  %v3473_v31 = vsel %vm3463_vm3, %v3459_v18, 1326507024 }
0x1469   :  { %vm3566_vm8 = vcmp.lt.s32.totalorder %v7607_v20, 4  ;;  %v3451_v16 = vshll.u32 %v6750_v52, %v3442_v29  ;;  %v3559_v34 = vor.u32 %v3558_v45, %v3557_v55  ;;  %v7627_v36 = vshrl.u32 %v3646_v43, 5 }
0x146a   :  { %v7630_v39 = vsub.s32 32, %v7618_v26  ;;  %vm3460_vm12 = vcmp.lt.s32.totalorder %v7590_v32, 1  ;;  %v3562_v40 = vor.u32 %v3561_v2, %v3560_v1  ;;  %vm3461_vm9 = vcmp.lt.s32.totalorder %v7590_v32, 2 }
0x146b   :  { %v3453_v33 = vor.u32 %v3452_v28, %v3451_v16  ;;  %vm3462_vm13 = vcmp.lt.s32.totalorder %v7590_v32, 3  ;;  %v3660_v51 = vshll.u32 %v6747_v47, %v7618_v26  ;;  %v7639_v29 = vshll.u32 %v6745_v24, %v7618_v26 }
0x146c   :  { %v3468_v53 = vsel %vm3460_vm12, %v3447_v27, %v3450_v7  ;;  %v3474_v61 = vsel %vm3462_vm13, %v3456_v15, %v3473_v31  ;;  %v3464_v25 = vsel %vm3460_vm12, %v3444_v42, %v3447_v27  ;;  %v3572_v55 = vsel %vm3566_vm8, %v3559_v34, 920167782 }
0x146d   :  { %v3465_v23 = vsel %vm3463_vm3, %v3453_v33, 2102212464  ;;  %v3470_v14 = vsel %vm3462_vm13, %v3453_v33, %v3469_v30  ;;  %v3472_v18 = vsel %vm3460_vm12, %v3450_v7, %v3453_v33  ;;  %v3661_v22 = vshrl.u32 %v6745_v24, %v7630_v39 }
0x146e   :  { %v3466_v45 = vsel %vm3462_vm13, %v3450_v7, %v3465_v23  ;;  %v3471_v1 = vsel %vm3461_vm9, %v3468_v53, %v3470_v14  ;;  %v3576_v2 = vsel %vm3566_vm8, %v3562_v40, 1326507024  ;;  %v3475_v15 = vsel %vm3461_vm9, %v3472_v18, %v3474_v61 }
0x146f   :  { %v7654_v42 = vmul.u32.u64.low %v7592_v3, %v3471_v1  ;;  %v7655_v43 = vmul.u32.u64.high %v7592_v3, %v3471_v1, %v7654_v42  ;;  %v3664_v27 = vshrl.u32 %v6746_v37, %v7630_v39  ;;  %v3467_v7 = vsel %vm3461_vm9, %v3464_v25, %v3466_v45 }
0x1470   :  { %v7663_v28 = vmul.u32.u64.low %v7592_v3, %v3475_v15  ;;  %v7664_v30 = vmul.u32.u64.high %v7592_v3, %v3475_v15, %v7663_v28  ;;  %vm3669_vm14 = vcmp.lt.s32.totalorder %v7627_v36, 4  ;;  %v3547_v31 = vshrl.u32 %v6748_v62, %v3546_v21 }
0x1471   :  { %v3548_v16 = vshll.u32 %v6748_v62, %v7601_v57  ;;  %v3549_v40 = vshrl.u32 %v6749_v63, %v3546_v21  ;;  %v3551_v33 = vshll.u32 %v6749_v63, %v7601_v57  ;;  %v3662_v53 = vor.u32 %v3661_v22, %v3660_v51 }
0x1472   :  { %v3552_v32 = vshrl.u32 %v6750_v52, %v3546_v21  ;;  %v3554_v61 = vshll.u32 %v6750_v52, %v7601_v57  ;;  %v3555_v25 = vshrl.u32 %v6747_v47, %v3546_v21  ;;  %v3483_v23 = vmul.u32 %v7592_v3, %v3467_v7 }
0x1473   :  { %v3486_v14 = vadd.s32 1, %v7655_v43  ;;  %v3550_v18 = vor.u32 %v3549_v40, %v3548_v16  ;;  %vm3563_vm0 = vcmp.lt.s32.totalorder %v7607_v20, 1  ;;  %vm3485_vm1 = vc.u32 %v7664_v30, %v7654_v42 }
0x1474   :  { %v3553_v45 = vor.u32 %v3552_v32, %v3551_v33  ;;  %v3556_v1 = vor.u32 %v3555_v25, %v3554_v61  ;;  %vm3565_vm2 = vcmp.lt.s32.totalorder %v7607_v20, 3  ;;  %vm3564_vm3 = vcmp.lt.s32.totalorder %v7607_v20, 2 }
0x1475   :  { %v3487_v51 = vsel %vm3485_vm1, %v3486_v14, %v7655_v43  ;;  %v3567_v57 = vsel %vm3563_vm0, %v3547_v31, %v3550_v18  ;;  %v3577_v3 = vsel %vm3565_vm2, %v3559_v34, %v3576_v2  ;;  %v3665_v28 = vor.u32 %v3664_v27, %v7639_v29 }
0x1476   :  { %v3488_v21 = vadd.s32 %v3487_v51, %v3483_v23  ;;  %v3568_v22 = vsel %vm3566_vm8, %v3556_v1, 2102212464  ;;  %v3571_v15 = vsel %vm3563_vm0, %v3550_v18, %v3553_v45  ;;  %v3573_v7 = vsel %vm3565_vm2, %v3556_v1, %v3572_v55 }
0x1477   :  { %v3569_v16 = vsel %vm3565_vm2, %v3553_v45, %v3568_v22  ;;  %v3574_v40 = vsel %vm3564_vm3, %v3571_v15, %v3573_v7  ;;  %v3575_v43 = vsel %vm3563_vm0, %v3553_v45, %v3556_v1  ;;  %v3651_v34 = vshll.u32 %v6748_v62, %v7618_v26 }
0x1478   :  { %v3489_v33 = vadd.s32 536870912, %v3488_v21  ;;  %v3570_v32 = vsel %vm3564_vm3, %v3567_v57, %v3569_v16  ;;  %v3578_v61 = vsel %vm3564_vm3, %v3575_v43, %v3577_v3  ;;  %v3652_v20 = vshrl.u32 %v6749_v63, %v7630_v39 }
0x1479   :  { %v7697_v2 = vmul.u32.u64.low %v7597_v44, %v3578_v61  ;;  %v7698_v31 = vmul.u32.u64.high %v7597_v44, %v3578_v61, %v7697_v2  ;;  %v7701_v25 = vmul.u32.u64.low %v7597_v44, %v3574_v40  ;;  %v7702_v55 = vmul.u32.u64.high %v7597_v44, %v3574_v40, %v7701_v25 }
0x147a   :  { %v7705_v29 = vshrl.u32 %v3489_v33, 30  ;;  %v3654_v27 = vshll.u32 %v6749_v63, %v7618_v26  ;;  %v3641_v23 = vand.u32 8388607, %v3634_v35  ;;  %v3655_v14 = vshrl.u32 %v6750_v52, %v7630_v39 }
0x147b   :  { %v3657_v18 = vshll.u32 %v6750_v52, %v7618_v26  ;;  %v3658_v45 = vshrl.u32 %v6747_v47, %v7630_v39  ;;  %v3675_v1 = vsel %vm3669_vm14, %v3662_v53, 920167782  ;;  %v3679_v51 = vsel %vm3669_vm14, %v3665_v28, 1326507024 }
0x147c   :  { %v3491_v57 = vshll.u32 %v7705_v29, 30  ;;  %v3586_v3 = vmul.u32 %v7597_v44, %v3570_v32  ;;  %vm3588_vm4 = vc.u32 %v7698_v31, %v7701_v25  ;;  %v3589_v22 = vadd.s32 1, %v7702_v55 }
0x147d   :  { %v3653_v15 = vor.u32 %v3652_v20, %v3651_v34  ;;  %v3656_v26 = vor.u32 %v3655_v14, %v3654_v27  ;;  %v3659_v16 = vor.u32 %v3658_v45, %v3657_v18  ;;  %vm3666_vm8 = vcmp.lt.s32.totalorder %v7627_v36, 1 }
0x147e   :  { %v3492_v7 = vsub.s32 %v3488_v21, %v3491_v57  ;;  %vm3668_vm12 = vcmp.lt.s32.totalorder %v7627_v36, 3  ;;  %v3590_v40 = vsel %vm3588_vm4, %v3589_v22, %v7702_v55  ;;  %v3642_v33 = vor.u32 8388608, %v3641_v23 }
0x147f   :  { %v3591_v43 = vadd.s32 %v3590_v40, %v3586_v3  ;;  %vm3667_vm9 = vcmp.lt.s32.totalorder %v7627_v36, 2  ;;  %v3674_v44 = vsel %vm3666_vm8, %v3653_v15, %v3656_v26  ;;  %v3676_v32 = vsel %vm3668_vm12, %v3659_v16, %v3675_v1 }
0x1480   :  { %v3494_v28 = vsub.s32 0, %v3492_v7  ;;  %v3678_v21 = vsel %vm3666_vm8, %v3656_v26, %v3659_v16  ;;  %v3680_v61 = vsel %vm3668_vm12, %v3662_v53, %v3679_v51  ;;  %v3650_v2 = vshrl.u32 %v6748_v62, %v7630_v39 }
0x1481   :  { %v3592_v55 = vadd.s32 536870912, %v3591_v43  ;;  %v3671_v20 = vsel %vm3669_vm14, %v3659_v16, 2102212464  ;;  %v3677_v23 = vsel %vm3667_vm9, %v3674_v44, %v3676_v32  ;;  %v3681_v14 = vsel %vm3667_vm9, %v3678_v21, %v3680_v61 }
0x1482   :  { %v5592_v34 = vmin.u32 %v3494_v28, %v3492_v7  ;;  %v3682_v18 = vshll.u32 %v3642_v33, 8  ;;  %v3670_v53 = vsel %vm3666_vm8, %v3650_v2, %v3653_v15  ;;  %v3672_v3 = vsel %vm3668_vm12, %v3656_v26, %v3671_v20 }
0x1483   :  { %v7748_v45 = vshrl.u32 %v3592_v55, 30  ;;  %v3484_v33 = vadd.s32 %v7654_v42, %v7664_v30  ;;  %v3673_v32 = vsel %vm3667_vm9, %v3670_v53, %v3672_v3  ;;  %v3514_v3 = vsub.s32 4, %v7705_v29 }
0x1484   :  { %v3496_v27 = vclz %v5592_v34  ;;  %v7752_v51 = vmul.u32.u64.low %v3682_v18, %v3681_v14  ;;  %v7753_v39 = vmul.u32.u64.high %v3682_v18, %v3681_v14, %v7752_v51  ;;  %v3689_v20 = vmul.u32 %v3682_v18, %v3673_v32 }
0x1485   :  { %v3594_v57 = vshll.u32 %v7748_v45, 30  ;;  %v7758_v22 = vmul.u32.u64.low %v3682_v18, %v3677_v23  ;;  %v7759_v16 = vmul.u32.u64.high %v3682_v18, %v3677_v23, %v7758_v22  ;;  %v3587_v18 = vadd.s32 %v7701_v25, %v7698_v31 }
0x1486   :  { %v5593_v1 = vadd.s32 4294967294, %v3496_v27  ;;  %vm3430_vm1 = vcmp.lt.s32.totalorder %v7569_v58, 0  ;;  %vm3429_vm2 = vcmp.le.f32.partialorder %v3428_v9, 0.7853982  ;;  %vm3533_vm3 = vcmp.lt.s32.totalorder %v7575_v5, 0 }
0x1487   :  { %v3595_v28 = vsub.s32 %v3591_v43, %v3594_v57  ;;  %vm3691_vm14 = vc.u32 %v7753_v39, %v7758_v22  ;;  %v3692_v26 = vadd.s32 1, %v7759_v16  ;;  %vm7785_vm12 = vcmp.le.f32.partialorder %v3531_v54, 0.7853982 }
0x1488   :  { %vm5594_vm13 = vcmp.lt.s32.totalorder %v5593_v1, 0 }
0x1489   :  { %v3499_v40 = vsel %vm5594_vm13, 0, %v5593_v1  ;;  %v3597_v61 = vsub.s32 0, %v3595_v28  ;;  %v3693_v42 = vsel %vm3691_vm14, %v3692_v26, %v7759_v16  ;;  %v3515_v26 = vsel %vm3430_vm1, %v3514_v3, %v7705_v29 }
0x148a   :  { %v3500_v44 = vsub.s32 32, %v3499_v40  ;;  %v3504_v15 = vsub.s32 4294967266, %v3499_v40  ;;  %v3501_v21 = vshll.u32 %v3492_v7, %v3499_v40  ;;  %v3694_v23 = vadd.s32 %v3693_v42, %v3689_v20 }
0x148b   :  { %v5596_v55 = vmin.u32 %v3597_v61, %v3595_v28 }
0x148c   :  { %v3502_v34 = vshrl.u32 %v3484_v33, %v3500_v44  ;;  %v3505_v2 = vadd.s32 127, %v3504_v15  ;;  %v3695_v1 = vadd.s32 536870912, %v3694_v23 }
0x148d   :  { %v3599_v30 = vclz %v5596_v55 }
0x148e   :  { %v3503_v43 = vor.u32 %v3502_v34, %v3501_v21  ;;  %v3506_v27 = vshll.u32 %v3505_v2, 23  ;;  %v7770_v51 = vshrl.u32 %v3695_v1, 30 }
0x148f   :  { %v5597_v36 = vadd.s32 4294967294, %v3599_v30 }
0x1490   :  { %v3507_v14 = vor.u32 4788187, %v3506_v27  ;;  %v3510_v53 = vcvt.s32.f32 %v3503_v43  ;;  %v3697_v16 = vshll.u32 %v7770_v51, 30  ;;  %v3517_v43 = vsel %vm3429_vm2, 0, %v3515_v26 }
0x1491   :  { %vm5598_vm0 = vcmp.lt.s32.totalorder %v5597_v36, 0 }
0x1492   :  { %v3508_v7 = vand.u32 2147483647, %v3507_v14  ;;  %v3602_v40 = vsel %vm5598_vm0, 0, %v5597_v36  ;;  %v3698_v34 = vsub.s32 %v3694_v23, %v3697_v16  ;;  %v3521_v23 = vand.u32 3, %v3517_v43 }
0x1493   :  { %v3603_v33 = vsub.s32 32, %v3602_v40  ;;  %v3607_v44 = vsub.s32 4294967266, %v3602_v40  ;;  %v3604_v32 = vshll.u32 %v3595_v28, %v3602_v40  ;;  %v3830_v36 = vadd.s32 3, %v3517_v43 }
0x1494   :  { %v3511_v57 = vmul.f32 %v3510_v53, %v3508_v7  ;;  %v3700_v20 = vsub.s32 0, %v3698_v34  ;;  %v3617_v7 = vsub.s32 4, %v7748_v45  ;;  %vm3523_vm8 = vcmp.eq.s32.totalorder %v3521_v23, 0 }
0x1495   :  { %v3605_v21 = vshrl.u32 %v3587_v18, %v3603_v33  ;;  %v3608_v61 = vadd.s32 127, %v3607_v44  ;;  %v3831_v53 = vand.u32 3, %v3830_v36  ;;  %v3690_v18 = vadd.s32 %v7758_v22, %v7753_v39 }
0x1496   :  { %v3512_v15 = vxor.u32 2147483648, %v3511_v57  ;;  %v5600_v42 = vmin.u32 %v3700_v20, %v3698_v34  ;;  %vm3526_vm9 = vcmp.eq.s32.totalorder %v3521_v23, 2  ;;  %vm3522_vm0 = vcmp.lt.s32.totalorder %v3521_v23, 2 }
0x1497   :  { %v3606_v31 = vor.u32 %v3605_v21, %v3604_v32  ;;  %v3609_v25 = vshll.u32 %v3608_v61, 23  ;;  %vm3833_vm13 = vcmp.eq.s32.totalorder %v3831_v53, 0  ;;  %vm3836_vm14 = vcmp.eq.s32.totalorder %v3831_v53, 2 }
0x1498   :  { %v3513_v2 = vsel %vm3430_vm1, %v3512_v15, %v3511_v57  ;;  %v3702_v14 = vclz %v5600_v42  ;;  %v3618_v15 = vsel %vm3533_vm3, %v3617_v7, %v7748_v45  ;;  %vm3520_vm1 = vweird.f32 %v7569_v58 }
0x1499   :  { %v3516_v55 = vsel %vm3429_vm2, %v7569_v58, %v3513_v2  ;;  %v3610_v27 = vor.u32 4788187, %v3609_v25  ;;  %v3613_v30 = vcvt.s32.f32 %v3606_v31  ;;  %v3620_v22 = vsel %vm7785_vm12, 0, %v3618_v15 }
0x149a   :  { %6685 = vcosq.f32 %v3516_v55  ;;  %v5601_v9 = vadd.s32 4294967294, %v3702_v14  ;;  %vm3832_vm2 = vcmp.lt.s32.totalorder %v3831_v53, 2  ;;  %v3720_v7 = vsub.s32 4, %v7770_v51 }
0x149b   :  { %6687 = vsinq.f32 %v3516_v55  ;;  %v3611_v28 = vand.u32 2147483647, %v3610_v27 }
0x149c   :  { %vm5602_vm4 = vcmp.lt.s32.totalorder %v5601_v9, 0 }
0x149d   :  { %v3614_v1 = vmul.f32 %v3613_v30, %v3611_v28  ;;  %v3705_v3 = vsel %vm5602_vm4, 0, %v5601_v9  ;;  %v3934_v28 = vadd.s32 3, %v3620_v22  ;;  %vm3636_vm4 = vcmp.lt.s32.totalorder %v7583_v0, 0 }
0x149e   :  { %v3706_v33 = vsub.s32 32, %v3705_v3  ;;  %v3710_v44 = vsub.s32 4294967266, %v3705_v3  ;;  %v3707_v21 = vshll.u32 %v3698_v34, %v3705_v3 }
0x149f   :  { %v3615_v29 = vxor.u32 2147483648, %v3614_v1 }
0x14a0   :  { %v3708_v2 = vshrl.u32 %v3690_v18, %v3706_v33  ;;  %v3711_v26 = vadd.s32 127, %v3710_v44  ;;  %v7812_v18 = vld [vmem:[%s8283_s1] sm:$0xff] }
0x14a1   :  { %v3616_v40 = vsel %vm3533_vm3, %v3615_v29, %v3614_v1  ;;  %v3624_v1 = vand.u32 3, %v3620_v22  ;;  %v3935_v29 = vand.u32 3, %v3934_v28  ;;  %vm7804_vm3 = vcmp.le.f32.partialorder %v3634_v35, 0.7853982 }
0x14a2   :  { %v3619_v32 = vsel %vm7785_vm12, %v7575_v5, %v3616_v40  ;;  %v3709_v31 = vor.u32 %v3708_v2, %v3707_v21  ;;  %v3712_v45 = vshll.u32 %v3711_v26, 23 }
0x14a3   :  { %6689 = vcosq.f32 %v3619_v32  ;;  %vm3626_vm12 = vcmp.eq.s32.totalorder %v3624_v1, 0 }
0x14a4   :  { %v6686_v16 = vpop.eup %6685  ;;  %6691 = vsinq.f32 %v3619_v32  ;;  %v3713_v27 = vor.u32 4788187, %v3712_v45  ;;  %v3716_v36 = vcvt.s32.f32 %v3709_v31 }
0x14a5   :  { %v6688_v54 = vpop.eup %6687  ;;  %v3527_v61 = vxor.u32 2147483648, %v6686_v16 }
0x14a6   :  { %v3524_v55 = vxor.u32 2147483648, %v6688_v54  ;;  %v3714_v14 = vand.u32 2147483647, %v3713_v27 }
0x14a7   :  { %v3528_v39 = vsel %vm3526_vm9, %v3527_v61, %v6688_v54  ;;  %v3838_v34 = vsel %vm3836_vm14, %v3527_v61, %v6688_v54  ;;  %vm3629_vm9 = vcmp.eq.s32.totalorder %v3624_v1, 2  ;;  %vm3940_vm14 = vcmp.eq.s32.totalorder %v3935_v29, 2 }
0x14a8   :  { %v3525_v25 = vsel %vm3523_vm8, %v6686_v16, %v3524_v55  ;;  %v3835_v20 = vsel %vm3833_vm13, %v6686_v16, %v3524_v55  ;;  %v3717_v9 = vmul.f32 %v3716_v36, %v3714_v14  ;;  %vm3625_vm8 = vcmp.lt.s32.totalorder %v3624_v1, 2 }
0x14a9   :  { %v3529_v43 = vsel %vm3522_vm0, %v3525_v25, %v3528_v39  ;;  %v3839_v30 = vsel %vm3832_vm2, %v3835_v20, %v3838_v34  ;;  %v3721_v16 = vsel %vm3636_vm4, %v3720_v7, %v7770_v51  ;;  %vm3937_vm13 = vcmp.eq.s32.totalorder %v3935_v29, 0  ;;  %v6723_v25 = vld [vmem:[%s8283_s1 + $0x8] sm:$0xff] }
0x14aa   :  { %v3530_v42 = vsel %vm3520_vm1, nan, %v3529_v43  ;;  %v3840_v23 = vsel %vm3520_vm1, nan, %v3839_v30  ;;  %v3718_v53 = vxor.u32 2147483648, %v3717_v9  ;;  %vm3623_vm0 = vweird.f32 %v7575_v5 }
0x14ab   :  { %4058 = vrot.lane.b32.xlu0 %v3530_v42, %s6741_s28  ;;  %v4070_v33 = vmul.f32 %v7812_v18, %v3840_v23  ;;  %v3723_v51 = vsel %vm7804_vm3, 0, %v3721_v16  ;;  %v4124_v26 = vmul.f32 %v7812_v18, %v3530_v42  ;;  %vm3936_vm1 = vcmp.lt.s32.totalorder %v3935_v29, 2 }
0x14ac   :  { %v3719_v35 = vsel %vm3636_vm4, %v3718_v53, %v3717_v9  ;;  %v4038_v22 = vadd.s32 3, %v3723_v51  ;;  %v3727_v5 = vand.u32 3, %v3723_v51 }
0x14ad   :  { %v6690_v57 = vpop.eup %6689  ;;  %v3722_v32 = vsel %vm7804_vm3, %v7583_v0, %v3719_v35 }
0x14ae   :  { %v6692_v3 = vpop.eup %6691  ;;  %v3630_v40 = vxor.u32 2147483648, %v6690_v57  ;;  %6693 = vcosq.f32 %v3722_v32  ;;  %v4039_v45 = vand.u32 3, %v4038_v22  ;;  %vm3729_vm2 = vcmp.eq.s32.totalorder %v3727_v5, 0 }
0x14af   :  { %4112 = vrot.lane.b32.xlu0 %v3840_v23, %s6741_s28  ;;  %v3627_v44 = vxor.u32 2147483648, %v6692_v3  ;;  %6695 = vsinq.f32 %v3722_v32  ;;  %vm3732_vm3 = vcmp.eq.s32.totalorder %v3727_v5, 2 }
0x14b0   :  { %v3631_v15 = vsel %vm3629_vm9, %v3630_v40, %v6692_v3  ;;  %v3942_v61 = vsel %vm3940_vm14, %v3630_v40, %v6692_v3  ;;  %vm4044_vm4 = vcmp.eq.s32.totalorder %v4039_v45, 2  ;;  %vm4040_vm9 = vcmp.lt.s32.totalorder %v4039_v45, 2 }
0x14b1   :  { %v3628_v21 = vsel %vm3626_vm12, %v6690_v57, %v3627_v44  ;;  %v3939_v54 = vsel %vm3937_vm13, %v6690_v57, %v3627_v44  ;;  %vm3728_vm12 = vcmp.lt.s32.totalorder %v3727_v5, 2  ;;  %vm3726_vm13 = vweird.f32 %v7583_v0  ;;  %v6724_v57 = vld [vmem:[%s8283_s1 + $0x10] sm:$0xff] }
0x14b2   :  { %v3632_v2 = vsel %vm3625_vm8, %v3628_v21, %v3631_v15  ;;  %v3943_v39 = vsel %vm3936_vm1, %v3939_v54, %v3942_v61  ;;  %vm4041_vm8 = vcmp.eq.s32.totalorder %v4039_v45, 0  ;;  %vm4052_vm14 = vcmp.eq.s32.totalorder %v7499_v6, 1 }
0x14b3   :  { %4076 = vrot.lane.b32.xlu0 %v4070_v33, %s6741_s28  ;;  %v3633_v55 = vsel %vm3623_vm0, nan, %v3632_v2  ;;  %v3944_v31 = vsel %vm3623_vm0, nan, %v3943_v39  ;;  %vm4049_vm0 = vcmp.eq.s32.totalorder %v7499_v6, 0  ;;  %vm3009_vm1 = vcmp.eq.s32.totalorder %v7499_v6, 3 }
0x14b4   :  { %4060 = vrot.lane.b32.xlu1 %v3633_v55, %s6741_s28  ;;  %v4071_v20 = vmul.f32 %v6723_v25, %v3944_v31  ;;  %v4125_v28 = vmul.f32 %v6723_v25, %v3633_v55 }
0x14b7   :  { %4130 = vrot.lane.b32.xlu0 %v4124_v26, %s6741_s28 }
0x14b8   :  { %4114 = vrot.lane.b32.xlu1 %v3944_v31, %s6741_s28  ;;  %v6694_v34 = vpop.eup %6693 }
0x14b9   :  { %v6696_v43 = vpop.eup %6695  ;;  %v3733_v27 = vxor.u32 2147483648, %v6694_v34 }
0x14ba   :  { %v3730_v42 = vxor.u32 2147483648, %v6696_v43 }
0x14bb   :  { %v3734_v30 = vsel %vm3732_vm3, %v3733_v27, %v6696_v43  ;;  %v4046_v14 = vsel %vm4044_vm4, %v3733_v27, %v6696_v43 }
0x14bc   :  { %4078 = vrot.lane.b32.xlu1 %v4071_v20, %s6741_s28  ;;  %v3731_v36 = vsel %vm3729_vm2, %v6694_v34, %v3730_v42  ;;  %v4043_v1 = vsel %vm4041_vm8, %v6694_v34, %v3730_v42  ;;  %vm3006_vm2 = vcmp.eq.s32.totalorder %v7499_v6, 2 }
0x14bd   :  { %v3735_v9 = vsel %vm3728_vm12, %v3731_v36, %v3734_v30  ;;  %v4047_v7 = vsel %vm4040_vm9, %v4043_v1, %v4046_v14  ;;  %v7860_v30 = vsel %vm4052_vm14, 1.0, %v6735_v11  ;;  %v7863_v36 = vsel %vm4049_vm0, 1.0, %v6735_v11 }
0x14be   :  { %v3736_v23 = vsel %vm3726_vm13, nan, %v3735_v9  ;;  %v4048_v29 = vsel %vm3726_vm13, nan, %v4047_v7 }
0x14bf   :  { %4062 = vrot.lane.b32.xlu0 %v3736_v23, %s6741_s28  ;;  %v4072_v58 = vmul.f32 %v6724_v57, %v4048_v29  ;;  %v4126_v53 = vmul.f32 %v6724_v57, %v3736_v23 }
0x14c0   :  { %4132 = vrot.lane.b32.xlu1 %v4125_v28, %s6741_s28 }
0x14c3   :  { %4080 = vrot.lane.b32.xlu0 %v4072_v58, %s6741_s28 }
0x14c4   :  { %4116 = vrot.lane.b32.xlu1 %v4048_v29, %s6741_s28 }
0x14c8   :  { %4134 = vrot.lane.b32.xlu1 %v4126_v53, %s6741_s28 }
0x151d   :  { %v4059_v3 = vpop.permute.xlu0 %4058 }
0x151e   :  { %v4067_v40 = vmul.f32 %v7812_v18, %v4059_v3 }
0x1521   :  { %v4113_v0 = vpop.permute.xlu0 %4112 }
0x1522   :  { %v4121_v35 = vmul.f32 %v7812_v18, %v4113_v0 }
0x1525   :  { %v4077_v33 = vpop.permute.xlu0 %4076 }
0x1526   :  { %v4085_v44 = vadd.f32 %v4077_v33, %v4067_v40  ;;  %v4061_v16 = vpop.permute.xlu1 %4060 }
0x1527   :  { %v4068_v2 = vmul.f32 %v6723_v25, %v4061_v16 }
0x1528   :  { %v4088_v15 = vmul.f32 %v4085_v44, %v7571_v60 }
0x1529   :  { %v4131_v32 = vpop.permute.xlu0 %4130 }
0x152a   :  { %v4139_v21 = vsub.f32 %v4121_v35, %v4131_v32  ;;  %4093 = vperm.xlu0 %6665, %v4088_v15   ;;  %v4115_v54 = vpop.permute.xlu1 %4114 }
0x152b   :  { %v4122_v55 = vmul.f32 %v6723_v25, %v4115_v54 }
0x152c   :  { %v4142_v61 = vmul.f32 %v4139_v21, %v7571_v60 }
0x152e   :  { %4147 = vperm.xlu1 %6666, %v4142_v61   ;;  %v4079_v51 = vpop.permute.xlu1 %4078 }
0x152f   :  { %v4086_v26 = vadd.f32 %v4079_v51, %v4068_v2 }
0x1531   :  { %v4089_v39 = vmul.f32 %v4086_v26, %v7577_v13  ;;  %v4063_v18 = vpop.permute.xlu0 %4062 }
0x1532   :  { %v4133_v22 = vpop.permute.xlu1 %4132  ;;  %v4069_v20 = vmul.f32 %v6724_v57, %v4063_v18 }
0x1533   :  { %v4140_v31 = vsub.f32 %v4122_v55, %v4133_v22  ;;  %4098 = vperm.xlu1 %6666, %v4089_v39   ;;  %v6755_v39 = vmov 6  }
0x1535   :  { %v4143_v5 = vmul.f32 %v4140_v31, %v7577_v13  ;;  %v4081_v34 = vpop.permute.xlu0 %4080 }
0x1536   :  { %v4117_v45 = vpop.permute.xlu1 %4116  ;;  %v4087_v27 = vadd.f32 %v4081_v34, %v4069_v20 }
0x1537   :  { %4152 = vperm.xlu0 %6665, %v4143_v5   ;;  %v4123_v43 = vmul.f32 %v6724_v57, %v4117_v45 }
0x1538   :  { %v4090_v42 = vmul.f32 %v4087_v27, %v7585_v48 }
0x153a   :  { %v4135_v60 = vpop.permute.xlu1 %4134  ;;  %4103 = vperm.xlu1 %6666, %v4090_v42  }
0x153b   :  { %v4141_v28 = vsub.f32 %v4123_v43, %v4135_v60 }
0x153d   :  { %v4144_v25 = vmul.f32 %v4141_v28, %v7585_v48 }
0x153f   :  { %4157 = vperm.xlu0 %6665, %v4144_v25   ;;  %v7905_v25 = vsel %vm3009_vm1, 1.0, %v6735_v11 }
0x1543   :  { %4279 = vrot.lane.b32.xlu0 %v7516_v50, %s6751_s4 }
0x1547   :  { %4281 = vrot.lane.b32.xlu0 %v7514_v4, %s6751_s4 }
0x1563   :  { %4166 = vxpose.xlu1.b32.start [1/3] (short) (narrow) %v7529_v41, 16 }
0x1567   :  { %4167 = vxpose.xlu1.b32.cont [2/3] (short) (narrow) %v7544_v46, 16 }
0x156b   :  { %4168 = vxpose.xlu1.b32.end [3/3] (short) (narrow) %v7559_v49, 16 }
0x1589   :  { %6667 = vset.pattern.permute.xlu1 %v6742_v17 }
0x15a9   :  { %v4094_v48 = vpop.permute.xlu0 %4093 }
0x15aa   :  { %v4106_v1 = vmul.f32 %v7863_v36, %v4094_v48 }
0x15ad   :  { %v4148_v13 = vpop.permute.xlu1 %4147 }
0x15ae   :  { %v4160_v41 = vmul.f32 %v7860_v30, %v4148_v13 }
0x15b0   :  { %v4163_v7 = vadd.f32 %v4160_v41, %v4106_v1 }
0x15b2   :  { %v4099_v14 = vpop.permute.xlu1 %4098 }
0x15b3   :  { %v4107_v46 = vmul.f32 %v7863_v36, %v4099_v14 }
0x15b6   :  { %v4153_v49 = vpop.permute.xlu0 %4152 }
0x15b7   :  { %v4161_v9 = vmul.f32 %v7860_v30, %v4153_v49 }
0x15b9   :  { %v4164_v23 = vadd.f32 %v4161_v9, %v4107_v46  ;;  %v4104_v57 = vpop.permute.xlu1 %4103 }
0x15ba   :  { %v4108_v53 = vmul.f32 %v7863_v36, %v4104_v57 }
0x15bb   :  { %v6559_v29 = vpack.c.bf16 %v4164_v23, %v4163_v7 }
0x15bd   :  { %6560 = vmatprep.subr.bf16.mxu1 %v6559_v29 }
0x15be   :  { %v4158_v58 = vpop.permute.xlu0 %4157  ;;  %6562 = vmatpush3.bf16.msra.mxu1 %v6559_v29 }
0x15bf   :  { %v4162_v3 = vmul.f32 %v7860_v30, %v4158_v58 }
0x15c1   :  { %v4165_v0 = vadd.f32 %v4162_v3, %v4108_v53 }
0x15c2   :  { %v4280_v16 = vpop.permute.xlu0 %4279 }
0x15c3   :  { %6295 = vmatprep.subr.mxu1 %v4165_v0  ;;  %v4285_v61 = vsub.f32 %v7516_v50, %v4280_v16  ;;  %v6729_v16 = vld [vmem:[%s8287_s2 + $0x10] sm:$0xff] }
0x15c4   :  { %6296 = vmatpush3.msra.mxu1 %v4165_v0 }
0x15c5   :  { %6567 = vmatprep.subr.bf16.mxu1 %v6739_v56  ;;  %v6752_v56 = vmov 2  }
0x15c6   :  { %6668 = vset.pattern.permute.xlu0 %v6752_v56  ;;  %v4282_v15 = vpop.permute.xlu0 %4281 }
0x15c7   :  { %v4286_v21 = vsub.f32 %v7514_v4, %v4282_v15  ;;  %v6730_v15 = vld [vmem:[%s8286_s3 + $0x10] sm:$0xff] }
0x15e3   :  { %v7872_v40 = vpop.trf.xlu1 }
0x15e4   :  { %6297 = vmatprep.mubr.msk.f32.mxu1 %vm858_vm15, %v7872_v40 }
0x15e7   :  { %v7876_v33 = vpop.trf.xlu1 }
0x15e8   :  { %6298 = vmatmul.mubr.msk.f32.vlgmr.msra.gmra.mrb[56].mxu1 %vm858_vm15, %v7876_v33 }
0x15e9   :  { %6317 = vmatprep.mubr.msk.f32.mxu1 %vm6736_vm6, %v6735_v11 }
0x16bb   :  { %v6299_v44 = vpop.f32.mrb[56].mxu1 }
0x16bc   :  { %v4270_v35 = vpop.f32.mrb[57].mxu1 }
0x16bd   :  { %4289 = vrot.lane.b32.xlu0 %v4270_v35, %s6751_s4  ;;  %v6726_v35 = vld [vmem:[%s8286_s3] sm:$0xff] }
0x16c1   :  { %4291 = vrot.lane.b32.xlu0 %v6299_v44, %s6751_s4  ;;  %v6725_v44 = vld [vmem:[%s8287_s2] sm:$0xff] }
0x172f   :  { %v4290_v32 = vpop.permute.xlu0 %4289 }
0x1730   :  { %v4295_v51 = vsub.f32 %v4285_v61, %v4290_v32 }
0x1732   :  { %v4297_v55 = vmul.f32 0.05, %v4295_v51 }
0x1733   :  { %v4292_v54 = vpop.permute.xlu0 %4291 }
0x1734   :  { %v4296_v2 = vsub.f32 %v4286_v21, %v4292_v54 }
0x1736   :  { %v4298_v26 = vmul.f32 0.05, %v4296_v2 }
0x1738   :  { %4303 = vrot.lane.b32.xlu0 %v4298_v26, %s6753_s19 }
0x173c   :  { %4301 = vrot.lane.b32.xlu0 %v4297_v55, %s6753_s19 }
0x1740   :  { %4323 = vrot.lane.b32.xlu0 %v4297_v55, %s6754_s20 }
0x1744   :  { %4325 = vrot.lane.b32.xlu0 %v4298_v26, %s6754_s20 }
0x1748   :  { %4346 = vperm.xlu0 %6668, %v4297_v55  }
0x174c   :  { %6669 = vset.pattern.permute.xlu0 %v6755_v39 }
0x17aa   :  { %v4304_v22 = vpop.permute.xlu0 %4303 }
0x17ab   :  { %v4308_v31 = vsel %vm56_vm7, %v4304_v22, 0.0 }
0x17ac   :  { %4316 = vperm.xlu0 %6669, %v4308_v31  }
0x17ae   :  { %v4302_v18 = vpop.permute.xlu0 %4301 }
0x17af   :  { %v4307_v5 = vsel %vm55_vm5, %v4302_v18, 0.0 }
0x17b0   :  { %4311 = vperm.xlu0 %6669, %v4307_v5  }
0x17b2   :  { %v4324_v45 = vpop.permute.xlu0 %4323 }
0x17b3   :  { %v4329_v20 = vsel %vm55_vm5, %v4324_v45, 0.0 }
0x17b4   :  { %6670 = vset.pattern.permute.xlu0 %v6742_v17 }
0x17b5   :  { %4333 = vperm.xlu0 %6670, %v4329_v20  }
0x17b6   :  { %v4326_v34 = vpop.permute.xlu0 %4325 }
0x17b7   :  { %v4330_v43 = vsel %vm56_vm7, %v4326_v34, 0.0 }
0x17b8   :  { %4338 = vperm.xlu1 %6667, %v4330_v43  }
0x17b9   :  { %6671 = vset.pattern.permute.xlu0 %v6752_v56  ;;  %v6728_v56 = vld [vmem:[%s8286_s3 + $0x8] sm:$0xff] }
0x17ba   :  { %4350 = vperm.xlu0 %6671, %v4298_v26  }
0x17bc   :  { %6678 = vset.pattern.permute.xlu1 %v6740_v12 }
0x17be   :  { %6677 = vset.pattern.permute.xlu0 %v6740_v12  ;;  %v7912_v12 = vsel %vm3006_vm2, 1.0, %v6735_v11 }
0x17c7   :  { %v4347_v27 = vpop.permute.xlu0 %4346 }
0x17c8   :  { %v4353_v23 = vmul.f32 %v7912_v12, %v4347_v27 }
0x182b   :  { %v4317_v60 = vpop.permute.xlu0 %4316 }
0x182c   :  { %v4320_v13 = vmul.f32 %v7504_v19, %v4317_v60 }
0x182e   :  { %v4322_v49 = vadd.f32 %v4320_v13, %v7514_v4 }
0x182f   :  { %v4312_v42 = vpop.permute.xlu0 %4311 }
0x1830   :  { %v4319_v28 = vmul.f32 %v7504_v19, %v4312_v42 }
0x1832   :  { %v4321_v41 = vadd.f32 %v4319_v28, %v7516_v50 }
0x1834   :  { %v4334_v48 = vpop.permute.xlu0 %4333 }
0x1835   :  { %v4341_v14 = vmul.f32 %v7905_v25, %v4334_v48 }
0x1837   :  { %v4339_v46 = vpop.permute.xlu1 %4338  ;;  %v4343_v1 = vadd.f32 %v4341_v14, %v4321_v41 }
0x1838   :  { %v4342_v9 = vmul.f32 %v7905_v25, %v4339_v46 }
0x1839   :  { %v4351_v7 = vpop.permute.xlu0 %4350  ;;  %v7918_v57 = vadd.f32 %v4353_v23, %v4343_v1 }
0x183a   :  { %v4344_v6 = vadd.f32 %v4342_v9, %v4322_v49  ;;  %v4354_v29 = vmul.f32 %v7912_v12, %v4351_v7 }
0x183c   :  { %v7920_v58 = vadd.f32 %v4354_v29, %v4344_v6 }
0x183e   :  { %v6672_v50 = vpack.i.bf16 %v7920_v58, %v7918_v57 }
0x1840   :  { %6673 = vrot.lane.b32.xlu0 %v6672_v50, %s6744_s8 }
0x18b2   :  { %v6674_v53 = vpop.permute.xlu0 %6673 }
0x18b3   :  { %v6676_v4 = vunpack.i.h.bf16 %v6674_v53  ;;  %v6675_v3 = vunpack.i.l.bf16 %v6674_v53 }
0x18b5   :  { %v6564_v0 = vpack.c.bf16 %v6676_v4, %v6675_v3 }
0x18b7   :  { %6566 = vmatpush3.bf16.msk.msra.mxu0 %vm6971_vm10, %v6564_v0  ;;  %6570 = vmatpush3.bf16.msk.msra.mxu1 %vm6971_vm10, %v6564_v0 }
0x18ba   :  { %6305 = vmatmul.mubr.msk.f32.vlgmr.msra.gmra.mrb[58].mxu0 %vm529_vm11, %v6725_v44  ;;  %6318 = vmatmul.mubr.msk.f32.vlgmr.msra.gmra.mrb[58].mxu1 %vm529_vm11, %v6726_v35 }
0x18bb   :  { %6307 = vmatprep.mubr.msk.f32.mxu0 %vm6736_vm6, %v6735_v11  ;;  %6320 = vmatprep.mubr.msk.f32.mxu1 %vm6736_vm6, %v6735_v11 }
0x18be   :  { %6308 = vmatmul.mubr.msk.f32.gmra.mrb[60].mxu0 %vm529_vm11, %v6727_v59  ;;  %6321 = vmatmul.mubr.msk.f32.gmra.mrb[60].mxu1 %vm529_vm11, %v6728_v56 }
0x18bf   :  { %6310 = vmatprep.mubr.msk.f32.mxu0 %vm6736_vm6, %v6735_v11  ;;  %6323 = vmatprep.mubr.msk.f32.mxu1 %vm6736_vm6, %v6735_v11 }
0x18c2   :  { %6311 = vmatmul.mubr.msk.f32.gmra.mrb[62].mxu0 %vm529_vm11, %v6729_v16  ;;  %6324 = vmatmul.mubr.msk.f32.gmra.mrb[62].mxu1 %vm529_vm11, %v6730_v15 }
0x18c3   :  { %6332 = vmatprep.mubr.msk.f32.mxu0 %vm858_vm15, %v7872_v40 }
0x198d   :  { %v4432_v32 = vpop.f32.mrb[58].mxu0  ;;  %v4512_v21 = vpop.f32.mrb[58].mxu1 }
0x198e   :  { %v7963_v54 = vsub.f32 %v4432_v32, %v4512_v21  ;;  %v7965_v11 = vmul.f32 %v4512_v21, %v4432_v32  ;;  %v6306_v61 = vpop.f32.mrb[59].mxu0  ;;  %v6319_v2 = vpop.f32.mrb[59].mxu1 }
0x1990   :  { %v4535_v51 = vand.u32 2139095040, %v7963_v54  ;;  %v4532_v22 = vand.u32 2147483647, %v7963_v54 }
0x1991   :  { %v4437_v26 = vpop.f32.mrb[60].mxu0  ;;  %v4517_v55 = vpop.f32.mrb[60].mxu1 }
0x1992   :  { %v4536_v31 = vshrl.u32 %v4535_v51, 23  ;;  %v7969_v18 = vsub.f32 %v4437_v26, %v4517_v55  ;;  %v7971_v5 = vmul.f32 %v4517_v55, %v4437_v26  ;;  %v6309_v40 = vpop.f32.mrb[61].mxu0  ;;  %v6322_v45 = vpop.f32.mrb[61].mxu1  ;;  %v4539_v42 = vand.u32 8388607, %v4532_v22 }
0x1994   :  { %v5627_v20 = vadd.s32 4294967169, %v4536_v31  ;;  %v4638_v34 = vand.u32 2139095040, %v7969_v18  ;;  %v4635_v43 = vand.u32 2147483647, %v7969_v18  ;;  %v4540_v23 = vor.u32 8388608, %v4539_v42 }
0x1995   :  { %v4442_v27 = vpop.f32.mrb[62].mxu0  ;;  %v4522_v60 = vpop.f32.mrb[62].mxu1 }
0x1996   :  { %v4542_v28 = vadd.s32 1, %v5627_v20  ;;  %v4639_v13 = vshrl.u32 %v4638_v34, 23  ;;  %v7977_v48 = vsub.f32 %v4442_v27, %v4522_v60  ;;  %v7979_v14 = vmul.f32 %v4522_v60, %v4442_v27  ;;  %v6312_v41 = vpop.f32.mrb[63].mxu0  ;;  %v6325_v46 = vpop.f32.mrb[63].mxu1 }
0x1997   :  { %v4642_v49 = vand.u32 8388607, %v4635_v43  ;;  %v7986_v44 = vshll.u32 %v4540_v23, 8 }
0x1998   :  { %vm4543_vm6 = vcmp.gt.s32.totalorder %v4542_v28, 0  ;;  %v5631_v1 = vadd.s32 4294967169, %v4639_v13  ;;  %v4741_v9 = vand.u32 2139095040, %v7977_v48  ;;  %v4738_v35 = vand.u32 2147483647, %v7977_v48 }
0x1999   :  { %v4544_v7 = vsel %vm4543_vm6, %v4542_v28, 0  ;;  %v4643_v53 = vor.u32 8388608, %v4642_v49 }
0x199a   :  { %v4546_v6 = vand.u32 31, %v4544_v7  ;;  %v4645_v29 = vadd.s32 1, %v5631_v1  ;;  %v4742_v50 = vshrl.u32 %v4741_v9, 23  ;;  %v7984_v4 = vshrl.u32 %v4544_v7, 5 }
0x199b   :  { %v7991_v15 = vshll.u32 %v4643_v53, 8 }
0x199c   :  { %v4547_v3 = vsub.s32 32, %v4546_v6  ;;  %vm4646_vm10 = vcmp.gt.s32.totalorder %v4645_v29, 0  ;;  %v5635_v0 = vadd.s32 4294967169, %v4742_v50  ;;  %v4558_v32 = vshll.u32 %v6747_v47, %v4546_v6 }
0x199d   :  { %v4647_v16 = vsel %vm4646_vm10, %v4645_v29, 0  ;;  %v4561_v21 = vshll.u32 %v6745_v24, %v4546_v6  ;;  %vm4567_vm11 = vcmp.lt.s32.totalorder %v7984_v4, 4  ;;  %v4549_v51 = vshll.u32 %v6748_v62, %v4546_v6 }
0x199e   :  { %v4559_v59 = vshrl.u32 %v6745_v24, %v4547_v3  ;;  %v4562_v56 = vshrl.u32 %v6746_v37, %v4547_v3  ;;  %v4649_v61 = vand.u32 31, %v4647_v16  ;;  %v4748_v2 = vadd.s32 1, %v5635_v0 }
0x199f   :  { %v4550_v26 = vshrl.u32 %v6749_v63, %v4547_v3  ;;  %v4553_v55 = vshrl.u32 %v6750_v52, %v4547_v3  ;;  %v7999_v45 = vshrl.u32 %v4647_v16, 5  ;;  %v4552_v60 = vshll.u32 %v6749_v63, %v4546_v6 }
0x19a0   :  { %v4560_v31 = vor.u32 %v4559_v59, %v4558_v32  ;;  %v4563_v40 = vor.u32 %v4562_v56, %v4561_v21  ;;  %v4650_v20 = vsub.s32 32, %v4649_v61  ;;  %v4661_v34 = vshll.u32 %v6747_v47, %v4649_v61 }
0x19a1   :  { %v4664_v27 = vshll.u32 %v6745_v24, %v4649_v61  ;;  %vm4749_vm3 = vcmp.gt.s32.totalorder %v4748_v2, 0  ;;  %v4548_v41 = vshrl.u32 %v6748_v62, %v4547_v3  ;;  %v4551_v49 = vor.u32 %v4550_v26, %v4549_v51 }
0x19a2   :  { %v4662_v42 = vshrl.u32 %v6745_v24, %v4650_v20  ;;  %v4665_v28 = vshrl.u32 %v6746_v37, %v4650_v20  ;;  %v4750_v13 = vsel %vm4749_vm3, %v4748_v2, 0  ;;  %v4554_v1 = vor.u32 %v4553_v55, %v4552_v60 }
0x19a3   :  { %v8007_v46 = vand.u32 31, %v4750_v13  ;;  %v4556_v9 = vshrl.u32 %v6747_v47, %v4547_v3  ;;  %v4573_v7 = vsel %vm4567_vm11, %v4560_v31, 920167782  ;;  %v4577_v23 = vsel %vm4567_vm11, %v4563_v40, 1326507024 }
0x19a4   :  { %vm4670_vm4 = vcmp.lt.s32.totalorder %v7999_v45, 4  ;;  %v4555_v29 = vshll.u32 %v6750_v52, %v4546_v6  ;;  %v4663_v50 = vor.u32 %v4662_v42, %v4661_v34  ;;  %v4666_v53 = vor.u32 %v4665_v28, %v4664_v27 }
0x19a5   :  { %v8016_v0 = vshrl.u32 %v4750_v13, 5  ;;  %vm4564_vm8 = vcmp.lt.s32.totalorder %v7984_v4, 1  ;;  %v8020_v59 = vsub.s32 32, %v8007_v46  ;;  %vm4565_vm12 = vcmp.lt.s32.totalorder %v7984_v4, 2 }
0x19a6   :  { %v4557_v3 = vor.u32 %v4556_v9, %v4555_v29  ;;  %vm4566_vm9 = vcmp.lt.s32.totalorder %v7984_v4, 3  ;;  %v4764_v56 = vshll.u32 %v6747_v47, %v8007_v46  ;;  %v8028_v6 = vshll.u32 %v6745_v24, %v8007_v46 }
0x19a7   :  { %v4572_v16 = vsel %vm4564_vm8, %v4551_v49, %v4554_v1  ;;  %v4578_v32 = vsel %vm4566_vm9, %v4560_v31, %v4577_v23  ;;  %v4568_v21 = vsel %vm4564_vm8, %v4548_v41, %v4551_v49  ;;  %v4676_v55 = vsel %vm4670_vm4, %v4663_v50, 920167782 }
0x19a8   :  { %v4569_v2 = vsel %vm4567_vm11, %v4557_v3, 2102212464  ;;  %v4574_v51 = vsel %vm4566_vm9, %v4557_v3, %v4573_v7  ;;  %v4576_v26 = vsel %vm4564_vm8, %v4554_v1, %v4557_v3  ;;  %v4680_v40 = vsel %vm4670_vm4, %v4666_v53, 1326507024 }
0x19a9   :  { %v4570_v34 = vsel %vm4566_vm9, %v4554_v1, %v4569_v2  ;;  %v4575_v27 = vsel %vm4565_vm12, %v4572_v16, %v4574_v51  ;;  %v4765_v60 = vshrl.u32 %v6745_v24, %v8020_v59  ;;  %v4579_v31 = vsel %vm4565_vm12, %v4576_v26, %v4578_v32 }
0x19aa   :  { %v8043_v42 = vmul.u32.u64.low %v7986_v44, %v4575_v27  ;;  %v8044_v28 = vmul.u32.u64.high %v7986_v44, %v4575_v27, %v8043_v42  ;;  %v4768_v13 = vshrl.u32 %v6746_v37, %v8020_v59  ;;  %v4571_v41 = vsel %vm4565_vm12, %v4568_v21, %v4570_v34 }
0x19ab   :  { %v8052_v49 = vmul.u32.u64.low %v7986_v44, %v4579_v31  ;;  %v8053_v1 = vmul.u32.u64.high %v7986_v44, %v4579_v31, %v8052_v49  ;;  %vm4773_vm13 = vcmp.lt.s32.totalorder %v8016_v0, 4  ;;  %v4651_v24 = vshrl.u32 %v6748_v62, %v4650_v20 }
0x19ac   :  { %v4652_v9 = vshll.u32 %v6748_v62, %v4649_v61  ;;  %v4653_v7 = vshrl.u32 %v6749_v63, %v4650_v20  ;;  %v4655_v23 = vshll.u32 %v6749_v63, %v4649_v61  ;;  %v4656_v29 = vshrl.u32 %v6750_v52, %v4650_v20 }
0x19ad   :  { %v4658_v37 = vshll.u32 %v6750_v52, %v4649_v61  ;;  %v4659_v4 = vshrl.u32 %v6747_v47, %v4650_v20  ;;  %vm4667_vm14 = vcmp.lt.s32.totalorder %v7999_v45, 1  ;;  %v4587_v53 = vmul.u32 %v7986_v44, %v4571_v41 }
0x19ae   :  { %v4590_v3 = vadd.s32 1, %v8044_v28  ;;  %v4654_v16 = vor.u32 %v4653_v7, %v4652_v9  ;;  %vm4669_vm0 = vcmp.lt.s32.totalorder %v7999_v45, 3  ;;  %vm4589_vm1 = vc.u32 %v8053_v1, %v8043_v42 }
0x19af   :  { %v4657_v32 = vor.u32 %v4656_v29, %v4655_v23  ;;  %v4660_v21 = vor.u32 %v4659_v4, %v4658_v37  ;;  %vm4668_vm2 = vcmp.lt.s32.totalorder %v7999_v45, 2  ;;  %v4766_v2 = vor.u32 %v4765_v60, %v4764_v56 }
0x19b0   :  { %v4591_v61 = vsel %vm4589_vm1, %v4590_v3, %v8044_v28  ;;  %v4671_v20 = vsel %vm4667_vm14, %v4651_v24, %v4654_v16  ;;  %v4681_v51 = vsel %vm4669_vm0, %v4663_v50, %v4680_v40  ;;  %v4769_v31 = vor.u32 %v4768_v13, %v8028_v6 }
0x19b1   :  { %v4592_v44 = vadd.s32 %v4591_v61, %v4587_v53  ;;  %v4672_v26 = vsel %vm4670_vm4, %v4660_v21, 2102212464  ;;  %v4675_v34 = vsel %vm4667_vm14, %v4654_v16, %v4657_v32  ;;  %v4677_v27 = vsel %vm4669_vm0, %v4660_v21, %v4676_v55 }
0x19b2   :  { %v4673_v41 = vsel %vm4669_vm0, %v4657_v32, %v4672_v26  ;;  %v4678_v49 = vsel %vm4668_vm2, %v4675_v34, %v4677_v27  ;;  %v4679_v56 = vsel %vm4667_vm14, %v4657_v32, %v4660_v21  ;;  %v4755_v50 = vshll.u32 %v6748_v62, %v8007_v46 }
0x19b3   :  { %v4593_v60 = vadd.s32 536870912, %v4592_v44  ;;  %v4674_v28 = vsel %vm4668_vm2, %v4671_v20, %v4673_v41  ;;  %v4682_v9 = vsel %vm4668_vm2, %v4679_v56, %v4681_v51  ;;  %v4756_v45 = vshrl.u32 %v6749_v63, %v8020_v59 }
0x19b4   :  { %v8083_v40 = vmul.u32.u64.low %v7991_v15, %v4682_v9  ;;  %v8084_v24 = vmul.u32.u64.high %v7991_v15, %v4682_v9, %v8083_v40  ;;  %v8087_v7 = vmul.u32.u64.low %v7991_v15, %v4678_v49  ;;  %v8088_v55 = vmul.u32.u64.high %v7991_v15, %v4678_v49, %v8087_v7 }
0x19b5   :  { %v8091_v6 = vshrl.u32 %v4593_v60, 30  ;;  %v4758_v13 = vshll.u32 %v6749_v63, %v8007_v46  ;;  %v4745_v23 = vand.u32 8388607, %v4738_v35  ;;  %v4759_v29 = vshrl.u32 %v6750_v52, %v8020_v59 }
0x19b6   :  { %v4761_v37 = vshll.u32 %v6750_v52, %v8007_v46  ;;  %v4762_v4 = vshrl.u32 %v6747_v47, %v8020_v59  ;;  %v4779_v53 = vsel %vm4773_vm13, %v4766_v2, 920167782  ;;  %v4783_v3 = vsel %vm4773_vm13, %v4769_v31, 1326507024 }
0x19b7   :  { %v4595_v63 = vshll.u32 %v8091_v6, 30  ;;  %v4690_v16 = vmul.u32 %v7991_v15, %v4674_v28  ;;  %vm4692_vm6 = vc.u32 %v8084_v24, %v8087_v7  ;;  %v4693_v32 = vadd.s32 1, %v8088_v55 }
0x19b8   :  { %v4757_v21 = vor.u32 %v4756_v45, %v4755_v50  ;;  %v4760_v52 = vor.u32 %v4759_v29, %v4758_v13  ;;  %v4763_v61 = vor.u32 %v4762_v4, %v4761_v37  ;;  %vm4770_vm10 = vcmp.lt.s32.totalorder %v8016_v0, 1 }
0x19b9   :  { %v4596_v46 = vsub.s32 %v4592_v44, %v4595_v63  ;;  %vm4772_vm11 = vcmp.lt.s32.totalorder %v8016_v0, 3  ;;  %v4694_v47 = vsel %vm4692_vm6, %v4693_v32, %v8088_v55  ;;  %v4746_v26 = vor.u32 8388608, %v4745_v23 }
0x19ba   :  { %v4695_v51 = vadd.s32 %v4694_v47, %v4690_v16  ;;  %vm4771_vm3 = vcmp.lt.s32.totalorder %v8016_v0, 2  ;;  %v4778_v15 = vsel %vm4770_vm10, %v4757_v21, %v4760_v52  ;;  %v4780_v34 = vsel %vm4772_vm11, %v4763_v61, %v4779_v53 }
0x19bb   :  { %v4598_v20 = vsub.s32 0, %v4596_v46  ;;  %v4782_v44 = vsel %vm4770_vm10, %v4760_v52, %v4763_v61  ;;  %v4784_v27 = vsel %vm4772_vm11, %v4766_v2, %v4783_v3  ;;  %v4754_v41 = vshrl.u32 %v6748_v62, %v8020_v59 }
0x19bc   :  { %v4696_v49 = vadd.s32 536870912, %v4695_v51  ;;  %v4775_v56 = vsel %vm4773_vm13, %v4763_v61, 2102212464  ;;  %v4781_v28 = vsel %vm4771_vm3, %v4778_v15, %v4780_v34  ;;  %v4785_v9 = vsel %vm4771_vm3, %v4782_v44, %v4784_v27 }
0x19bd   :  { %v5628_v31 = vmin.u32 %v4598_v20, %v4596_v46  ;;  %v4786_v50 = vshll.u32 %v4746_v26, 8  ;;  %v4774_v2 = vsel %vm4770_vm10, %v4754_v41, %v4757_v21  ;;  %v4776_v13 = vsel %vm4772_vm11, %v4760_v52, %v4775_v56 }
0x19be   :  { %v8134_v40 = vshrl.u32 %v4696_v49, 30  ;;  %v4588_v53 = vadd.s32 %v8043_v42, %v8053_v1  ;;  %v4777_v16 = vsel %vm4771_vm3, %v4774_v2, %v4776_v13  ;;  %v4618_v56 = vsub.s32 4, %v8091_v6 }
0x19bf   :  { %v4600_v60 = vclz %v5628_v31  ;;  %v8138_v45 = vmul.u32.u64.low %v4786_v50, %v4785_v9  ;;  %v8139_v62 = vmul.u32.u64.high %v4786_v50, %v4785_v9, %v8138_v45  ;;  %v4793_v26 = vmul.u32 %v4786_v50, %v4777_v16 }
0x19c0   :  { %v4698_v59 = vshll.u32 %v8134_v40, 30  ;;  %v8144_v23 = vmul.u32.u64.low %v4786_v50, %v4781_v28  ;;  %v8145_v29 = vmul.u32.u64.high %v4786_v50, %v4781_v28, %v8144_v23  ;;  %v4691_v28 = vadd.s32 %v8087_v7, %v8084_v24 }
0x19c1   :  { %v5629_v55 = vadd.s32 4294967294, %v4600_v60  ;;  %vm4534_vm9 = vcmp.lt.s32.totalorder %v7963_v54, 0  ;;  %vm4533_vm13 = vcmp.le.f32.partialorder %v4532_v22, 0.7853982  ;;  %vm4637_vm14 = vcmp.lt.s32.totalorder %v7969_v18, 0 }
0x19c2   :  { %v4699_v4 = vsub.s32 %v4695_v51, %v4698_v59  ;;  %vm4795_vm8 = vc.u32 %v8139_v62, %v8144_v23  ;;  %v4796_v52 = vadd.s32 1, %v8145_v29  ;;  %vm4636_vm2 = vcmp.le.f32.partialorder %v4635_v43, 0.7853982 }
0x19c3   :  { %vm5630_vm4 = vcmp.lt.s32.totalorder %v5629_v55, 0 }
0x19c4   :  { %v4603_v37 = vsel %vm5630_vm4, 0, %v5629_v55  ;;  %v4701_v21 = vsub.s32 0, %v4699_v4  ;;  %v4797_v42 = vsel %vm4795_vm8, %v4796_v52, %v8145_v29  ;;  %vm4624_vm4 = vweird.f32 %v7963_v54 }
0x19c5   :  { %v4604_v3 = vsub.s32 32, %v4603_v37  ;;  %v4608_v63 = vsub.s32 4294967266, %v4603_v37  ;;  %v4605_v32 = vshll.u32 %v4596_v46, %v4603_v37  ;;  %v4798_v34 = vadd.s32 %v4797_v42, %v4793_v26 }
0x19c6   :  { %v5632_v20 = vmin.u32 %v4701_v21, %v4699_v4 }
0x19c7   :  { %v4606_v61 = vshrl.u32 %v4588_v53, %v4604_v3  ;;  %v4609_v47 = vadd.s32 127, %v4608_v63  ;;  %v4799_v27 = vadd.s32 536870912, %v4798_v34  ;;  %v4619_v53 = vsel %vm4534_vm9, %v4618_v56, %v8091_v6 }
0x19c8   :  { %v4703_v1 = vclz %v5632_v20  ;;  %v4621_v16 = vsel %vm4533_vm13, 0, %v4619_v53 }
0x19c9   :  { %v4607_v51 = vor.u32 %v4606_v61, %v4605_v32  ;;  %v4610_v15 = vshll.u32 %v4609_v47, 23  ;;  %v8156_v41 = vshrl.u32 %v4799_v27, 30  ;;  %v4721_v47 = vsub.s32 4, %v8134_v40 }
0x19ca   :  { %v5633_v0 = vadd.s32 4294967294, %v4703_v1  ;;  %v4625_v20 = vand.u32 3, %v4621_v16  ;;  %v4934_v22 = vadd.s32 3, %v4621_v16 }
0x19cb   :  { %v4611_v44 = vor.u32 4788187, %v4610_v15  ;;  %v4614_v31 = vcvt.s32.f32 %v4607_v51  ;;  %v4801_v55 = vshll.u32 %v8156_v41, 30  ;;  %v4722_v15 = vsel %vm4637_vm14, %v4721_v47, %v8134_v40 }
0x19cc   :  { %vm5634_vm12 = vcmp.lt.s32.totalorder %v5633_v0, 0  ;;  %vm4626_vm1 = vcmp.lt.s32.totalorder %v4625_v20, 2  ;;  %v4935_v42 = vand.u32 3, %v4934_v22  ;;  %vm4627_vm6 = vcmp.eq.s32.totalorder %v4625_v20, 0 }
0x19cd   :  { %v4612_v46 = vand.u32 2147483647, %v4611_v44  ;;  %v4706_v60 = vsel %vm5634_vm12, 0, %v5633_v0  ;;  %v4802_v29 = vsub.s32 %v4798_v34, %v4801_v55  ;;  %v4794_v44 = vadd.s32 %v8144_v23, %v8139_v62 }
0x19ce   :  { %v4707_v9 = vsub.s32 32, %v4706_v60  ;;  %v4711_v50 = vsub.s32 4294967266, %v4706_v60  ;;  %v4708_v45 = vshll.u32 %v4699_v4, %v4706_v60  ;;  %vm4630_vm10 = vcmp.eq.s32.totalorder %v4625_v20, 2  ;;  %v8191_v20 = vld [vmem:[%s8283_s1] sm:$0xff] }
0x19cf   :  { %v4615_v49 = vmul.f32 %v4614_v31, %v4612_v46  ;;  %v4804_v63 = vsub.s32 0, %v4802_v29  ;;  %vm4937_vm11 = vcmp.eq.s32.totalorder %v4935_v42, 0  ;;  %vm4940_vm3 = vcmp.eq.s32.totalorder %v4935_v42, 2 }
0x19d0   :  { %v4709_v59 = vshrl.u32 %v4691_v28, %v4707_v9  ;;  %v4712_v13 = vadd.s32 127, %v4711_v50  ;;  %vm4936_vm8 = vcmp.lt.s32.totalorder %v4935_v42, 2  ;;  %vm8183_vm12 = vcmp.le.f32.partialorder %v4738_v35, 0.7853982 }
0x19d1   :  { %v4616_v2 = vxor.u32 2147483648, %v4615_v49  ;;  %v5636_v21 = vmin.u32 %v4804_v63, %v4802_v29 }
0x19d2   :  { %v4710_v24 = vor.u32 %v4709_v59, %v4708_v45  ;;  %v4713_v7 = vshll.u32 %v4712_v13, 23 }
0x19d3   :  { %v4617_v37 = vsel %vm4534_vm9, %v4616_v2, %v4615_v49  ;;  %v4806_v52 = vclz %v5636_v21  ;;  %v4724_v49 = vsel %vm4636_vm2, 0, %v4722_v15  ;;  %vm4740_vm9 = vcmp.lt.s32.totalorder %v7977_v48, 0 }
0x19d4   :  { %v4620_v3 = vsel %vm4533_vm13, %v7963_v54, %v4617_v37  ;;  %v4714_v32 = vor.u32 4788187, %v4713_v7  ;;  %v4717_v61 = vcvt.s32.f32 %v4710_v24  ;;  %v5038_v59 = vadd.s32 3, %v4724_v49 }
0x19d5   :  { %6697 = vcosq.f32 %v4620_v3  ;;  %v5637_v51 = vadd.s32 4294967294, %v4806_v52  ;;  %v4728_v7 = vand.u32 3, %v4724_v49  ;;  %v6732_v49 = vld [vmem:[%s8283_s1 + $0x8] sm:$0xff] }
0x19d6   :  { %6699 = vsinq.f32 %v4620_v3  ;;  %v4715_v4 = vand.u32 2147483647, %v4714_v32  ;;  %v5039_v63 = vand.u32 3, %v5038_v59  ;;  %v4824_v32 = vsub.s32 4, %v8156_v41 }
0x19d7   :  { %vm5638_vm0 = vcmp.lt.s32.totalorder %v5637_v51, 0  ;;  %vm4730_vm13 = vcmp.eq.s32.totalorder %v4728_v7, 0 }
0x19d8   :  { %v4718_v26 = vmul.f32 %v4717_v61, %v4715_v4  ;;  %v4809_v1 = vsel %vm5638_vm0, 0, %v5637_v51  ;;  %vm5044_vm0 = vcmp.eq.s32.totalorder %v5039_v63, 2  ;;  %v4825_v51 = vsel %vm4740_vm9, %v4824_v32, %v8156_v41 }
0x19d9   :  { %v4810_v0 = vsub.s32 32, %v4809_v1  ;;  %v4814_v27 = vsub.s32 4294967266, %v4809_v1  ;;  %v4811_v56 = vshll.u32 %v4802_v29, %v4809_v1 }
0x19da   :  { %v4719_v6 = vxor.u32 2147483648, %v4718_v26 }
0x19db   :  { %v4812_v28 = vshrl.u32 %v4794_v44, %v4810_v0  ;;  %v4815_v9 = vadd.s32 127, %v4814_v27  ;;  %v4827_v0 = vsel %vm8183_vm12, 0, %v4825_v51 }
0x19dc   :  { %v4720_v34 = vsel %vm4637_vm14, %v4719_v6, %v4718_v26  ;;  %vm4733_vm14 = vcmp.eq.s32.totalorder %v4728_v7, 2 }
0x19dd   :  { %v4723_v31 = vsel %vm4636_vm2, %v7969_v18, %v4720_v34  ;;  %v4813_v62 = vor.u32 %v4812_v28, %v4811_v56  ;;  %v4816_v23 = vshll.u32 %v4815_v9, 23  ;;  %vm5041_vm2 = vcmp.eq.s32.totalorder %v5039_v63, 0 }
0x19de   :  { %6701 = vcosq.f32 %v4723_v31 }
0x19df   :  { %v6698_v46 = vpop.eup %6697  ;;  %6703 = vsinq.f32 %v4723_v31  ;;  %v4817_v29 = vor.u32 4788187, %v4816_v23  ;;  %v4820_v24 = vcvt.s32.f32 %v4813_v62  ;;  %v5142_v31 = vadd.s32 3, %v4827_v0 }
0x19e0   :  { %v6700_v40 = vpop.eup %6699  ;;  %v4631_v60 = vxor.u32 2147483648, %v6698_v46 }
0x19e1   :  { %v4628_v50 = vxor.u32 2147483648, %v6700_v40  ;;  %v4818_v3 = vand.u32 2147483647, %v4817_v29 }
0x19e2   :  { %v4632_v43 = vsel %vm4630_vm10, %v4631_v60, %v6700_v40  ;;  %v4942_v45 = vsel %vm4940_vm3, %v4631_v60, %v6700_v40  ;;  %vm4729_vm10 = vcmp.lt.s32.totalorder %v4728_v7, 2  ;;  %v5143_v40 = vand.u32 3, %v5142_v31 }
0x19e3   :  { %v4629_v55 = vsel %vm4627_vm6, %v6698_v46, %v4628_v50  ;;  %v4939_v2 = vsel %vm4937_vm11, %v6698_v46, %v4628_v50  ;;  %v4821_v16 = vmul.f32 %v4820_v24, %v4818_v3  ;;  %vm4727_vm6 = vweird.f32 %v7969_v18 }
0x19e4   :  { %v4633_v13 = vsel %vm4626_vm1, %v4629_v55, %v4632_v43  ;;  %v4943_v53 = vsel %vm4936_vm8, %v4939_v2, %v4942_v45  ;;  %vm5040_vm1 = vcmp.lt.s32.totalorder %v5039_v63, 2  ;;  %v4831_v60 = vand.u32 3, %v4827_v0 }
0x19e5   :  { %v4634_v37 = vsel %vm4624_vm4, nan, %v4633_v13  ;;  %v4944_v21 = vsel %vm4624_vm4, nan, %v4943_v53  ;;  %v4822_v61 = vxor.u32 2147483648, %v4821_v16  ;;  %vm5148_vm11 = vcmp.eq.s32.totalorder %v5143_v40, 2  ;;  %v6733_v53 = vld [vmem:[%s8283_s1 + $0x10] sm:$0xff]  ;;  %s6756_s1 = smov 6  }
0x19e6   :  { %5156 = vrot.lane.b32.xlu0 %v4634_v37, %s6741_s28  ;;  %v5168_v22 = vmul.f32 %v8191_v20, %v4944_v21  ;;  %v5222_v41 = vmul.f32 %v8191_v20, %v4634_v37  ;;  %vm4836_vm3 = vcmp.eq.s32.totalorder %v4831_v60, 2  ;;  %vm5145_vm4 = vcmp.eq.s32.totalorder %v5143_v40, 0 }
0x19e7   :  { %v4823_v35 = vsel %vm4740_vm9, %v4822_v61, %v4821_v16  ;;  %vm4833_vm8 = vcmp.eq.s32.totalorder %v4831_v60, 0  ;;  %vm4832_vm9 = vcmp.lt.s32.totalorder %v4831_v60, 2 }
0x19e8   :  { %v6702_v4 = vpop.eup %6701  ;;  %v4826_v15 = vsel %vm8183_vm12, %v7977_v48, %v4823_v35  ;;  %vm5144_vm12 = vcmp.lt.s32.totalorder %v5143_v40, 2 }
0x19e9   :  { %v6704_v47 = vpop.eup %6703  ;;  %v4734_v52 = vxor.u32 2147483648, %v6702_v4  ;;  %6705 = vcosq.f32 %v4826_v15 }
0x19ea   :  { %5210 = vrot.lane.b32.xlu0 %v4944_v21, %s6741_s28  ;;  %v4731_v26 = vxor.u32 2147483648, %v6704_v47  ;;  %6707 = vsinq.f32 %v4826_v15 }
0x19eb   :  { %v5046_v6 = vsel %vm5044_vm0, %v4734_v52, %v6704_v47  ;;  %v4735_v34 = vsel %vm4733_vm14, %v4734_v52, %v6704_v47 }
0x19ec   :  { %v5043_v42 = vsel %vm5041_vm2, %v6702_v4, %v4731_v26  ;;  %v4732_v1 = vsel %vm4730_vm13, %v6702_v4, %v4731_v26  ;;  %vm4830_vm13 = vweird.f32 %v7977_v48 }
0x19ed   :  { %v5047_v44 = vsel %vm5040_vm1, %v5043_v42, %v5046_v6  ;;  %v4736_v46 = vsel %vm4729_vm10, %v4732_v1, %v4735_v34 }
0x19ee   :  { %5174 = vrot.lane.b32.xlu0 %v5168_v22, %s6741_s28  ;;  %v5048_v27 = vsel %vm4727_vm6, nan, %v5047_v44  ;;  %v4737_v56 = vsel %vm4727_vm6, nan, %v4736_v46 }
0x19ef   :  { %5212 = vrot.lane.b32.xlu1 %v5048_v27, %s6741_s28  ;;  %v5169_v18 = vmul.f32 %v6732_v49, %v5048_v27  ;;  %v5223_v28 = vmul.f32 %v6732_v49, %v4737_v56 }
0x19f2   :  { %5228 = vrot.lane.b32.xlu0 %v5222_v41, %s6741_s28 }
0x19f3   :  { %5176 = vrot.lane.b32.xlu1 %v5169_v18, %s6741_s28  ;;  %v6706_v9 = vpop.eup %6705 }
0x19f4   :  { %v6708_v50 = vpop.eup %6707  ;;  %v4837_v43 = vxor.u32 2147483648, %v6706_v9 }
0x19f5   :  { %v4834_v62 = vxor.u32 2147483648, %v6708_v50 }
0x19f6   :  { %5158 = vrot.lane.b32.xlu0 %v4737_v56, %s6741_s28  ;;  %v5150_v23 = vsel %vm5148_vm11, %v4837_v43, %v6708_v50  ;;  %v4838_v55 = vsel %vm4836_vm3, %v4837_v43, %v6708_v50 }
0x19f7   :  { %5230 = vrot.lane.b32.xlu1 %v5223_v28, %s6741_s28  ;;  %v5147_v2 = vsel %vm5145_vm4, %v6706_v9, %v4834_v62  ;;  %v4835_v45 = vsel %vm4833_vm8, %v6706_v9, %v4834_v62 }
0x19f8   :  { %v5151_v59 = vsel %vm5144_vm12, %v5147_v2, %v5150_v23  ;;  %v4839_v13 = vsel %vm4832_vm9, %v4835_v45, %v4838_v55 }
0x19f9   :  { %v5152_v29 = vsel %vm4830_vm13, nan, %v5151_v59  ;;  %v4840_v37 = vsel %vm4830_vm13, nan, %v4839_v13 }
0x19fa   :  { %5160 = vrot.lane.b32.xlu0 %v4840_v37, %s6741_s28  ;;  %v5170_v3 = vmul.f32 %v6733_v53, %v5152_v29  ;;  %v5224_v24 = vmul.f32 %v6733_v53, %v4840_v37 }
0x19fb   :  { %5214 = vrot.lane.b32.xlu1 %v5152_v29, %s6741_s28 }
0x19fe   :  { %5178 = vrot.lane.b32.xlu0 %v5170_v3, %s6741_s28 }
0x19ff   :  { %5232 = vrot.lane.b32.xlu1 %v5224_v24, %s6741_s28 }
0x1a58   :  { %v5157_v7 = vpop.permute.xlu0 %5156 }
0x1a59   :  { %v5165_v63 = vmul.f32 %v8191_v20, %v5157_v7 }
0x1a5c   :  { %v5211_v48 = vpop.permute.xlu0 %5210 }
0x1a5d   :  { %v5219_v26 = vmul.f32 %v8191_v20, %v5211_v48 }
0x1a60   :  { %v5175_v16 = vpop.permute.xlu0 %5174 }
0x1a61   :  { %v5183_v32 = vadd.f32 %v5175_v16, %v5165_v63  ;;  %v5213_v21 = vpop.permute.xlu1 %5212 }
0x1a62   :  { %v5220_v22 = vmul.f32 %v6732_v49, %v5213_v21 }
0x1a63   :  { %v5186_v4 = vmul.f32 %v5183_v32, %v7965_v11 }
0x1a64   :  { %v5229_v54 = vpop.permute.xlu0 %5228 }
0x1a65   :  { %5191 = vperm.xlu0 %6677, %v5186_v4   ;;  %v5177_v61 = vpop.permute.xlu1 %5176  ;;  %v5237_v15 = vsub.f32 %v5219_v26, %v5229_v54 }
0x1a67   :  { %v5240_v34 = vmul.f32 %v5237_v15, %v7965_v11 }
0x1a68   :  { %v5159_v47 = vpop.permute.xlu0 %5158 }
0x1a69   :  { %v5166_v52 = vmul.f32 %v6732_v49, %v5159_v47  ;;  %v5231_v35 = vpop.permute.xlu1 %5230 }
0x1a6a   :  { %v5238_v6 = vsub.f32 %v5220_v22, %v5231_v35 }
0x1a6b   :  { %v5184_v51 = vadd.f32 %v5177_v61, %v5166_v52 }
0x1a6c   :  { %v5241_v1 = vmul.f32 %v5238_v6, %v7971_v5  ;;  %v5161_v0 = vpop.permute.xlu0 %5160 }
0x1a6d   :  { %v5187_v42 = vmul.f32 %v5184_v51, %v7971_v5  ;;  %v5215_v44 = vpop.permute.xlu1 %5214  ;;  %v5167_v27 = vmul.f32 %v6733_v53, %v5161_v0 }
0x1a6e   :  { %5250 = vperm.xlu0 %6677, %v5241_v1   ;;  %v5221_v41 = vmul.f32 %v6733_v53, %v5215_v44 }
0x1a6f   :  { %5196 = vperm.xlu1 %6678, %v5187_v42  }
0x1a70   :  { %v5179_v31 = vpop.permute.xlu0 %5178 }
0x1a71   :  { %v5233_v46 = vpop.permute.xlu1 %5232  ;;  %v5185_v49 = vadd.f32 %v5179_v31, %v5167_v27 }
0x1a72   :  { %v5239_v20 = vsub.f32 %v5221_v41, %v5233_v46 }
0x1a73   :  { %5245 = vperm.xlu1 %6678, %v5240_v34   ;;  %v5188_v56 = vmul.f32 %v5185_v49, %v7979_v14 }
0x1a74   :  { %v5242_v18 = vmul.f32 %v5239_v20, %v7979_v14 }
0x1a76   :  { %5255 = vperm.xlu0 %6677, %v5242_v18  }
0x1a77   :  { %5201 = vperm.xlu1 %6678, %v5188_v56  }
0x1a7a   :  { %5341 = vrot.lane.b32.xlu0 %v7920_v58, %s6751_s4 }
0x1a7b   :  { %5339 = vrot.lane.b32.xlu1 %v7918_v57, %s6751_s4  ;;  %6679 = vset.pattern.permute.xlu0 %v6755_v39 }
0x1a7c   :  { %6680 = vset.pattern.permute.xlu1 %v6742_v17 }
0x1ae4   :  { %v5192_v11 = vpop.permute.xlu0 %5191 }
0x1ae5   :  { %v5204_v14 = vmul.f32 %v7863_v36, %v5192_v11 }
0x1aed   :  { %v5251_v40 = vpop.permute.xlu0 %5250 }
0x1aee   :  { %v5197_v5 = vpop.permute.xlu1 %5196  ;;  %v5259_v9 = vmul.f32 %v7860_v30, %v5251_v40 }
0x1aef   :  { %v5205_v60 = vmul.f32 %v7863_v36, %v5197_v5 }
0x1af1   :  { %v5262_v43 = vadd.f32 %v5259_v9, %v5205_v60 }
0x1af2   :  { %v5246_v28 = vpop.permute.xlu1 %5245 }
0x1af3   :  { %v5258_v50 = vmul.f32 %v7860_v30, %v5246_v28 }
0x1af5   :  { %v5261_v62 = vadd.f32 %v5258_v50, %v5204_v14  ;;  %v5256_v55 = vpop.permute.xlu0 %5255 }
0x1af6   :  { %v5202_v2 = vpop.permute.xlu1 %5201  ;;  %v5260_v45 = vmul.f32 %v7860_v30, %v5256_v55 }
0x1af7   :  { %v6571_v23 = vpack.c.bf16 %v5262_v43, %v5261_v62  ;;  %v5206_v59 = vmul.f32 %v7863_v36, %v5202_v2 }
0x1af9   :  { %6572 = vmatprep.subr.bf16.mxu0 %v6571_v23  ;;  %v5263_v13 = vadd.f32 %v5260_v45, %v5206_v59  ;;  %v5342_v53 = vpop.permute.xlu0 %5341 }
0x1afa   :  { %6574 = vmatpush3.bf16.msra.mxu0 %v6571_v23  ;;  %v5340_v3 = vpop.permute.xlu1 %5339  ;;  %v5346_v24 = vsub.f32 %v7920_v58, %v5342_v53 }
0x1afb   :  { %6330 = vmatprep.subr.mxu0 %v5263_v13  ;;  %v5345_v30 = vsub.f32 %v7918_v57, %v5340_v3 }
0x1afe   :  { %6331 = vmatpush3.msra.mxu0 %v5263_v13 }
0x1aff   :  { %6333 = vmatmul.mubr.msk.f32.vlgmr.msra.gmra.mrb[64].mxu0 %vm858_vm15, %v7876_v33  ;;  %vm5431_vm15 = vcmask 48128  }
0x1bd2   :  { %v6334_v29 = vpop.f32.mrb[64].mxu0 }
0x1bd3   :  { %5351 = vrot.lane.b32.xlu0 %v6334_v29, %s6751_s4  ;;  %v5330_v37 = vpop.f32.mrb[65].mxu0 }
0x1bd4   :  { %5349 = vrot.lane.b32.xlu1 %v5330_v37, %s6751_s4 }
0x1c45   :  { %v5352_v36 = vpop.permute.xlu0 %5351 }
0x1c46   :  { %v5356_v7 = vsub.f32 %v5346_v24, %v5352_v36  ;;  %v5350_v48 = vpop.permute.xlu1 %5349 }
0x1c47   :  { %v5355_v63 = vsub.f32 %v5345_v30, %v5350_v48 }
0x1c48   :  { %v5358_v16 = vmul.f32 0.02, %v5356_v7  ;;  %v5384_v33 = vmul.f32 0.05, %v5356_v7 }
0x1c49   :  { %v5357_v32 = vmul.f32 0.02, %v5355_v63  ;;  %v5383_v21 = vmul.f32 0.05, %v5355_v63 }
0x1c4a   :  { %5363 = vrot.lane.b32.xlu0 %v5358_v16, %s6753_s19 }
0x1c4b   :  { %5361 = vrot.lane.b32.xlu1 %v5357_v32, %s6753_s19 }
0x1c4e   :  { %5389 = vrot.lane.b32.xlu0 %v5384_v33, %s6754_s20 }
0x1c4f   :  { %5387 = vrot.lane.b32.xlu1 %v5383_v21, %s6754_s20 }
0x1c52   :  { %5411 = vrot.lane.b32.xlu0 %v5384_v33, %s6756_s1 }
0x1c53   :  { %5409 = vrot.lane.b32.xlu1 %v5383_v21, %s6756_s1 }
0x1cbc   :  { %v5364_v4 = vpop.permute.xlu0 %5363 }
0x1cbd   :  { %v5368_v54 = vsel %vm56_vm7, %v5364_v4, 0.0  ;;  %v5362_v61 = vpop.permute.xlu1 %5361 }
0x1cbe   :  { %5376 = vperm.xlu0 %6679, %v5368_v54   ;;  %v5367_v35 = vsel %vm55_vm5, %v5362_v61, 0.0 }
0x1cc0   :  { %v5390_v47 = vpop.permute.xlu0 %5389 }
0x1cc1   :  { %v5394_v52 = vsel %vm56_vm7, %v5390_v47, 0.0  ;;  %v5388_v22 = vpop.permute.xlu1 %5387 }
0x1cc2   :  { %5402 = vperm.xlu1 %6680, %v5394_v52   ;;  %6683 = vset.pattern.permute.xlu0 %v6743_v38  ;;  %v5393_v6 = vsel %vm55_vm5, %v5388_v22, 0.0 }
0x1cc4   :  { %v5412_v15 = vpop.permute.xlu0 %5411 }
0x1cc5   :  { %v5410_v26 = vpop.permute.xlu1 %5409  ;;  %v5416_v42 = vsel %vm56_vm7, %v5412_v15, 0.0 }
0x1cc6   :  { %v5415_v51 = vsel %vm55_vm5, %v5410_v26, 0.0  ;;  %6681 = vset.pattern.permute.xlu1 %v6755_v39  ;;  %vm5433_vm5 = vcmask 44032  }
0x1cc7   :  { %5371 = vperm.xlu1 %6681, %v5367_v35   ;;  %5419 = vperm.xlu0 %6683, %v5415_v51  }
0x1ccb   :  { %6682 = vset.pattern.permute.xlu1 %v6742_v17 }
0x1ccc   :  { %5397 = vperm.xlu1 %6682, %v5393_v6  }
0x1cd0   :  { %6684 = vset.pattern.permute.xlu1 %v6743_v38 }
0x1cd1   :  { %5424 = vperm.xlu1 %6684, %v5416_v42  }
0x1d3d   :  { %v5377_v44 = vpop.permute.xlu0 %5376 }
0x1d3e   :  { %v5380_v0 = vmul.f32 %v7504_v19, %v5377_v44 }
0x1d40   :  { %v5382_v38 = vadd.f32 %v5380_v0, %v7920_v58 }
0x1d41   :  { %v5403_v1 = vpop.permute.xlu1 %5402 }
0x1d42   :  { %v5406_v46 = vmul.f32 %v7905_v25, %v5403_v1 }
0x1d44   :  { %v5408_v18 = vadd.f32 %v5406_v46, %v5382_v38 }
0x1d46   :  { %v5372_v34 = vpop.permute.xlu1 %5371  ;;  %v5420_v41 = vpop.permute.xlu0 %5419 }
0x1d47   :  { %v5379_v39 = vmul.f32 %v7504_v19, %v5372_v34  ;;  %v5427_v10 = vmul.f32 %v7912_v12, %v5420_v41 }
0x1d49   :  { %v5381_v27 = vadd.f32 %v5379_v39, %v7918_v57 }
0x1d4b   :  { %v5398_v8 = vpop.permute.xlu1 %5397 }
0x1d4c   :  { %v5405_v17 = vmul.f32 %v7905_v25, %v5398_v8 }
0x1d4e   :  { %v5407_v31 = vadd.f32 %v5405_v17, %v5381_v27 }
0x1d50   :  { %v5429_v20 = vadd.f32 %v5427_v10, %v5407_v31  ;;  %v5425_v49 = vpop.permute.xlu1 %5424 }
0x1d51   :  { %v5428_v56 = vmul.f32 %v7912_v12, %v5425_v49 }
0x1d52   :  { %5432 = vst.msk [vmem:[%s8292_s13] sm:$0xff] %vm5431_vm15, %v5429_v20 }
0x1d53   :  { %v5430_v19 = vadd.f32 %v5428_v56, %v5408_v18 }
0x1d55   :  { %5434 = vst.msk [vmem:[%s8292_s13 + $0x8] sm:$0xf] %vm5433_vm5, %v5430_v19 }

</bundles_post_ra>
